<compile_context>
chip_gen: v5e
topology: v5e:2x2
jax: 0.10.0
libtpu: 0.0.40
codegen_flags: <defaults>
</compile_context>

<pallas_src>
import functools
import math

import jax
import jax.numpy as jnp
from jax.experimental import pallas as pl
from jax.experimental.pallas import tpu as pltpu


# ------------------------------ Pallas kernel -------------------------------

def _decoder_stack_kernel(
    x_ref, hs_ref, smask_ref, cmask_ref,
    sw_ref, swo_ref, sg_ref, sb_ref,
    cw_ref, cwo_ref, cg_ref, cb_ref,
    w1_ref, b1_ref, w2_ref, b2_ref, fg_ref, fb_ref,
    out_ref, *, num_layers, num_heads, head_dim):
    """Full decoder stack for one batch element (everything resident in VMEM)."""
    f32, bf16 = jnp.float32, jnp.bfloat16
    scale = 1.0 / math.sqrt(head_dim)

    def dot(a, b):
        # bf16 MXU inputs, f32 accumulation.
        return jnp.dot(a.astype(bf16), b.astype(bf16),
                       preferred_element_type=f32)

    def layer_norm(v, g, b):                     # f32 math, eps = 1e-5
        mu = jnp.mean(v, axis=-1, keepdims=True)
        var = jnp.mean((v - mu) ** 2, axis=-1, keepdims=True)
        return (v - mu) * jax.lax.rsqrt(var + 1e-5) * g + b

    def mha(x_q, x_kv, mask, w_ref, wo_ref, g_ref, b_ref, l):
        """Multi-head attention + residual + LayerNorm (dropout = identity)."""
        out = jnp.zeros_like(x_q)
        for hh in range(num_heads):              # static unrolled head loop
            # per-head weights were pre-split at init -> no lane slicing here
            q_h = dot(x_q, w_ref[l, 0, hh])      # (seq_q, head_dim)
            k_h = dot(x_kv, w_ref[l, 1, hh])     # (seq_k, head_dim)
            v_h = dot(x_kv, w_ref[l, 2, hh])     # (seq_k, head_dim)
            s = jax.lax.dot_general(
                q_h.astype(bf16), k_h.astype(bf16),
                (((1,), (1,)), ((), ())),
                preferred_element_type=f32) * scale        # (seq_q, seq_k)
            s = s + mask * (-1e9)                # matches `att += zero_mask * -1e9`
            s = s - jnp.max(s, axis=-1, keepdims=True)
            p = jnp.exp(s)
            p = p / jnp.sum(p, axis=-1, keepdims=True)
            pv = dot(p, v_h)                     # (seq_q, head_dim)
            # accumulate this head's share of the output projection
            out = out + dot(pv, wo_ref[l, hh])   # (seq_q, d_model)
        return layer_norm(out + x_q, g_ref[l], b_ref[l])

    x = x_ref[...].astype(f32)                   # (seq_de, d_model), carries residual
    hs = hs_ref[...]                             # (seq_en, d_model), bf16
    smask = smask_ref[...]                       # (seq_de, seq_de) additive mask
    cmask = cmask_ref[...]                       # (seq_de, seq_en) additive mask

    for l in range(num_layers):                  # whole stack fused in one kernel
        # masked self-attention
        x = mha(x, x, smask, sw_ref, swo_ref, sg_ref, sb_ref, l)
        # cross-attention over encoder memory
        x = mha(x, hs, cmask, cw_ref, cwo_ref, cg_ref, cb_ref, l)
        # position-wise FFN + residual + LayerNorm
        h = jnp.maximum(dot(x, w1_ref[l]) + b1_ref[l], 0.0)
        o = dot(h, w2_ref[l]) + b2_ref[l]
        x = layer_norm(o + x, fg_ref[l], fb_ref[l])

    out_ref[...] = x.astype(out_ref.dtype)


# ------------------------------- wrapper ------------------------------------

_WEIGHT_ORDER = ("self_w", "self_wo", "self_g", "self_b",
                 "cross_w", "cross_wo", "cross_g", "cross_b",
                 "w1", "b1", "w2", "b2", "ffn_g", "ffn_b")


def _const_spec(arr):
    n = arr.ndim
    return pl.BlockSpec(arr.shape, lambda b, _n=n: (0,) * _n)


def _prep_mask(mask, bs, sq, sk):
    """Accept PyTorch-style (bs,1,1,sk) / (bs,1,sq,sk) masks, return (bs,sq,sk)."""
    m = jnp.asarray(mask, jnp.float32)
    if m.ndim == 4:
        m = m[:, 0]                              # drop broadcast head dim
    return jnp.broadcast_to(m, (bs, sq, sk))


def decoder_forward(params, src, hs, dec_combined_mask, dec_pad_mask, *, num_heads):
    bs, sq, d = src.shape
    sk = hs.shape[1]
    num_layers = params["self_w"].shape[0]
    head_dim = d // num_heads
    assert head_dim * num_heads == d

    smask = _prep_mask(dec_combined_mask, bs, sq, sq)
    cmask = _prep_mask(dec_pad_mask, bs, sq, sk)
    weights = [params[n] for n in _WEIGHT_ORDER]

    kernel = functools.partial(_decoder_stack_kernel, num_layers=num_layers,
                               num_heads=num_heads, head_dim=head_dim)

    in_specs = [
        pl.BlockSpec((None, sq, d), lambda b: (b, 0, 0)),    # decoder activations
        pl.BlockSpec((None, sk, d), lambda b: (b, 0, 0)),    # encoder memory hs
        pl.BlockSpec((None, sq, sq), lambda b: (b, 0, 0)),   # combined (causal+pad)
        pl.BlockSpec((None, sq, sk), lambda b: (b, 0, 0)),   # cross-attn pad mask
    ] + [_const_spec(w) for w in weights]                    # resident weights

    return pl.pallas_call(
        kernel,
        out_shape=jax.ShapeDtypeStruct((bs, sq, d), jnp.float32),
        grid=(bs,),
        in_specs=in_specs,
        out_specs=pl.BlockSpec((None, sq, d), lambda b: (b, 0, 0)),
        compiler_params=pltpu.CompilerParams(
            dimension_semantics=("parallel",)),              # megacore on v7x
    )(src.astype(jnp.float32), hs.astype(jnp.bfloat16), smask, cmask, *weights)


# ------------------------------ params init ---------------------------------

def init_decoder_params(key, d_model, d_ff, num_heads, num_layers):
    """Weights stored pre-transposed & pre-split per head, matmul weights in bf16."""
    L, d, H = num_layers, d_model, num_heads
    hd = d // H
    ks = jax.random.split(key, 6)

    def w(k, shape, fan_in):
        return (jax.random.normal(k, shape, jnp.float32)
                * (fan_in ** -0.5)).astype(jnp.bfloat16)

    return dict(
        self_w=w(ks[0], (L, 3, H, d, hd), d),     # q/k/v, per head, (in, out) layout
        self_wo=w(ks[1], (L, H, hd, d), d),       # output proj, per head
        self_g=jnp.ones((L, 1, d), jnp.float32),
        self_b=jnp.zeros((L, 1, d), jnp.float32),
        cross_w=w(ks[2], (L, 3, H, d, hd), d),
        cross_wo=w(ks[3], (L, H, hd, d), d),
        cross_g=jnp.ones((L, 1, d), jnp.float32),
        cross_b=jnp.zeros((L, 1, d), jnp.float32),
        w1=w(ks[4], (L, d, d_ff), d),             # already transposed: x @ w1
        b1=jnp.zeros((L, 1, d_ff), jnp.float32),
        w2=w(ks[5], (L, d_ff, d), d_ff),
        b2=jnp.zeros((L, 1, d), jnp.float32),
        ffn_g=jnp.ones((L, 1, d), jnp.float32),
        ffn_b=jnp.zeros((L, 1, d), jnp.float32),
    )


# ----------------------------------- main ------------------------------------

if __name__ == "__main__":
    d_model, d_ff, num_heads, num_layers = 32, 64, 4, 2
    bs, seq_de, seq_en = 2, 8, 16

    key = jax.random.PRNGKey(0)
    kp, kx, kh = jax.random.split(key, 3)

    params = init_decoder_params(kp, d_model, d_ff, num_heads, num_layers)

    src = jax.random.normal(kx, (bs, seq_de, d_model), jnp.float32)   # decoder input
    hs = jax.random.normal(kh, (bs, seq_en, d_model), jnp.float32)    # encoder memory

    # dec_combined_mask: causal ("ahead") + decoder padding, shape (bs,1,seq,seq)
    ahead = 1.0 - jnp.tril(jnp.ones((seq_de, seq_de), jnp.float32))
    de_pad = jnp.zeros((bs, seq_de), jnp.float32).at[:, -2:].set(1.0)
    dec_combined_mask = (ahead[None, :, :] + de_pad[:, None, :])[:, None]
    # dec_pad_mask: encoder padding over the key axis, shape (bs,1,1,seq_en)
    en_pad = jnp.zeros((bs, seq_en), jnp.float32).at[:, -3:].set(1.0)
    dec_pad_mask = en_pad[:, None, None, :]

    out = decoder_forward(params, src, hs, dec_combined_mask, dec_pad_mask,
                          num_heads=num_heads)
    out = jax.block_until_ready(out)
    assert out.shape == (bs, seq_de, d_model)
    assert bool(jnp.isfinite(out).all())
    print("KERNEL_OK")
</pallas_src>

<mosaic_0001>
module attributes {stable_mosaic.version = 11 : i64} {
  func.func @_decoder_stack_kernel(%arg0: i32, %arg1: memref<1x8x32xf32, #tpu.memory_space<vmem>>, %arg2: memref<1x16x32xbf16, #tpu.memory_space<vmem>>, %arg3: memref<1x8x8xf32, #tpu.memory_space<vmem>>, %arg4: memref<1x8x16xf32, #tpu.memory_space<vmem>>, %arg5: memref<2x3x4x32x8xbf16, #tpu.memory_space<vmem>>, %arg6: memref<2x4x8x32xbf16, #tpu.memory_space<vmem>>, %arg7: memref<2x1x32xf32, #tpu.memory_space<vmem>>, %arg8: memref<2x1x32xf32, #tpu.memory_space<vmem>>, %arg9: memref<2x3x4x32x8xbf16, #tpu.memory_space<vmem>>, %arg10: memref<2x4x8x32xbf16, #tpu.memory_space<vmem>>, %arg11: memref<2x1x32xf32, #tpu.memory_space<vmem>>, %arg12: memref<2x1x32xf32, #tpu.memory_space<vmem>>, %arg13: memref<2x32x64xbf16, #tpu.memory_space<vmem>>, %arg14: memref<2x1x64xf32, #tpu.memory_space<vmem>>, %arg15: memref<2x64x32xbf16, #tpu.memory_space<vmem>>, %arg16: memref<2x1x32xf32, #tpu.memory_space<vmem>>, %arg17: memref<2x1x32xf32, #tpu.memory_space<vmem>>, %arg18: memref<2x1x32xf32, #tpu.memory_space<vmem>>, %arg19: memref<1x8x32xf32, #tpu.memory_space<vmem>>) attributes {dimension_semantics = [#tpu.dimension_semantics<parallel>], iteration_bounds = array<i64: 2>, scalar_prefetch = 0 : i64, scratch_operands = 0 : i64, tpu.core_type = #tpu.core_type<tc>, window_params = [{transform_indices = @transform_0, window_bounds = array<i64: 1, 8, 32>}, {transform_indices = @transform_1, window_bounds = array<i64: 1, 16, 32>}, {transform_indices = @transform_2, window_bounds = array<i64: 1, 8, 8>}, {transform_indices = @transform_3, window_bounds = array<i64: 1, 8, 16>}, {pipeline_mode = #tpu.pipeline_mode<synchronous>, transform_indices = @transform_4, window_bounds = array<i64: 2, 3, 4, 32, 8>}, {pipeline_mode = #tpu.pipeline_mode<synchronous>, transform_indices = @transform_5, window_bounds = array<i64: 2, 4, 8, 32>}, {pipeline_mode = #tpu.pipeline_mode<synchronous>, transform_indices = @transform_6, window_bounds = array<i64: 2, 1, 32>}, {pipeline_mode = #tpu.pipeline_mode<synchronous>, transform_indices = @transform_7, window_bounds = array<i64: 2, 1, 32>}, {pipeline_mode = #tpu.pipeline_mode<synchronous>, transform_indices = @transform_8, window_bounds = array<i64: 2, 3, 4, 32, 8>}, {pipeline_mode = #tpu.pipeline_mode<synchronous>, transform_indices = @transform_9, window_bounds = array<i64: 2, 4, 8, 32>}, {pipeline_mode = #tpu.pipeline_mode<synchronous>, transform_indices = @transform_10, window_bounds = array<i64: 2, 1, 32>}, {pipeline_mode = #tpu.pipeline_mode<synchronous>, transform_indices = @transform_11, window_bounds = array<i64: 2, 1, 32>}, {pipeline_mode = #tpu.pipeline_mode<synchronous>, transform_indices = @transform_12, window_bounds = array<i64: 2, 32, 64>}, {pipeline_mode = #tpu.pipeline_mode<synchronous>, transform_indices = @transform_13, window_bounds = array<i64: 2, 1, 64>}, {pipeline_mode = #tpu.pipeline_mode<synchronous>, transform_indices = @transform_14, window_bounds = array<i64: 2, 64, 32>}, {pipeline_mode = #tpu.pipeline_mode<synchronous>, transform_indices = @transform_15, window_bounds = array<i64: 2, 1, 32>}, {pipeline_mode = #tpu.pipeline_mode<synchronous>, transform_indices = @transform_16, window_bounds = array<i64: 2, 1, 32>}, {pipeline_mode = #tpu.pipeline_mode<synchronous>, transform_indices = @transform_17, window_bounds = array<i64: 2, 1, 32>}, {transform_indices = @transform_18, window_bounds = array<i64: 1, 8, 32>}]} {
    %c0 = arith.constant 0 : index
    %c0_0 = arith.constant 0 : index
    %c0_1 = arith.constant 0 : index
    %0 = vector.load %arg1[%c0, %c0_0, %c0_1] : memref<1x8x32xf32, #tpu.memory_space<vmem>>, vector<1x8x32xf32>
    %1 = vector.shape_cast %0 : vector<1x8x32xf32> to vector<8x32xf32>
    %c0_2 = arith.constant 0 : index
    %c0_3 = arith.constant 0 : index
    %c0_4 = arith.constant 0 : index
    %2 = vector.load %arg2[%c0_2, %c0_3, %c0_4] : memref<1x16x32xbf16, #tpu.memory_space<vmem>>, vector<1x16x32xbf16>
    %3 = vector.shape_cast %2 : vector<1x16x32xbf16> to vector<16x32xbf16>
    %c0_5 = arith.constant 0 : index
    %c0_6 = arith.constant 0 : index
    %c0_7 = arith.constant 0 : index
    %4 = vector.load %arg3[%c0_5, %c0_6, %c0_7] : memref<1x8x8xf32, #tpu.memory_space<vmem>>, vector<1x8x8xf32>
    %5 = vector.shape_cast %4 : vector<1x8x8xf32> to vector<8x8xf32>
    %c0_8 = arith.constant 0 : index
    %c0_9 = arith.constant 0 : index
    %c0_10 = arith.constant 0 : index
    %6 = vector.load %arg4[%c0_8, %c0_9, %c0_10] : memref<1x8x16xf32, #tpu.memory_space<vmem>>, vector<1x8x16xf32>
    %7 = vector.shape_cast %6 : vector<1x8x16xf32> to vector<8x16xf32>
    %cst = arith.constant 0.000000e+00 : f32
    %8 = vector.broadcast %cst : f32 to vector<8x32xf32>
    %c0_11 = arith.constant 0 : index
    %c0_12 = arith.constant 0 : index
    %c0_13 = arith.constant 0 : index
    %c0_14 = arith.constant 0 : index
    %c0_15 = arith.constant 0 : index
    %9 = vector.load %arg5[%c0_11, %c0_12, %c0_13, %c0_14, %c0_15] : memref<2x3x4x32x8xbf16, #tpu.memory_space<vmem>>, vector<1x1x1x32x8xbf16>
    %10 = vector.shape_cast %9 : vector<1x1x1x32x8xbf16> to vector<32x8xbf16>
    %11 = arith.truncf %1 : vector<8x32xf32> to vector<8x32xbf16>
    %cst_16 = arith.constant dense<0.000000e+00> : vector<8x8xf32>
    %12 = tpu.matmul %11, %10, %cst_16 {dimension_numbers = #tpu.dot_dimension_numbers<[1], [0], [0], [1], [0, 0, 1, 1], [], []>} : vector<8x32xbf16>, vector<32x8xbf16>, vector<8x8xf32> -> vector<8x8xf32>
    %c0_17 = arith.constant 0 : index
    %c1 = arith.constant 1 : index
    %c0_18 = arith.constant 0 : index
    %c0_19 = arith.constant 0 : index
    %c0_20 = arith.constant 0 : index
    %13 = vector.load %arg5[%c0_17, %c1, %c0_18, %c0_19, %c0_20] : memref<2x3x4x32x8xbf16, #tpu.memory_space<vmem>>, vector<1x1x1x32x8xbf16>
    %14 = vector.shape_cast %13 : vector<1x1x1x32x8xbf16> to vector<32x8xbf16>
    %15 = arith.truncf %1 : vector<8x32xf32> to vector<8x32xbf16>
    %cst_21 = arith.constant dense<0.000000e+00> : vector<8x8xf32>
    %16 = tpu.matmul %15, %14, %cst_21 {dimension_numbers = #tpu.dot_dimension_numbers<[1], [0], [0], [1], [0, 0, 1, 1], [], []>} : vector<8x32xbf16>, vector<32x8xbf16>, vector<8x8xf32> -> vector<8x8xf32>
    %c0_22 = arith.constant 0 : index
    %c2 = arith.constant 2 : index
    %c0_23 = arith.constant 0 : index
    %c0_24 = arith.constant 0 : index
    %c0_25 = arith.constant 0 : index
    %17 = vector.load %arg5[%c0_22, %c2, %c0_23, %c0_24, %c0_25] : memref<2x3x4x32x8xbf16, #tpu.memory_space<vmem>>, vector<1x1x1x32x8xbf16>
    %18 = vector.shape_cast %17 : vector<1x1x1x32x8xbf16> to vector<32x8xbf16>
    %19 = arith.truncf %1 : vector<8x32xf32> to vector<8x32xbf16>
    %cst_26 = arith.constant dense<0.000000e+00> : vector<8x8xf32>
    %20 = tpu.matmul %19, %18, %cst_26 {dimension_numbers = #tpu.dot_dimension_numbers<[1], [0], [0], [1], [0, 0, 1, 1], [], []>} : vector<8x32xbf16>, vector<32x8xbf16>, vector<8x8xf32> -> vector<8x8xf32>
    %21 = arith.truncf %12 : vector<8x8xf32> to vector<8x8xbf16>
    %22 = arith.truncf %16 : vector<8x8xf32> to vector<8x8xbf16>
    %cst_27 = arith.constant dense<0.000000e+00> : vector<8x8xf32>
    %23 = tpu.matmul %21, %22, %cst_27 {dimension_numbers = #tpu.dot_dimension_numbers<[1], [1], [0], [0], [0, 0, 1, 0], [], []>} : vector<8x8xbf16>, vector<8x8xbf16>, vector<8x8xf32> -> vector<8x8xf32>
    %cst_28 = arith.constant 0.353553385 : f32
    %24 = vector.broadcast %cst_28 : f32 to vector<8x8xf32>
    %25 = arith.mulf %23, %24 : vector<8x8xf32>
    %cst_29 = arith.constant -1.000000e+09 : f32
    %26 = vector.broadcast %cst_29 : f32 to vector<8x8xf32>
    %27 = arith.mulf %5, %26 : vector<8x8xf32>
    %28 = arith.addf %25, %27 : vector<8x8xf32>
    %cst_30 = arith.constant dense<0xFF800000> : vector<8xf32>
    %29 = vector.multi_reduction <maximumf>, %28, %cst_30 [1] : vector<8x8xf32> to vector<8xf32>
    %30 = vector.shape_cast %29 : vector<8xf32> to vector<8x1xf32>
    %31 = vector.broadcast %30 : vector<8x1xf32> to vector<8x8xf32>
    %32 = arith.subf %28, %31 : vector<8x8xf32>
    %33 = math.exp %32 : vector<8x8xf32>
    %cst_31 = arith.constant dense<0.000000e+00> : vector<8xf32>
    %34 = vector.multi_reduction <add>, %33, %cst_31 [1] : vector<8x8xf32> to vector<8xf32>
    %35 = vector.shape_cast %34 : vector<8xf32> to vector<8x1xf32>
    %36 = vector.broadcast %35 : vector<8x1xf32> to vector<8x8xf32>
    %37 = arith.divf %33, %36 : vector<8x8xf32>
    %38 = arith.truncf %37 : vector<8x8xf32> to vector<8x8xbf16>
    %39 = arith.truncf %20 : vector<8x8xf32> to vector<8x8xbf16>
    %cst_32 = arith.constant dense<0.000000e+00> : vector<8x8xf32>
    %40 = tpu.matmul %38, %39, %cst_32 {dimension_numbers = #tpu.dot_dimension_numbers<[1], [0], [0], [1], [0, 0, 1, 1], [], []>} : vector<8x8xbf16>, vector<8x8xbf16>, vector<8x8xf32> -> vector<8x8xf32>
    %c0_33 = arith.constant 0 : index
    %c0_34 = arith.constant 0 : index
    %c0_35 = arith.constant 0 : index
    %c0_36 = arith.constant 0 : index
    %41 = vector.load %arg6[%c0_33, %c0_34, %c0_35, %c0_36] : memref<2x4x8x32xbf16, #tpu.memory_space<vmem>>, vector<1x1x8x32xbf16>
    %42 = vector.shape_cast %41 : vector<1x1x8x32xbf16> to vector<8x32xbf16>
    %43 = arith.truncf %40 : vector<8x8xf32> to vector<8x8xbf16>
    %cst_37 = arith.constant dense<0.000000e+00> : vector<8x32xf32>
    %44 = tpu.matmul %43, %42, %cst_37 {dimension_numbers = #tpu.dot_dimension_numbers<[1], [0], [0], [1], [0, 0, 1, 1], [], []>} : vector<8x8xbf16>, vector<8x32xbf16>, vector<8x32xf32> -> vector<8x32xf32>
    %45 = arith.addf %8, %44 : vector<8x32xf32>
    %c0_38 = arith.constant 0 : index
    %c0_39 = arith.constant 0 : index
    %c1_40 = arith.constant 1 : index
    %c0_41 = arith.constant 0 : index
    %c0_42 = arith.constant 0 : index
    %46 = vector.load %arg5[%c0_38, %c0_39, %c1_40, %c0_41, %c0_42] : memref<2x3x4x32x8xbf16, #tpu.memory_space<vmem>>, vector<1x1x1x32x8xbf16>
    %47 = vector.shape_cast %46 : vector<1x1x1x32x8xbf16> to vector<32x8xbf16>
    %48 = arith.truncf %1 : vector<8x32xf32> to vector<8x32xbf16>
    %cst_43 = arith.constant dense<0.000000e+00> : vector<8x8xf32>
    %49 = tpu.matmul %48, %47, %cst_43 {dimension_numbers = #tpu.dot_dimension_numbers<[1], [0], [0], [1], [0, 0, 1, 1], [], []>} : vector<8x32xbf16>, vector<32x8xbf16>, vector<8x8xf32> -> vector<8x8xf32>
    %c0_44 = arith.constant 0 : index
    %c1_45 = arith.constant 1 : index
    %c1_46 = arith.constant 1 : index
    %c0_47 = arith.constant 0 : index
    %c0_48 = arith.constant 0 : index
    %50 = vector.load %arg5[%c0_44, %c1_45, %c1_46, %c0_47, %c0_48] : memref<2x3x4x32x8xbf16, #tpu.memory_space<vmem>>, vector<1x1x1x32x8xbf16>
    %51 = vector.shape_cast %50 : vector<1x1x1x32x8xbf16> to vector<32x8xbf16>
    %52 = arith.truncf %1 : vector<8x32xf32> to vector<8x32xbf16>
    %cst_49 = arith.constant dense<0.000000e+00> : vector<8x8xf32>
    %53 = tpu.matmul %52, %51, %cst_49 {dimension_numbers = #tpu.dot_dimension_numbers<[1], [0], [0], [1], [0, 0, 1, 1], [], []>} : vector<8x32xbf16>, vector<32x8xbf16>, vector<8x8xf32> -> vector<8x8xf32>
    %c0_50 = arith.constant 0 : index
    %c2_51 = arith.constant 2 : index
    %c1_52 = arith.constant 1 : index
    %c0_53 = arith.constant 0 : index
    %c0_54 = arith.constant 0 : index
    %54 = vector.load %arg5[%c0_50, %c2_51, %c1_52, %c0_53, %c0_54] : memref<2x3x4x32x8xbf16, #tpu.memory_space<vmem>>, vector<1x1x1x32x8xbf16>
    %55 = vector.shape_cast %54 : vector<1x1x1x32x8xbf16> to vector<32x8xbf16>
    %56 = arith.truncf %1 : vector<8x32xf32> to vector<8x32xbf16>
    %cst_55 = arith.constant dense<0.000000e+00> : vector<8x8xf32>
    %57 = tpu.matmul %56, %55, %cst_55 {dimension_numbers = #tpu.dot_dimension_numbers<[1], [0], [0], [1], [0, 0, 1, 1], [], []>} : vector<8x32xbf16>, vector<32x8xbf16>, vector<8x8xf32> -> vector<8x8xf32>
    %58 = arith.truncf %49 : vector<8x8xf32> to vector<8x8xbf16>
    %59 = arith.truncf %53 : vector<8x8xf32> to vector<8x8xbf16>
    %cst_56 = arith.constant dense<0.000000e+00> : vector<8x8xf32>
    %60 = tpu.matmul %58, %59, %cst_56 {dimension_numbers = #tpu.dot_dimension_numbers<[1], [1], [0], [0], [0, 0, 1, 0], [], []>} : vector<8x8xbf16>, vector<8x8xbf16>, vector<8x8xf32> -> vector<8x8xf32>
    %cst_57 = arith.constant 0.353553385 : f32
    %61 = vector.broadcast %cst_57 : f32 to vector<8x8xf32>
    %62 = arith.mulf %60, %61 : vector<8x8xf32>
    %cst_58 = arith.constant -1.000000e+09 : f32
    %63 = vector.broadcast %cst_58 : f32 to vector<8x8xf32>
    %64 = arith.mulf %5, %63 : vector<8x8xf32>
    %65 = arith.addf %62, %64 : vector<8x8xf32>
    %cst_59 = arith.constant dense<0xFF800000> : vector<8xf32>
    %66 = vector.multi_reduction <maximumf>, %65, %cst_59 [1] : vector<8x8xf32> to vector<8xf32>
    %67 = vector.shape_cast %66 : vector<8xf32> to vector<8x1xf32>
    %68 = vector.broadcast %67 : vector<8x1xf32> to vector<8x8xf32>
    %69 = arith.subf %65, %68 : vector<8x8xf32>
    %70 = math.exp %69 : vector<8x8xf32>
    %cst_60 = arith.constant dense<0.000000e+00> : vector<8xf32>
    %71 = vector.multi_reduction <add>, %70, %cst_60 [1] : vector<8x8xf32> to vector<8xf32>
    %72 = vector.shape_cast %71 : vector<8xf32> to vector<8x1xf32>
    %73 = vector.broadcast %72 : vector<8x1xf32> to vector<8x8xf32>
    %74 = arith.divf %70, %73 : vector<8x8xf32>
    %75 = arith.truncf %74 : vector<8x8xf32> to vector<8x8xbf16>
    %76 = arith.truncf %57 : vector<8x8xf32> to vector<8x8xbf16>
    %cst_61 = arith.constant dense<0.000000e+00> : vector<8x8xf32>
    %77 = tpu.matmul %75, %76, %cst_61 {dimension_numbers = #tpu.dot_dimension_numbers<[1], [0], [0], [1], [0, 0, 1, 1], [], []>} : vector<8x8xbf16>, vector<8x8xbf16>, vector<8x8xf32> -> vector<8x8xf32>
    %c0_62 = arith.constant 0 : index
    %c1_63 = arith.constant 1 : index
    %c0_64 = arith.constant 0 : index
    %c0_65 = arith.constant 0 : index
    %78 = vector.load %arg6[%c0_62, %c1_63, %c0_64, %c0_65] : memref<2x4x8x32xbf16, #tpu.memory_space<vmem>>, vector<1x1x8x32xbf16>
    %79 = vector.shape_cast %78 : vector<1x1x8x32xbf16> to vector<8x32xbf16>
    %80 = arith.truncf %77 : vector<8x8xf32> to vector<8x8xbf16>
    %cst_66 = arith.constant dense<0.000000e+00> : vector<8x32xf32>
    %81 = tpu.matmul %80, %79, %cst_66 {dimension_numbers = #tpu.dot_dimension_numbers<[1], [0], [0], [1], [0, 0, 1, 1], [], []>} : vector<8x8xbf16>, vector<8x32xbf16>, vector<8x32xf32> -> vector<8x32xf32>
    %82 = arith.addf %45, %81 : vector<8x32xf32>
    %c0_67 = arith.constant 0 : index
    %c0_68 = arith.constant 0 : index
    %c2_69 = arith.constant 2 : index
    %c0_70 = arith.constant 0 : index
    %c0_71 = arith.constant 0 : index
    %83 = vector.load %arg5[%c0_67, %c0_68, %c2_69, %c0_70, %c0_71] : memref<2x3x4x32x8xbf16, #tpu.memory_space<vmem>>, vector<1x1x1x32x8xbf16>
    %84 = vector.shape_cast %83 : vector<1x1x1x32x8xbf16> to vector<32x8xbf16>
    %85 = arith.truncf %1 : vector<8x32xf32> to vector<8x32xbf16>
    %cst_72 = arith.constant dense<0.000000e+00> : vector<8x8xf32>
    %86 = tpu.matmul %85, %84, %cst_72 {dimension_numbers = #tpu.dot_dimension_numbers<[1], [0], [0], [1], [0, 0, 1, 1], [], []>} : vector<8x32xbf16>, vector<32x8xbf16>, vector<8x8xf32> -> vector<8x8xf32>
    %c0_73 = arith.constant 0 : index
    %c1_74 = arith.constant 1 : index
    %c2_75 = arith.constant 2 : index
    %c0_76 = arith.constant 0 : index
    %c0_77 = arith.constant 0 : index
    %87 = vector.load %arg5[%c0_73, %c1_74, %c2_75, %c0_76, %c0_77] : memref<2x3x4x32x8xbf16, #tpu.memory_space<vmem>>, vector<1x1x1x32x8xbf16>
    %88 = vector.shape_cast %87 : vector<1x1x1x32x8xbf16> to vector<32x8xbf16>
    %89 = arith.truncf %1 : vector<8x32xf32> to vector<8x32xbf16>
    %cst_78 = arith.constant dense<0.000000e+00> : vector<8x8xf32>
    %90 = tpu.matmul %89, %88, %cst_78 {dimension_numbers = #tpu.dot_dimension_numbers<[1], [0], [0], [1], [0, 0, 1, 1], [], []>} : vector<8x32xbf16>, vector<32x8xbf16>, vector<8x8xf32> -> vector<8x8xf32>
    %c0_79 = arith.constant 0 : index
    %c2_80 = arith.constant 2 : index
    %c2_81 = arith.constant 2 : index
    %c0_82 = arith.constant 0 : index
    %c0_83 = arith.constant 0 : index
    %91 = vector.load %arg5[%c0_79, %c2_80, %c2_81, %c0_82, %c0_83] : memref<2x3x4x32x8xbf16, #tpu.memory_space<vmem>>, vector<1x1x1x32x8xbf16>
    %92 = vector.shape_cast %91 : vector<1x1x1x32x8xbf16> to vector<32x8xbf16>
    %93 = arith.truncf %1 : vector<8x32xf32> to vector<8x32xbf16>
    %cst_84 = arith.constant dense<0.000000e+00> : vector<8x8xf32>
    %94 = tpu.matmul %93, %92, %cst_84 {dimension_numbers = #tpu.dot_dimension_numbers<[1], [0], [0], [1], [0, 0, 1, 1], [], []>} : vector<8x32xbf16>, vector<32x8xbf16>, vector<8x8xf32> -> vector<8x8xf32>
    %95 = arith.truncf %86 : vector<8x8xf32> to vector<8x8xbf16>
    %96 = arith.truncf %90 : vector<8x8xf32> to vector<8x8xbf16>
    %cst_85 = arith.constant dense<0.000000e+00> : vector<8x8xf32>
    %97 = tpu.matmul %95, %96, %cst_85 {dimension_numbers = #tpu.dot_dimension_numbers<[1], [1], [0], [0], [0, 0, 1, 0], [], []>} : vector<8x8xbf16>, vector<8x8xbf16>, vector<8x8xf32> -> vector<8x8xf32>
    %cst_86 = arith.constant 0.353553385 : f32
    %98 = vector.broadcast %cst_86 : f32 to vector<8x8xf32>
    %99 = arith.mulf %97, %98 : vector<8x8xf32>
    %cst_87 = arith.constant -1.000000e+09 : f32
    %100 = vector.broadcast %cst_87 : f32 to vector<8x8xf32>
    %101 = arith.mulf %5, %100 : vector<8x8xf32>
    %102 = arith.addf %99, %101 : vector<8x8xf32>
    %cst_88 = arith.constant dense<0xFF800000> : vector<8xf32>
    %103 = vector.multi_reduction <maximumf>, %102, %cst_88 [1] : vector<8x8xf32> to vector<8xf32>
    %104 = vector.shape_cast %103 : vector<8xf32> to vector<8x1xf32>
    %105 = vector.broadcast %104 : vector<8x1xf32> to vector<8x8xf32>
    %106 = arith.subf %102, %105 : vector<8x8xf32>
    %107 = math.exp %106 : vector<8x8xf32>
    %cst_89 = arith.constant dense<0.000000e+00> : vector<8xf32>
    %108 = vector.multi_reduction <add>, %107, %cst_89 [1] : vector<8x8xf32> to vector<8xf32>
    %109 = vector.shape_cast %108 : vector<8xf32> to vector<8x1xf32>
    %110 = vector.broadcast %109 : vector<8x1xf32> to vector<8x8xf32>
    %111 = arith.divf %107, %110 : vector<8x8xf32>
    %112 = arith.truncf %111 : vector<8x8xf32> to vector<8x8xbf16>
    %113 = arith.truncf %94 : vector<8x8xf32> to vector<8x8xbf16>
    %cst_90 = arith.constant dense<0.000000e+00> : vector<8x8xf32>
    %114 = tpu.matmul %112, %113, %cst_90 {dimension_numbers = #tpu.dot_dimension_numbers<[1], [0], [0], [1], [0, 0, 1, 1], [], []>} : vector<8x8xbf16>, vector<8x8xbf16>, vector<8x8xf32> -> vector<8x8xf32>
    %c0_91 = arith.constant 0 : index
    %c2_92 = arith.constant 2 : index
    %c0_93 = arith.constant 0 : index
    %c0_94 = arith.constant 0 : index
    %115 = vector.load %arg6[%c0_91, %c2_92, %c0_93, %c0_94] : memref<2x4x8x32xbf16, #tpu.memory_space<vmem>>, vector<1x1x8x32xbf16>
    %116 = vector.shape_cast %115 : vector<1x1x8x32xbf16> to vector<8x32xbf16>
    %117 = arith.truncf %114 : vector<8x8xf32> to vector<8x8xbf16>
    %cst_95 = arith.constant dense<0.000000e+00> : vector<8x32xf32>
    %118 = tpu.matmul %117, %116, %cst_95 {dimension_numbers = #tpu.dot_dimension_numbers<[1], [0], [0], [1], [0, 0, 1, 1], [], []>} : vector<8x8xbf16>, vector<8x32xbf16>, vector<8x32xf32> -> vector<8x32xf32>
    %119 = arith.addf %82, %118 : vector<8x32xf32>
    %c0_96 = arith.constant 0 : index
    %c0_97 = arith.constant 0 : index
    %c3 = arith.constant 3 : index
    %c0_98 = arith.constant 0 : index
    %c0_99 = arith.constant 0 : index
    %120 = vector.load %arg5[%c0_96, %c0_97, %c3, %c0_98, %c0_99] : memref<2x3x4x32x8xbf16, #tpu.memory_space<vmem>>, vector<1x1x1x32x8xbf16>
    %121 = vector.shape_cast %120 : vector<1x1x1x32x8xbf16> to vector<32x8xbf16>
    %122 = arith.truncf %1 : vector<8x32xf32> to vector<8x32xbf16>
    %cst_100 = arith.constant dense<0.000000e+00> : vector<8x8xf32>
    %123 = tpu.matmul %122, %121, %cst_100 {dimension_numbers = #tpu.dot_dimension_numbers<[1], [0], [0], [1], [0, 0, 1, 1], [], []>} : vector<8x32xbf16>, vector<32x8xbf16>, vector<8x8xf32> -> vector<8x8xf32>
    %c0_101 = arith.constant 0 : index
    %c1_102 = arith.constant 1 : index
    %c3_103 = arith.constant 3 : index
    %c0_104 = arith.constant 0 : index
    %c0_105 = arith.constant 0 : index
    %124 = vector.load %arg5[%c0_101, %c1_102, %c3_103, %c0_104, %c0_105] : memref<2x3x4x32x8xbf16, #tpu.memory_space<vmem>>, vector<1x1x1x32x8xbf16>
    %125 = vector.shape_cast %124 : vector<1x1x1x32x8xbf16> to vector<32x8xbf16>
    %126 = arith.truncf %1 : vector<8x32xf32> to vector<8x32xbf16>
    %cst_106 = arith.constant dense<0.000000e+00> : vector<8x8xf32>
    %127 = tpu.matmul %126, %125, %cst_106 {dimension_numbers = #tpu.dot_dimension_numbers<[1], [0], [0], [1], [0, 0, 1, 1], [], []>} : vector<8x32xbf16>, vector<32x8xbf16>, vector<8x8xf32> -> vector<8x8xf32>
    %c0_107 = arith.constant 0 : index
    %c2_108 = arith.constant 2 : index
    %c3_109 = arith.constant 3 : index
    %c0_110 = arith.constant 0 : index
    %c0_111 = arith.constant 0 : index
    %128 = vector.load %arg5[%c0_107, %c2_108, %c3_109, %c0_110, %c0_111] : memref<2x3x4x32x8xbf16, #tpu.memory_space<vmem>>, vector<1x1x1x32x8xbf16>
    %129 = vector.shape_cast %128 : vector<1x1x1x32x8xbf16> to vector<32x8xbf16>
    %130 = arith.truncf %1 : vector<8x32xf32> to vector<8x32xbf16>
    %cst_112 = arith.constant dense<0.000000e+00> : vector<8x8xf32>
    %131 = tpu.matmul %130, %129, %cst_112 {dimension_numbers = #tpu.dot_dimension_numbers<[1], [0], [0], [1], [0, 0, 1, 1], [], []>} : vector<8x32xbf16>, vector<32x8xbf16>, vector<8x8xf32> -> vector<8x8xf32>
    %132 = arith.truncf %123 : vector<8x8xf32> to vector<8x8xbf16>
    %133 = arith.truncf %127 : vector<8x8xf32> to vector<8x8xbf16>
    %cst_113 = arith.constant dense<0.000000e+00> : vector<8x8xf32>
    %134 = tpu.matmul %132, %133, %cst_113 {dimension_numbers = #tpu.dot_dimension_numbers<[1], [1], [0], [0], [0, 0, 1, 0], [], []>} : vector<8x8xbf16>, vector<8x8xbf16>, vector<8x8xf32> -> vector<8x8xf32>
    %cst_114 = arith.constant 0.353553385 : f32
    %135 = vector.broadcast %cst_114 : f32 to vector<8x8xf32>
    %136 = arith.mulf %134, %135 : vector<8x8xf32>
    %cst_115 = arith.constant -1.000000e+09 : f32
    %137 = vector.broadcast %cst_115 : f32 to vector<8x8xf32>
    %138 = arith.mulf %5, %137 : vector<8x8xf32>
    %139 = arith.addf %136, %138 : vector<8x8xf32>
    %cst_116 = arith.constant dense<0xFF800000> : vector<8xf32>
    %140 = vector.multi_reduction <maximumf>, %139, %cst_116 [1] : vector<8x8xf32> to vector<8xf32>
    %141 = vector.shape_cast %140 : vector<8xf32> to vector<8x1xf32>
    %142 = vector.broadcast %141 : vector<8x1xf32> to vector<8x8xf32>
    %143 = arith.subf %139, %142 : vector<8x8xf32>
    %144 = math.exp %143 : vector<8x8xf32>
    %cst_117 = arith.constant dense<0.000000e+00> : vector<8xf32>
    %145 = vector.multi_reduction <add>, %144, %cst_117 [1] : vector<8x8xf32> to vector<8xf32>
    %146 = vector.shape_cast %145 : vector<8xf32> to vector<8x1xf32>
    %147 = vector.broadcast %146 : vector<8x1xf32> to vector<8x8xf32>
    %148 = arith.divf %144, %147 : vector<8x8xf32>
    %149 = arith.truncf %148 : vector<8x8xf32> to vector<8x8xbf16>
    %150 = arith.truncf %131 : vector<8x8xf32> to vector<8x8xbf16>
    %cst_118 = arith.constant dense<0.000000e+00> : vector<8x8xf32>
    %151 = tpu.matmul %149, %150, %cst_118 {dimension_numbers = #tpu.dot_dimension_numbers<[1], [0], [0], [1], [0, 0, 1, 1], [], []>} : vector<8x8xbf16>, vector<8x8xbf16>, vector<8x8xf32> -> vector<8x8xf32>
    %c0_119 = arith.constant 0 : index
    %c3_120 = arith.constant 3 : index
    %c0_121 = arith.constant 0 : index
    %c0_122 = arith.constant 0 : index
    %152 = vector.load %arg6[%c0_119, %c3_120, %c0_121, %c0_122] : memref<2x4x8x32xbf16, #tpu.memory_space<vmem>>, vector<1x1x8x32xbf16>
    %153 = vector.shape_cast %152 : vector<1x1x8x32xbf16> to vector<8x32xbf16>
    %154 = arith.truncf %151 : vector<8x8xf32> to vector<8x8xbf16>
    %cst_123 = arith.constant dense<0.000000e+00> : vector<8x32xf32>
    %155 = tpu.matmul %154, %153, %cst_123 {dimension_numbers = #tpu.dot_dimension_numbers<[1], [0], [0], [1], [0, 0, 1, 1], [], []>} : vector<8x8xbf16>, vector<8x32xbf16>, vector<8x32xf32> -> vector<8x32xf32>
    %156 = arith.addf %119, %155 : vector<8x32xf32>
    %157 = arith.addf %156, %1 : vector<8x32xf32>
    %c0_124 = arith.constant 0 : index
    %c0_125 = arith.constant 0 : index
    %c0_126 = arith.constant 0 : index
    %158 = vector.load %arg7[%c0_124, %c0_125, %c0_126] : memref<2x1x32xf32, #tpu.memory_space<vmem>>, vector<1x1x32xf32>
    %159 = vector.shape_cast %158 : vector<1x1x32xf32> to vector<1x32xf32>
    %c0_127 = arith.constant 0 : index
    %c0_128 = arith.constant 0 : index
    %c0_129 = arith.constant 0 : index
    %160 = vector.load %arg8[%c0_127, %c0_128, %c0_129] : memref<2x1x32xf32, #tpu.memory_space<vmem>>, vector<1x1x32xf32>
    %161 = vector.shape_cast %160 : vector<1x1x32xf32> to vector<1x32xf32>
    %cst_130 = arith.constant dense<0.000000e+00> : vector<8xf32>
    %162 = vector.multi_reduction <add>, %157, %cst_130 [1] : vector<8x32xf32> to vector<8xf32>
    %163 = vector.shape_cast %162 : vector<8xf32> to vector<8x1xf32>
    %cst_131 = arith.constant 3.200000e+01 : f32
    %164 = vector.broadcast %cst_131 : f32 to vector<8x1xf32>
    %165 = arith.divf %163, %164 : vector<8x1xf32>
    %166 = vector.broadcast %165 : vector<8x1xf32> to vector<8x32xf32>
    %167 = arith.subf %157, %166 : vector<8x32xf32>
    %168 = arith.mulf %167, %167 : vector<8x32xf32>
    %cst_132 = arith.constant dense<0.000000e+00> : vector<8xf32>
    %169 = vector.multi_reduction <add>, %168, %cst_132 [1] : vector<8x32xf32> to vector<8xf32>
    %170 = vector.shape_cast %169 : vector<8xf32> to vector<8x1xf32>
    %cst_133 = arith.constant 3.200000e+01 : f32
    %171 = vector.broadcast %cst_133 : f32 to vector<8x1xf32>
    %172 = arith.divf %170, %171 : vector<8x1xf32>
    %173 = vector.broadcast %165 : vector<8x1xf32> to vector<8x32xf32>
    %174 = arith.subf %157, %173 : vector<8x32xf32>
    %cst_134 = arith.constant 9.99999974E-6 : f32
    %175 = vector.broadcast %cst_134 : f32 to vector<8x1xf32>
    %176 = arith.addf %172, %175 : vector<8x1xf32>
    %177 = math.rsqrt %176 : vector<8x1xf32>
    %178 = vector.broadcast %177 : vector<8x1xf32> to vector<8x32xf32>
    %179 = arith.mulf %174, %178 : vector<8x32xf32>
    %180 = vector.broadcast %159 : vector<1x32xf32> to vector<8x32xf32>
    %181 = arith.mulf %179, %180 : vector<8x32xf32>
    %182 = vector.broadcast %161 : vector<1x32xf32> to vector<8x32xf32>
    %183 = arith.addf %181, %182 : vector<8x32xf32>
    %cst_135 = arith.constant 0.000000e+00 : f32
    %184 = vector.broadcast %cst_135 : f32 to vector<8x32xf32>
    %c0_136 = arith.constant 0 : index
    %c0_137 = arith.constant 0 : index
    %c0_138 = arith.constant 0 : index
    %c0_139 = arith.constant 0 : index
    %c0_140 = arith.constant 0 : index
    %185 = vector.load %arg9[%c0_136, %c0_137, %c0_138, %c0_139, %c0_140] : memref<2x3x4x32x8xbf16, #tpu.memory_space<vmem>>, vector<1x1x1x32x8xbf16>
    %186 = vector.shape_cast %185 : vector<1x1x1x32x8xbf16> to vector<32x8xbf16>
    %187 = arith.truncf %183 : vector<8x32xf32> to vector<8x32xbf16>
    %cst_141 = arith.constant dense<0.000000e+00> : vector<8x8xf32>
    %188 = tpu.matmul %187, %186, %cst_141 {dimension_numbers = #tpu.dot_dimension_numbers<[1], [0], [0], [1], [0, 0, 1, 1], [], []>} : vector<8x32xbf16>, vector<32x8xbf16>, vector<8x8xf32> -> vector<8x8xf32>
    %c0_142 = arith.constant 0 : index
    %c1_143 = arith.constant 1 : index
    %c0_144 = arith.constant 0 : index
    %c0_145 = arith.constant 0 : index
    %c0_146 = arith.constant 0 : index
    %189 = vector.load %arg9[%c0_142, %c1_143, %c0_144, %c0_145, %c0_146] : memref<2x3x4x32x8xbf16, #tpu.memory_space<vmem>>, vector<1x1x1x32x8xbf16>
    %190 = vector.shape_cast %189 : vector<1x1x1x32x8xbf16> to vector<32x8xbf16>
    %cst_147 = arith.constant dense<0.000000e+00> : vector<16x8xf32>
    %191 = tpu.matmul %3, %190, %cst_147 {dimension_numbers = #tpu.dot_dimension_numbers<[1], [0], [0], [1], [0, 0, 1, 1], [], []>} : vector<16x32xbf16>, vector<32x8xbf16>, vector<16x8xf32> -> vector<16x8xf32>
    %c0_148 = arith.constant 0 : index
    %c2_149 = arith.constant 2 : index
    %c0_150 = arith.constant 0 : index
    %c0_151 = arith.constant 0 : index
    %c0_152 = arith.constant 0 : index
    %192 = vector.load %arg9[%c0_148, %c2_149, %c0_150, %c0_151, %c0_152] : memref<2x3x4x32x8xbf16, #tpu.memory_space<vmem>>, vector<1x1x1x32x8xbf16>
    %193 = vector.shape_cast %192 : vector<1x1x1x32x8xbf16> to vector<32x8xbf16>
    %cst_153 = arith.constant dense<0.000000e+00> : vector<16x8xf32>
    %194 = tpu.matmul %3, %193, %cst_153 {dimension_numbers = #tpu.dot_dimension_numbers<[1], [0], [0], [1], [0, 0, 1, 1], [], []>} : vector<16x32xbf16>, vector<32x8xbf16>, vector<16x8xf32> -> vector<16x8xf32>
    %195 = arith.truncf %188 : vector<8x8xf32> to vector<8x8xbf16>
    %196 = arith.truncf %191 : vector<16x8xf32> to vector<16x8xbf16>
    %cst_154 = arith.constant dense<0.000000e+00> : vector<8x16xf32>
    %197 = tpu.matmul %195, %196, %cst_154 {dimension_numbers = #tpu.dot_dimension_numbers<[1], [1], [0], [0], [0, 0, 1, 0], [], []>} : vector<8x8xbf16>, vector<16x8xbf16>, vector<8x16xf32> -> vector<8x16xf32>
    %cst_155 = arith.constant 0.353553385 : f32
    %198 = vector.broadcast %cst_155 : f32 to vector<8x16xf32>
    %199 = arith.mulf %197, %198 : vector<8x16xf32>
    %cst_156 = arith.constant -1.000000e+09 : f32
    %200 = vector.broadcast %cst_156 : f32 to vector<8x16xf32>
    %201 = arith.mulf %7, %200 : vector<8x16xf32>
    %202 = arith.addf %199, %201 : vector<8x16xf32>
    %cst_157 = arith.constant dense<0xFF800000> : vector<8xf32>
    %203 = vector.multi_reduction <maximumf>, %202, %cst_157 [1] : vector<8x16xf32> to vector<8xf32>
    %204 = vector.shape_cast %203 : vector<8xf32> to vector<8x1xf32>
    %205 = vector.broadcast %204 : vector<8x1xf32> to vector<8x16xf32>
    %206 = arith.subf %202, %205 : vector<8x16xf32>
    %207 = math.exp %206 : vector<8x16xf32>
    %cst_158 = arith.constant dense<0.000000e+00> : vector<8xf32>
    %208 = vector.multi_reduction <add>, %207, %cst_158 [1] : vector<8x16xf32> to vector<8xf32>
    %209 = vector.shape_cast %208 : vector<8xf32> to vector<8x1xf32>
    %210 = vector.broadcast %209 : vector<8x1xf32> to vector<8x16xf32>
    %211 = arith.divf %207, %210 : vector<8x16xf32>
    %212 = arith.truncf %211 : vector<8x16xf32> to vector<8x16xbf16>
    %213 = arith.truncf %194 : vector<16x8xf32> to vector<16x8xbf16>
    %cst_159 = arith.constant dense<0.000000e+00> : vector<8x8xf32>
    %214 = tpu.matmul %212, %213, %cst_159 {dimension_numbers = #tpu.dot_dimension_numbers<[1], [0], [0], [1], [0, 0, 1, 1], [], []>} : vector<8x16xbf16>, vector<16x8xbf16>, vector<8x8xf32> -> vector<8x8xf32>
    %c0_160 = arith.constant 0 : index
    %c0_161 = arith.constant 0 : index
    %c0_162 = arith.constant 0 : index
    %c0_163 = arith.constant 0 : index
    %215 = vector.load %arg10[%c0_160, %c0_161, %c0_162, %c0_163] : memref<2x4x8x32xbf16, #tpu.memory_space<vmem>>, vector<1x1x8x32xbf16>
    %216 = vector.shape_cast %215 : vector<1x1x8x32xbf16> to vector<8x32xbf16>
    %217 = arith.truncf %214 : vector<8x8xf32> to vector<8x8xbf16>
    %cst_164 = arith.constant dense<0.000000e+00> : vector<8x32xf32>
    %218 = tpu.matmul %217, %216, %cst_164 {dimension_numbers = #tpu.dot_dimension_numbers<[1], [0], [0], [1], [0, 0, 1, 1], [], []>} : vector<8x8xbf16>, vector<8x32xbf16>, vector<8x32xf32> -> vector<8x32xf32>
    %219 = arith.addf %184, %218 : vector<8x32xf32>
    %c0_165 = arith.constant 0 : index
    %c0_166 = arith.constant 0 : index
    %c1_167 = arith.constant 1 : index
    %c0_168 = arith.constant 0 : index
    %c0_169 = arith.constant 0 : index
    %220 = vector.load %arg9[%c0_165, %c0_166, %c1_167, %c0_168, %c0_169] : memref<2x3x4x32x8xbf16, #tpu.memory_space<vmem>>, vector<1x1x1x32x8xbf16>
    %221 = vector.shape_cast %220 : vector<1x1x1x32x8xbf16> to vector<32x8xbf16>
    %222 = arith.truncf %183 : vector<8x32xf32> to vector<8x32xbf16>
    %cst_170 = arith.constant dense<0.000000e+00> : vector<8x8xf32>
    %223 = tpu.matmul %222, %221, %cst_170 {dimension_numbers = #tpu.dot_dimension_numbers<[1], [0], [0], [1], [0, 0, 1, 1], [], []>} : vector<8x32xbf16>, vector<32x8xbf16>, vector<8x8xf32> -> vector<8x8xf32>
    %c0_171 = arith.constant 0 : index
    %c1_172 = arith.constant 1 : index
    %c1_173 = arith.constant 1 : index
    %c0_174 = arith.constant 0 : index
    %c0_175 = arith.constant 0 : index
    %224 = vector.load %arg9[%c0_171, %c1_172, %c1_173, %c0_174, %c0_175] : memref<2x3x4x32x8xbf16, #tpu.memory_space<vmem>>, vector<1x1x1x32x8xbf16>
    %225 = vector.shape_cast %224 : vector<1x1x1x32x8xbf16> to vector<32x8xbf16>
    %cst_176 = arith.constant dense<0.000000e+00> : vector<16x8xf32>
    %226 = tpu.matmul %3, %225, %cst_176 {dimension_numbers = #tpu.dot_dimension_numbers<[1], [0], [0], [1], [0, 0, 1, 1], [], []>} : vector<16x32xbf16>, vector<32x8xbf16>, vector<16x8xf32> -> vector<16x8xf32>
    %c0_177 = arith.constant 0 : index
    %c2_178 = arith.constant 2 : index
    %c1_179 = arith.constant 1 : index
    %c0_180 = arith.constant 0 : index
    %c0_181 = arith.constant 0 : index
    %227 = vector.load %arg9[%c0_177, %c2_178, %c1_179, %c0_180, %c0_181] : memref<2x3x4x32x8xbf16, #tpu.memory_space<vmem>>, vector<1x1x1x32x8xbf16>
    %228 = vector.shape_cast %227 : vector<1x1x1x32x8xbf16> to vector<32x8xbf16>
    %cst_182 = arith.constant dense<0.000000e+00> : vector<16x8xf32>
    %229 = tpu.matmul %3, %228, %cst_182 {dimension_numbers = #tpu.dot_dimension_numbers<[1], [0], [0], [1], [0, 0, 1, 1], [], []>} : vector<16x32xbf16>, vector<32x8xbf16>, vector<16x8xf32> -> vector<16x8xf32>
    %230 = arith.truncf %223 : vector<8x8xf32> to vector<8x8xbf16>
    %231 = arith.truncf %226 : vector<16x8xf32> to vector<16x8xbf16>
    %cst_183 = arith.constant dense<0.000000e+00> : vector<8x16xf32>
    %232 = tpu.matmul %230, %231, %cst_183 {dimension_numbers = #tpu.dot_dimension_numbers<[1], [1], [0], [0], [0, 0, 1, 0], [], []>} : vector<8x8xbf16>, vector<16x8xbf16>, vector<8x16xf32> -> vector<8x16xf32>
    %cst_184 = arith.constant 0.353553385 : f32
    %233 = vector.broadcast %cst_184 : f32 to vector<8x16xf32>
    %234 = arith.mulf %232, %233 : vector<8x16xf32>
    %cst_185 = arith.constant -1.000000e+09 : f32
    %235 = vector.broadcast %cst_185 : f32 to vector<8x16xf32>
    %236 = arith.mulf %7, %235 : vector<8x16xf32>
    %237 = arith.addf %234, %236 : vector<8x16xf32>
    %cst_186 = arith.constant dense<0xFF800000> : vector<8xf32>
    %238 = vector.multi_reduction <maximumf>, %237, %cst_186 [1] : vector<8x16xf32> to vector<8xf32>
    %239 = vector.shape_cast %238 : vector<8xf32> to vector<8x1xf32>
    %240 = vector.broadcast %239 : vector<8x1xf32> to vector<8x16xf32>
    %241 = arith.subf %237, %240 : vector<8x16xf32>
    %242 = math.exp %241 : vector<8x16xf32>
    %cst_187 = arith.constant dense<0.000000e+00> : vector<8xf32>
    %243 = vector.multi_reduction <add>, %242, %cst_187 [1] : vector<8x16xf32> to vector<8xf32>
    %244 = vector.shape_cast %243 : vector<8xf32> to vector<8x1xf32>
    %245 = vector.broadcast %244 : vector<8x1xf32> to vector<8x16xf32>
    %246 = arith.divf %242, %245 : vector<8x16xf32>
    %247 = arith.truncf %246 : vector<8x16xf32> to vector<8x16xbf16>
    %248 = arith.truncf %229 : vector<16x8xf32> to vector<16x8xbf16>
    %cst_188 = arith.constant dense<0.000000e+00> : vector<8x8xf32>
    %249 = tpu.matmul %247, %248, %cst_188 {dimension_numbers = #tpu.dot_dimension_numbers<[1], [0], [0], [1], [0, 0, 1, 1], [], []>} : vector<8x16xbf16>, vector<16x8xbf16>, vector<8x8xf32> -> vector<8x8xf32>
    %c0_189 = arith.constant 0 : index
    %c1_190 = arith.constant 1 : index
    %c0_191 = arith.constant 0 : index
    %c0_192 = arith.constant 0 : index
    %250 = vector.load %arg10[%c0_189, %c1_190, %c0_191, %c0_192] : memref<2x4x8x32xbf16, #tpu.memory_space<vmem>>, vector<1x1x8x32xbf16>
    %251 = vector.shape_cast %250 : vector<1x1x8x32xbf16> to vector<8x32xbf16>
    %252 = arith.truncf %249 : vector<8x8xf32> to vector<8x8xbf16>
    %cst_193 = arith.constant dense<0.000000e+00> : vector<8x32xf32>
    %253 = tpu.matmul %252, %251, %cst_193 {dimension_numbers = #tpu.dot_dimension_numbers<[1], [0], [0], [1], [0, 0, 1, 1], [], []>} : vector<8x8xbf16>, vector<8x32xbf16>, vector<8x32xf32> -> vector<8x32xf32>
    %254 = arith.addf %219, %253 : vector<8x32xf32>
    %c0_194 = arith.constant 0 : index
    %c0_195 = arith.constant 0 : index
    %c2_196 = arith.constant 2 : index
    %c0_197 = arith.constant 0 : index
    %c0_198 = arith.constant 0 : index
    %255 = vector.load %arg9[%c0_194, %c0_195, %c2_196, %c0_197, %c0_198] : memref<2x3x4x32x8xbf16, #tpu.memory_space<vmem>>, vector<1x1x1x32x8xbf16>
    %256 = vector.shape_cast %255 : vector<1x1x1x32x8xbf16> to vector<32x8xbf16>
    %257 = arith.truncf %183 : vector<8x32xf32> to vector<8x32xbf16>
    %cst_199 = arith.constant dense<0.000000e+00> : vector<8x8xf32>
    %258 = tpu.matmul %257, %256, %cst_199 {dimension_numbers = #tpu.dot_dimension_numbers<[1], [0], [0], [1], [0, 0, 1, 1], [], []>} : vector<8x32xbf16>, vector<32x8xbf16>, vector<8x8xf32> -> vector<8x8xf32>
    %c0_200 = arith.constant 0 : index
    %c1_201 = arith.constant 1 : index
    %c2_202 = arith.constant 2 : index
    %c0_203 = arith.constant 0 : index
    %c0_204 = arith.constant 0 : index
    %259 = vector.load %arg9[%c0_200, %c1_201, %c2_202, %c0_203, %c0_204] : memref<2x3x4x32x8xbf16, #tpu.memory_space<vmem>>, vector<1x1x1x32x8xbf16>
    %260 = vector.shape_cast %259 : vector<1x1x1x32x8xbf16> to vector<32x8xbf16>
    %cst_205 = arith.constant dense<0.000000e+00> : vector<16x8xf32>
    %261 = tpu.matmul %3, %260, %cst_205 {dimension_numbers = #tpu.dot_dimension_numbers<[1], [0], [0], [1], [0, 0, 1, 1], [], []>} : vector<16x32xbf16>, vector<32x8xbf16>, vector<16x8xf32> -> vector<16x8xf32>
    %c0_206 = arith.constant 0 : index
    %c2_207 = arith.constant 2 : index
    %c2_208 = arith.constant 2 : index
    %c0_209 = arith.constant 0 : index
    %c0_210 = arith.constant 0 : index
    %262 = vector.load %arg9[%c0_206, %c2_207, %c2_208, %c0_209, %c0_210] : memref<2x3x4x32x8xbf16, #tpu.memory_space<vmem>>, vector<1x1x1x32x8xbf16>
    %263 = vector.shape_cast %262 : vector<1x1x1x32x8xbf16> to vector<32x8xbf16>
    %cst_211 = arith.constant dense<0.000000e+00> : vector<16x8xf32>
    %264 = tpu.matmul %3, %263, %cst_211 {dimension_numbers = #tpu.dot_dimension_numbers<[1], [0], [0], [1], [0, 0, 1, 1], [], []>} : vector<16x32xbf16>, vector<32x8xbf16>, vector<16x8xf32> -> vector<16x8xf32>
    %265 = arith.truncf %258 : vector<8x8xf32> to vector<8x8xbf16>
    %266 = arith.truncf %261 : vector<16x8xf32> to vector<16x8xbf16>
    %cst_212 = arith.constant dense<0.000000e+00> : vector<8x16xf32>
    %267 = tpu.matmul %265, %266, %cst_212 {dimension_numbers = #tpu.dot_dimension_numbers<[1], [1], [0], [0], [0, 0, 1, 0], [], []>} : vector<8x8xbf16>, vector<16x8xbf16>, vector<8x16xf32> -> vector<8x16xf32>
    %cst_213 = arith.constant 0.353553385 : f32
    %268 = vector.broadcast %cst_213 : f32 to vector<8x16xf32>
    %269 = arith.mulf %267, %268 : vector<8x16xf32>
    %cst_214 = arith.constant -1.000000e+09 : f32
    %270 = vector.broadcast %cst_214 : f32 to vector<8x16xf32>
    %271 = arith.mulf %7, %270 : vector<8x16xf32>
    %272 = arith.addf %269, %271 : vector<8x16xf32>
    %cst_215 = arith.constant dense<0xFF800000> : vector<8xf32>
    %273 = vector.multi_reduction <maximumf>, %272, %cst_215 [1] : vector<8x16xf32> to vector<8xf32>
    %274 = vector.shape_cast %273 : vector<8xf32> to vector<8x1xf32>
    %275 = vector.broadcast %274 : vector<8x1xf32> to vector<8x16xf32>
    %276 = arith.subf %272, %275 : vector<8x16xf32>
    %277 = math.exp %276 : vector<8x16xf32>
    %cst_216 = arith.constant dense<0.000000e+00> : vector<8xf32>
    %278 = vector.multi_reduction <add>, %277, %cst_216 [1] : vector<8x16xf32> to vector<8xf32>
    %279 = vector.shape_cast %278 : vector<8xf32> to vector<8x1xf32>
    %280 = vector.broadcast %279 : vector<8x1xf32> to vector<8x16xf32>
    %281 = arith.divf %277, %280 : vector<8x16xf32>
    %282 = arith.truncf %281 : vector<8x16xf32> to vector<8x16xbf16>
    %283 = arith.truncf %264 : vector<16x8xf32> to vector<16x8xbf16>
    %cst_217 = arith.constant dense<0.000000e+00> : vector<8x8xf32>
    %284 = tpu.matmul %282, %283, %cst_217 {dimension_numbers = #tpu.dot_dimension_numbers<[1], [0], [0], [1], [0, 0, 1, 1], [], []>} : vector<8x16xbf16>, vector<16x8xbf16>, vector<8x8xf32> -> vector<8x8xf32>
    %c0_218 = arith.constant 0 : index
    %c2_219 = arith.constant 2 : index
    %c0_220 = arith.constant 0 : index
    %c0_221 = arith.constant 0 : index
    %285 = vector.load %arg10[%c0_218, %c2_219, %c0_220, %c0_221] : memref<2x4x8x32xbf16, #tpu.memory_space<vmem>>, vector<1x1x8x32xbf16>
    %286 = vector.shape_cast %285 : vector<1x1x8x32xbf16> to vector<8x32xbf16>
    %287 = arith.truncf %284 : vector<8x8xf32> to vector<8x8xbf16>
    %cst_222 = arith.constant dense<0.000000e+00> : vector<8x32xf32>
    %288 = tpu.matmul %287, %286, %cst_222 {dimension_numbers = #tpu.dot_dimension_numbers<[1], [0], [0], [1], [0, 0, 1, 1], [], []>} : vector<8x8xbf16>, vector<8x32xbf16>, vector<8x32xf32> -> vector<8x32xf32>
    %289 = arith.addf %254, %288 : vector<8x32xf32>
    %c0_223 = arith.constant 0 : index
    %c0_224 = arith.constant 0 : index
    %c3_225 = arith.constant 3 : index
    %c0_226 = arith.constant 0 : index
    %c0_227 = arith.constant 0 : index
    %290 = vector.load %arg9[%c0_223, %c0_224, %c3_225, %c0_226, %c0_227] : memref<2x3x4x32x8xbf16, #tpu.memory_space<vmem>>, vector<1x1x1x32x8xbf16>
    %291 = vector.shape_cast %290 : vector<1x1x1x32x8xbf16> to vector<32x8xbf16>
    %292 = arith.truncf %183 : vector<8x32xf32> to vector<8x32xbf16>
    %cst_228 = arith.constant dense<0.000000e+00> : vector<8x8xf32>
    %293 = tpu.matmul %292, %291, %cst_228 {dimension_numbers = #tpu.dot_dimension_numbers<[1], [0], [0], [1], [0, 0, 1, 1], [], []>} : vector<8x32xbf16>, vector<32x8xbf16>, vector<8x8xf32> -> vector<8x8xf32>
    %c0_229 = arith.constant 0 : index
    %c1_230 = arith.constant 1 : index
    %c3_231 = arith.constant 3 : index
    %c0_232 = arith.constant 0 : index
    %c0_233 = arith.constant 0 : index
    %294 = vector.load %arg9[%c0_229, %c1_230, %c3_231, %c0_232, %c0_233] : memref<2x3x4x32x8xbf16, #tpu.memory_space<vmem>>, vector<1x1x1x32x8xbf16>
    %295 = vector.shape_cast %294 : vector<1x1x1x32x8xbf16> to vector<32x8xbf16>
    %cst_234 = arith.constant dense<0.000000e+00> : vector<16x8xf32>
    %296 = tpu.matmul %3, %295, %cst_234 {dimension_numbers = #tpu.dot_dimension_numbers<[1], [0], [0], [1], [0, 0, 1, 1], [], []>} : vector<16x32xbf16>, vector<32x8xbf16>, vector<16x8xf32> -> vector<16x8xf32>
    %c0_235 = arith.constant 0 : index
    %c2_236 = arith.constant 2 : index
    %c3_237 = arith.constant 3 : index
    %c0_238 = arith.constant 0 : index
    %c0_239 = arith.constant 0 : index
    %297 = vector.load %arg9[%c0_235, %c2_236, %c3_237, %c0_238, %c0_239] : memref<2x3x4x32x8xbf16, #tpu.memory_space<vmem>>, vector<1x1x1x32x8xbf16>
    %298 = vector.shape_cast %297 : vector<1x1x1x32x8xbf16> to vector<32x8xbf16>
    %cst_240 = arith.constant dense<0.000000e+00> : vector<16x8xf32>
    %299 = tpu.matmul %3, %298, %cst_240 {dimension_numbers = #tpu.dot_dimension_numbers<[1], [0], [0], [1], [0, 0, 1, 1], [], []>} : vector<16x32xbf16>, vector<32x8xbf16>, vector<16x8xf32> -> vector<16x8xf32>
    %300 = arith.truncf %293 : vector<8x8xf32> to vector<8x8xbf16>
    %301 = arith.truncf %296 : vector<16x8xf32> to vector<16x8xbf16>
    %cst_241 = arith.constant dense<0.000000e+00> : vector<8x16xf32>
    %302 = tpu.matmul %300, %301, %cst_241 {dimension_numbers = #tpu.dot_dimension_numbers<[1], [1], [0], [0], [0, 0, 1, 0], [], []>} : vector<8x8xbf16>, vector<16x8xbf16>, vector<8x16xf32> -> vector<8x16xf32>
    %cst_242 = arith.constant 0.353553385 : f32
    %303 = vector.broadcast %cst_242 : f32 to vector<8x16xf32>
    %304 = arith.mulf %302, %303 : vector<8x16xf32>
    %cst_243 = arith.constant -1.000000e+09 : f32
    %305 = vector.broadcast %cst_243 : f32 to vector<8x16xf32>
    %306 = arith.mulf %7, %305 : vector<8x16xf32>
    %307 = arith.addf %304, %306 : vector<8x16xf32>
    %cst_244 = arith.constant dense<0xFF800000> : vector<8xf32>
    %308 = vector.multi_reduction <maximumf>, %307, %cst_244 [1] : vector<8x16xf32> to vector<8xf32>
    %309 = vector.shape_cast %308 : vector<8xf32> to vector<8x1xf32>
    %310 = vector.broadcast %309 : vector<8x1xf32> to vector<8x16xf32>
    %311 = arith.subf %307, %310 : vector<8x16xf32>
    %312 = math.exp %311 : vector<8x16xf32>
    %cst_245 = arith.constant dense<0.000000e+00> : vector<8xf32>
    %313 = vector.multi_reduction <add>, %312, %cst_245 [1] : vector<8x16xf32> to vector<8xf32>
    %314 = vector.shape_cast %313 : vector<8xf32> to vector<8x1xf32>
    %315 = vector.broadcast %314 : vector<8x1xf32> to vector<8x16xf32>
    %316 = arith.divf %312, %315 : vector<8x16xf32>
    %317 = arith.truncf %316 : vector<8x16xf32> to vector<8x16xbf16>
    %318 = arith.truncf %299 : vector<16x8xf32> to vector<16x8xbf16>
    %cst_246 = arith.constant dense<0.000000e+00> : vector<8x8xf32>
    %319 = tpu.matmul %317, %318, %cst_246 {dimension_numbers = #tpu.dot_dimension_numbers<[1], [0], [0], [1], [0, 0, 1, 1], [], []>} : vector<8x16xbf16>, vector<16x8xbf16>, vector<8x8xf32> -> vector<8x8xf32>
    %c0_247 = arith.constant 0 : index
    %c3_248 = arith.constant 3 : index
    %c0_249 = arith.constant 0 : index
    %c0_250 = arith.constant 0 : index
    %320 = vector.load %arg10[%c0_247, %c3_248, %c0_249, %c0_250] : memref<2x4x8x32xbf16, #tpu.memory_space<vmem>>, vector<1x1x8x32xbf16>
    %321 = vector.shape_cast %320 : vector<1x1x8x32xbf16> to vector<8x32xbf16>
    %322 = arith.truncf %319 : vector<8x8xf32> to vector<8x8xbf16>
    %cst_251 = arith.constant dense<0.000000e+00> : vector<8x32xf32>
    %323 = tpu.matmul %322, %321, %cst_251 {dimension_numbers = #tpu.dot_dimension_numbers<[1], [0], [0], [1], [0, 0, 1, 1], [], []>} : vector<8x8xbf16>, vector<8x32xbf16>, vector<8x32xf32> -> vector<8x32xf32>
    %324 = arith.addf %289, %323 : vector<8x32xf32>
    %325 = arith.addf %324, %183 : vector<8x32xf32>
    %c0_252 = arith.constant 0 : index
    %c0_253 = arith.constant 0 : index
    %c0_254 = arith.constant 0 : index
    %326 = vector.load %arg11[%c0_252, %c0_253, %c0_254] : memref<2x1x32xf32, #tpu.memory_space<vmem>>, vector<1x1x32xf32>
    %327 = vector.shape_cast %326 : vector<1x1x32xf32> to vector<1x32xf32>
    %c0_255 = arith.constant 0 : index
    %c0_256 = arith.constant 0 : index
    %c0_257 = arith.constant 0 : index
    %328 = vector.load %arg12[%c0_255, %c0_256, %c0_257] : memref<2x1x32xf32, #tpu.memory_space<vmem>>, vector<1x1x32xf32>
    %329 = vector.shape_cast %328 : vector<1x1x32xf32> to vector<1x32xf32>
    %cst_258 = arith.constant dense<0.000000e+00> : vector<8xf32>
    %330 = vector.multi_reduction <add>, %325, %cst_258 [1] : vector<8x32xf32> to vector<8xf32>
    %331 = vector.shape_cast %330 : vector<8xf32> to vector<8x1xf32>
    %cst_259 = arith.constant 3.200000e+01 : f32
    %332 = vector.broadcast %cst_259 : f32 to vector<8x1xf32>
    %333 = arith.divf %331, %332 : vector<8x1xf32>
    %334 = vector.broadcast %333 : vector<8x1xf32> to vector<8x32xf32>
    %335 = arith.subf %325, %334 : vector<8x32xf32>
    %336 = arith.mulf %335, %335 : vector<8x32xf32>
    %cst_260 = arith.constant dense<0.000000e+00> : vector<8xf32>
    %337 = vector.multi_reduction <add>, %336, %cst_260 [1] : vector<8x32xf32> to vector<8xf32>
    %338 = vector.shape_cast %337 : vector<8xf32> to vector<8x1xf32>
    %cst_261 = arith.constant 3.200000e+01 : f32
    %339 = vector.broadcast %cst_261 : f32 to vector<8x1xf32>
    %340 = arith.divf %338, %339 : vector<8x1xf32>
    %341 = vector.broadcast %333 : vector<8x1xf32> to vector<8x32xf32>
    %342 = arith.subf %325, %341 : vector<8x32xf32>
    %cst_262 = arith.constant 9.99999974E-6 : f32
    %343 = vector.broadcast %cst_262 : f32 to vector<8x1xf32>
    %344 = arith.addf %340, %343 : vector<8x1xf32>
    %345 = math.rsqrt %344 : vector<8x1xf32>
    %346 = vector.broadcast %345 : vector<8x1xf32> to vector<8x32xf32>
    %347 = arith.mulf %342, %346 : vector<8x32xf32>
    %348 = vector.broadcast %327 : vector<1x32xf32> to vector<8x32xf32>
    %349 = arith.mulf %347, %348 : vector<8x32xf32>
    %350 = vector.broadcast %329 : vector<1x32xf32> to vector<8x32xf32>
    %351 = arith.addf %349, %350 : vector<8x32xf32>
    %c0_263 = arith.constant 0 : index
    %c0_264 = arith.constant 0 : index
    %c0_265 = arith.constant 0 : index
    %352 = vector.load %arg13[%c0_263, %c0_264, %c0_265] : memref<2x32x64xbf16, #tpu.memory_space<vmem>>, vector<1x32x64xbf16>
    %353 = vector.shape_cast %352 : vector<1x32x64xbf16> to vector<32x64xbf16>
    %354 = arith.truncf %351 : vector<8x32xf32> to vector<8x32xbf16>
    %cst_266 = arith.constant dense<0.000000e+00> : vector<8x64xf32>
    %355 = tpu.matmul %354, %353, %cst_266 {dimension_numbers = #tpu.dot_dimension_numbers<[1], [0], [0], [1], [0, 0, 1, 1], [], []>} : vector<8x32xbf16>, vector<32x64xbf16>, vector<8x64xf32> -> vector<8x64xf32>
    %c0_267 = arith.constant 0 : index
    %c0_268 = arith.constant 0 : index
    %c0_269 = arith.constant 0 : index
    %356 = vector.load %arg14[%c0_267, %c0_268, %c0_269] : memref<2x1x64xf32, #tpu.memory_space<vmem>>, vector<1x1x64xf32>
    %357 = vector.shape_cast %356 : vector<1x1x64xf32> to vector<1x64xf32>
    %358 = vector.broadcast %357 : vector<1x64xf32> to vector<8x64xf32>
    %359 = arith.addf %355, %358 : vector<8x64xf32>
    %cst_270 = arith.constant 0.000000e+00 : f32
    %360 = vector.broadcast %cst_270 : f32 to vector<8x64xf32>
    %361 = arith.maximumf %359, %360 : vector<8x64xf32>
    %c0_271 = arith.constant 0 : index
    %c0_272 = arith.constant 0 : index
    %c0_273 = arith.constant 0 : index
    %362 = vector.load %arg15[%c0_271, %c0_272, %c0_273] : memref<2x64x32xbf16, #tpu.memory_space<vmem>>, vector<1x64x32xbf16>
    %363 = vector.shape_cast %362 : vector<1x64x32xbf16> to vector<64x32xbf16>
    %364 = arith.truncf %361 : vector<8x64xf32> to vector<8x64xbf16>
    %cst_274 = arith.constant dense<0.000000e+00> : vector<8x32xf32>
    %365 = tpu.matmul %364, %363, %cst_274 {dimension_numbers = #tpu.dot_dimension_numbers<[1], [0], [0], [1], [0, 0, 1, 1], [], []>} : vector<8x64xbf16>, vector<64x32xbf16>, vector<8x32xf32> -> vector<8x32xf32>
    %c0_275 = arith.constant 0 : index
    %c0_276 = arith.constant 0 : index
    %c0_277 = arith.constant 0 : index
    %366 = vector.load %arg16[%c0_275, %c0_276, %c0_277] : memref<2x1x32xf32, #tpu.memory_space<vmem>>, vector<1x1x32xf32>
    %367 = vector.shape_cast %366 : vector<1x1x32xf32> to vector<1x32xf32>
    %368 = vector.broadcast %367 : vector<1x32xf32> to vector<8x32xf32>
    %369 = arith.addf %365, %368 : vector<8x32xf32>
    %370 = arith.addf %369, %351 : vector<8x32xf32>
    %c0_278 = arith.constant 0 : index
    %c0_279 = arith.constant 0 : index
    %c0_280 = arith.constant 0 : index
    %371 = vector.load %arg17[%c0_278, %c0_279, %c0_280] : memref<2x1x32xf32, #tpu.memory_space<vmem>>, vector<1x1x32xf32>
    %372 = vector.shape_cast %371 : vector<1x1x32xf32> to vector<1x32xf32>
    %c0_281 = arith.constant 0 : index
    %c0_282 = arith.constant 0 : index
    %c0_283 = arith.constant 0 : index
    %373 = vector.load %arg18[%c0_281, %c0_282, %c0_283] : memref<2x1x32xf32, #tpu.memory_space<vmem>>, vector<1x1x32xf32>
    %374 = vector.shape_cast %373 : vector<1x1x32xf32> to vector<1x32xf32>
    %cst_284 = arith.constant dense<0.000000e+00> : vector<8xf32>
    %375 = vector.multi_reduction <add>, %370, %cst_284 [1] : vector<8x32xf32> to vector<8xf32>
    %376 = vector.shape_cast %375 : vector<8xf32> to vector<8x1xf32>
    %cst_285 = arith.constant 3.200000e+01 : f32
    %377 = vector.broadcast %cst_285 : f32 to vector<8x1xf32>
    %378 = arith.divf %376, %377 : vector<8x1xf32>
    %379 = vector.broadcast %378 : vector<8x1xf32> to vector<8x32xf32>
    %380 = arith.subf %370, %379 : vector<8x32xf32>
    %381 = arith.mulf %380, %380 : vector<8x32xf32>
    %cst_286 = arith.constant dense<0.000000e+00> : vector<8xf32>
    %382 = vector.multi_reduction <add>, %381, %cst_286 [1] : vector<8x32xf32> to vector<8xf32>
    %383 = vector.shape_cast %382 : vector<8xf32> to vector<8x1xf32>
    %cst_287 = arith.constant 3.200000e+01 : f32
    %384 = vector.broadcast %cst_287 : f32 to vector<8x1xf32>
    %385 = arith.divf %383, %384 : vector<8x1xf32>
    %386 = vector.broadcast %378 : vector<8x1xf32> to vector<8x32xf32>
    %387 = arith.subf %370, %386 : vector<8x32xf32>
    %cst_288 = arith.constant 9.99999974E-6 : f32
    %388 = vector.broadcast %cst_288 : f32 to vector<8x1xf32>
    %389 = arith.addf %385, %388 : vector<8x1xf32>
    %390 = math.rsqrt %389 : vector<8x1xf32>
    %391 = vector.broadcast %390 : vector<8x1xf32> to vector<8x32xf32>
    %392 = arith.mulf %387, %391 : vector<8x32xf32>
    %393 = vector.broadcast %372 : vector<1x32xf32> to vector<8x32xf32>
    %394 = arith.mulf %392, %393 : vector<8x32xf32>
    %395 = vector.broadcast %374 : vector<1x32xf32> to vector<8x32xf32>
    %396 = arith.addf %394, %395 : vector<8x32xf32>
    %cst_289 = arith.constant 0.000000e+00 : f32
    %397 = vector.broadcast %cst_289 : f32 to vector<8x32xf32>
    %c1_290 = arith.constant 1 : index
    %c0_291 = arith.constant 0 : index
    %c0_292 = arith.constant 0 : index
    %c0_293 = arith.constant 0 : index
    %c0_294 = arith.constant 0 : index
    %398 = vector.load %arg5[%c1_290, %c0_291, %c0_292, %c0_293, %c0_294] : memref<2x3x4x32x8xbf16, #tpu.memory_space<vmem>>, vector<1x1x1x32x8xbf16>
    %399 = vector.shape_cast %398 : vector<1x1x1x32x8xbf16> to vector<32x8xbf16>
    %400 = arith.truncf %396 : vector<8x32xf32> to vector<8x32xbf16>
    %cst_295 = arith.constant dense<0.000000e+00> : vector<8x8xf32>
    %401 = tpu.matmul %400, %399, %cst_295 {dimension_numbers = #tpu.dot_dimension_numbers<[1], [0], [0], [1], [0, 0, 1, 1], [], []>} : vector<8x32xbf16>, vector<32x8xbf16>, vector<8x8xf32> -> vector<8x8xf32>
    %c1_296 = arith.constant 1 : index
    %c1_297 = arith.constant 1 : index
    %c0_298 = arith.constant 0 : index
    %c0_299 = arith.constant 0 : index
    %c0_300 = arith.constant 0 : index
    %402 = vector.load %arg5[%c1_296, %c1_297, %c0_298, %c0_299, %c0_300] : memref<2x3x4x32x8xbf16, #tpu.memory_space<vmem>>, vector<1x1x1x32x8xbf16>
    %403 = vector.shape_cast %402 : vector<1x1x1x32x8xbf16> to vector<32x8xbf16>
    %404 = arith.truncf %396 : vector<8x32xf32> to vector<8x32xbf16>
    %cst_301 = arith.constant dense<0.000000e+00> : vector<8x8xf32>
    %405 = tpu.matmul %404, %403, %cst_301 {dimension_numbers = #tpu.dot_dimension_numbers<[1], [0], [0], [1], [0, 0, 1, 1], [], []>} : vector<8x32xbf16>, vector<32x8xbf16>, vector<8x8xf32> -> vector<8x8xf32>
    %c1_302 = arith.constant 1 : index
    %c2_303 = arith.constant 2 : index
    %c0_304 = arith.constant 0 : index
    %c0_305 = arith.constant 0 : index
    %c0_306 = arith.constant 0 : index
    %406 = vector.load %arg5[%c1_302, %c2_303, %c0_304, %c0_305, %c0_306] : memref<2x3x4x32x8xbf16, #tpu.memory_space<vmem>>, vector<1x1x1x32x8xbf16>
    %407 = vector.shape_cast %406 : vector<1x1x1x32x8xbf16> to vector<32x8xbf16>
    %408 = arith.truncf %396 : vector<8x32xf32> to vector<8x32xbf16>
    %cst_307 = arith.constant dense<0.000000e+00> : vector<8x8xf32>
    %409 = tpu.matmul %408, %407, %cst_307 {dimension_numbers = #tpu.dot_dimension_numbers<[1], [0], [0], [1], [0, 0, 1, 1], [], []>} : vector<8x32xbf16>, vector<32x8xbf16>, vector<8x8xf32> -> vector<8x8xf32>
    %410 = arith.truncf %401 : vector<8x8xf32> to vector<8x8xbf16>
    %411 = arith.truncf %405 : vector<8x8xf32> to vector<8x8xbf16>
    %cst_308 = arith.constant dense<0.000000e+00> : vector<8x8xf32>
    %412 = tpu.matmul %410, %411, %cst_308 {dimension_numbers = #tpu.dot_dimension_numbers<[1], [1], [0], [0], [0, 0, 1, 0], [], []>} : vector<8x8xbf16>, vector<8x8xbf16>, vector<8x8xf32> -> vector<8x8xf32>
    %cst_309 = arith.constant 0.353553385 : f32
    %413 = vector.broadcast %cst_309 : f32 to vector<8x8xf32>
    %414 = arith.mulf %412, %413 : vector<8x8xf32>
    %cst_310 = arith.constant -1.000000e+09 : f32
    %415 = vector.broadcast %cst_310 : f32 to vector<8x8xf32>
    %416 = arith.mulf %5, %415 : vector<8x8xf32>
    %417 = arith.addf %414, %416 : vector<8x8xf32>
    %cst_311 = arith.constant dense<0xFF800000> : vector<8xf32>
    %418 = vector.multi_reduction <maximumf>, %417, %cst_311 [1] : vector<8x8xf32> to vector<8xf32>
    %419 = vector.shape_cast %418 : vector<8xf32> to vector<8x1xf32>
    %420 = vector.broadcast %419 : vector<8x1xf32> to vector<8x8xf32>
    %421 = arith.subf %417, %420 : vector<8x8xf32>
    %422 = math.exp %421 : vector<8x8xf32>
    %cst_312 = arith.constant dense<0.000000e+00> : vector<8xf32>
    %423 = vector.multi_reduction <add>, %422, %cst_312 [1] : vector<8x8xf32> to vector<8xf32>
    %424 = vector.shape_cast %423 : vector<8xf32> to vector<8x1xf32>
    %425 = vector.broadcast %424 : vector<8x1xf32> to vector<8x8xf32>
    %426 = arith.divf %422, %425 : vector<8x8xf32>
    %427 = arith.truncf %426 : vector<8x8xf32> to vector<8x8xbf16>
    %428 = arith.truncf %409 : vector<8x8xf32> to vector<8x8xbf16>
    %cst_313 = arith.constant dense<0.000000e+00> : vector<8x8xf32>
    %429 = tpu.matmul %427, %428, %cst_313 {dimension_numbers = #tpu.dot_dimension_numbers<[1], [0], [0], [1], [0, 0, 1, 1], [], []>} : vector<8x8xbf16>, vector<8x8xbf16>, vector<8x8xf32> -> vector<8x8xf32>
    %c1_314 = arith.constant 1 : index
    %c0_315 = arith.constant 0 : index
    %c0_316 = arith.constant 0 : index
    %c0_317 = arith.constant 0 : index
    %430 = vector.load %arg6[%c1_314, %c0_315, %c0_316, %c0_317] : memref<2x4x8x32xbf16, #tpu.memory_space<vmem>>, vector<1x1x8x32xbf16>
    %431 = vector.shape_cast %430 : vector<1x1x8x32xbf16> to vector<8x32xbf16>
    %432 = arith.truncf %429 : vector<8x8xf32> to vector<8x8xbf16>
    %cst_318 = arith.constant dense<0.000000e+00> : vector<8x32xf32>
    %433 = tpu.matmul %432, %431, %cst_318 {dimension_numbers = #tpu.dot_dimension_numbers<[1], [0], [0], [1], [0, 0, 1, 1], [], []>} : vector<8x8xbf16>, vector<8x32xbf16>, vector<8x32xf32> -> vector<8x32xf32>
    %434 = arith.addf %397, %433 : vector<8x32xf32>
    %c1_319 = arith.constant 1 : index
    %c0_320 = arith.constant 0 : index
    %c1_321 = arith.constant 1 : index
    %c0_322 = arith.constant 0 : index
    %c0_323 = arith.constant 0 : index
    %435 = vector.load %arg5[%c1_319, %c0_320, %c1_321, %c0_322, %c0_323] : memref<2x3x4x32x8xbf16, #tpu.memory_space<vmem>>, vector<1x1x1x32x8xbf16>
    %436 = vector.shape_cast %435 : vector<1x1x1x32x8xbf16> to vector<32x8xbf16>
    %437 = arith.truncf %396 : vector<8x32xf32> to vector<8x32xbf16>
    %cst_324 = arith.constant dense<0.000000e+00> : vector<8x8xf32>
    %438 = tpu.matmul %437, %436, %cst_324 {dimension_numbers = #tpu.dot_dimension_numbers<[1], [0], [0], [1], [0, 0, 1, 1], [], []>} : vector<8x32xbf16>, vector<32x8xbf16>, vector<8x8xf32> -> vector<8x8xf32>
    %c1_325 = arith.constant 1 : index
    %c1_326 = arith.constant 1 : index
    %c1_327 = arith.constant 1 : index
    %c0_328 = arith.constant 0 : index
    %c0_329 = arith.constant 0 : index
    %439 = vector.load %arg5[%c1_325, %c1_326, %c1_327, %c0_328, %c0_329] : memref<2x3x4x32x8xbf16, #tpu.memory_space<vmem>>, vector<1x1x1x32x8xbf16>
    %440 = vector.shape_cast %439 : vector<1x1x1x32x8xbf16> to vector<32x8xbf16>
    %441 = arith.truncf %396 : vector<8x32xf32> to vector<8x32xbf16>
    %cst_330 = arith.constant dense<0.000000e+00> : vector<8x8xf32>
    %442 = tpu.matmul %441, %440, %cst_330 {dimension_numbers = #tpu.dot_dimension_numbers<[1], [0], [0], [1], [0, 0, 1, 1], [], []>} : vector<8x32xbf16>, vector<32x8xbf16>, vector<8x8xf32> -> vector<8x8xf32>
    %c1_331 = arith.constant 1 : index
    %c2_332 = arith.constant 2 : index
    %c1_333 = arith.constant 1 : index
    %c0_334 = arith.constant 0 : index
    %c0_335 = arith.constant 0 : index
    %443 = vector.load %arg5[%c1_331, %c2_332, %c1_333, %c0_334, %c0_335] : memref<2x3x4x32x8xbf16, #tpu.memory_space<vmem>>, vector<1x1x1x32x8xbf16>
    %444 = vector.shape_cast %443 : vector<1x1x1x32x8xbf16> to vector<32x8xbf16>
    %445 = arith.truncf %396 : vector<8x32xf32> to vector<8x32xbf16>
    %cst_336 = arith.constant dense<0.000000e+00> : vector<8x8xf32>
    %446 = tpu.matmul %445, %444, %cst_336 {dimension_numbers = #tpu.dot_dimension_numbers<[1], [0], [0], [1], [0, 0, 1, 1], [], []>} : vector<8x32xbf16>, vector<32x8xbf16>, vector<8x8xf32> -> vector<8x8xf32>
    %447 = arith.truncf %438 : vector<8x8xf32> to vector<8x8xbf16>
    %448 = arith.truncf %442 : vector<8x8xf32> to vector<8x8xbf16>
    %cst_337 = arith.constant dense<0.000000e+00> : vector<8x8xf32>
    %449 = tpu.matmul %447, %448, %cst_337 {dimension_numbers = #tpu.dot_dimension_numbers<[1], [1], [0], [0], [0, 0, 1, 0], [], []>} : vector<8x8xbf16>, vector<8x8xbf16>, vector<8x8xf32> -> vector<8x8xf32>
    %cst_338 = arith.constant 0.353553385 : f32
    %450 = vector.broadcast %cst_338 : f32 to vector<8x8xf32>
    %451 = arith.mulf %449, %450 : vector<8x8xf32>
    %cst_339 = arith.constant -1.000000e+09 : f32
    %452 = vector.broadcast %cst_339 : f32 to vector<8x8xf32>
    %453 = arith.mulf %5, %452 : vector<8x8xf32>
    %454 = arith.addf %451, %453 : vector<8x8xf32>
    %cst_340 = arith.constant dense<0xFF800000> : vector<8xf32>
    %455 = vector.multi_reduction <maximumf>, %454, %cst_340 [1] : vector<8x8xf32> to vector<8xf32>
    %456 = vector.shape_cast %455 : vector<8xf32> to vector<8x1xf32>
    %457 = vector.broadcast %456 : vector<8x1xf32> to vector<8x8xf32>
    %458 = arith.subf %454, %457 : vector<8x8xf32>
    %459 = math.exp %458 : vector<8x8xf32>
    %cst_341 = arith.constant dense<0.000000e+00> : vector<8xf32>
    %460 = vector.multi_reduction <add>, %459, %cst_341 [1] : vector<8x8xf32> to vector<8xf32>
    %461 = vector.shape_cast %460 : vector<8xf32> to vector<8x1xf32>
    %462 = vector.broadcast %461 : vector<8x1xf32> to vector<8x8xf32>
    %463 = arith.divf %459, %462 : vector<8x8xf32>
    %464 = arith.truncf %463 : vector<8x8xf32> to vector<8x8xbf16>
    %465 = arith.truncf %446 : vector<8x8xf32> to vector<8x8xbf16>
    %cst_342 = arith.constant dense<0.000000e+00> : vector<8x8xf32>
    %466 = tpu.matmul %464, %465, %cst_342 {dimension_numbers = #tpu.dot_dimension_numbers<[1], [0], [0], [1], [0, 0, 1, 1], [], []>} : vector<8x8xbf16>, vector<8x8xbf16>, vector<8x8xf32> -> vector<8x8xf32>
    %c1_343 = arith.constant 1 : index
    %c1_344 = arith.constant 1 : index
    %c0_345 = arith.constant 0 : index
    %c0_346 = arith.constant 0 : index
    %467 = vector.load %arg6[%c1_343, %c1_344, %c0_345, %c0_346] : memref<2x4x8x32xbf16, #tpu.memory_space<vmem>>, vector<1x1x8x32xbf16>
    %468 = vector.shape_cast %467 : vector<1x1x8x32xbf16> to vector<8x32xbf16>
    %469 = arith.truncf %466 : vector<8x8xf32> to vector<8x8xbf16>
    %cst_347 = arith.constant dense<0.000000e+00> : vector<8x32xf32>
    %470 = tpu.matmul %469, %468, %cst_347 {dimension_numbers = #tpu.dot_dimension_numbers<[1], [0], [0], [1], [0, 0, 1, 1], [], []>} : vector<8x8xbf16>, vector<8x32xbf16>, vector<8x32xf32> -> vector<8x32xf32>
    %471 = arith.addf %434, %470 : vector<8x32xf32>
    %c1_348 = arith.constant 1 : index
    %c0_349 = arith.constant 0 : index
    %c2_350 = arith.constant 2 : index
    %c0_351 = arith.constant 0 : index
    %c0_352 = arith.constant 0 : index
    %472 = vector.load %arg5[%c1_348, %c0_349, %c2_350, %c0_351, %c0_352] : memref<2x3x4x32x8xbf16, #tpu.memory_space<vmem>>, vector<1x1x1x32x8xbf16>
    %473 = vector.shape_cast %472 : vector<1x1x1x32x8xbf16> to vector<32x8xbf16>
    %474 = arith.truncf %396 : vector<8x32xf32> to vector<8x32xbf16>
    %cst_353 = arith.constant dense<0.000000e+00> : vector<8x8xf32>
    %475 = tpu.matmul %474, %473, %cst_353 {dimension_numbers = #tpu.dot_dimension_numbers<[1], [0], [0], [1], [0, 0, 1, 1], [], []>} : vector<8x32xbf16>, vector<32x8xbf16>, vector<8x8xf32> -> vector<8x8xf32>
    %c1_354 = arith.constant 1 : index
    %c1_355 = arith.constant 1 : index
    %c2_356 = arith.constant 2 : index
    %c0_357 = arith.constant 0 : index
    %c0_358 = arith.constant 0 : index
    %476 = vector.load %arg5[%c1_354, %c1_355, %c2_356, %c0_357, %c0_358] : memref<2x3x4x32x8xbf16, #tpu.memory_space<vmem>>, vector<1x1x1x32x8xbf16>
    %477 = vector.shape_cast %476 : vector<1x1x1x32x8xbf16> to vector<32x8xbf16>
    %478 = arith.truncf %396 : vector<8x32xf32> to vector<8x32xbf16>
    %cst_359 = arith.constant dense<0.000000e+00> : vector<8x8xf32>
    %479 = tpu.matmul %478, %477, %cst_359 {dimension_numbers = #tpu.dot_dimension_numbers<[1], [0], [0], [1], [0, 0, 1, 1], [], []>} : vector<8x32xbf16>, vector<32x8xbf16>, vector<8x8xf32> -> vector<8x8xf32>
    %c1_360 = arith.constant 1 : index
    %c2_361 = arith.constant 2 : index
    %c2_362 = arith.constant 2 : index
    %c0_363 = arith.constant 0 : index
    %c0_364 = arith.constant 0 : index
    %480 = vector.load %arg5[%c1_360, %c2_361, %c2_362, %c0_363, %c0_364] : memref<2x3x4x32x8xbf16, #tpu.memory_space<vmem>>, vector<1x1x1x32x8xbf16>
    %481 = vector.shape_cast %480 : vector<1x1x1x32x8xbf16> to vector<32x8xbf16>
    %482 = arith.truncf %396 : vector<8x32xf32> to vector<8x32xbf16>
    %cst_365 = arith.constant dense<0.000000e+00> : vector<8x8xf32>
    %483 = tpu.matmul %482, %481, %cst_365 {dimension_numbers = #tpu.dot_dimension_numbers<[1], [0], [0], [1], [0, 0, 1, 1], [], []>} : vector<8x32xbf16>, vector<32x8xbf16>, vector<8x8xf32> -> vector<8x8xf32>
    %484 = arith.truncf %475 : vector<8x8xf32> to vector<8x8xbf16>
    %485 = arith.truncf %479 : vector<8x8xf32> to vector<8x8xbf16>
    %cst_366 = arith.constant dense<0.000000e+00> : vector<8x8xf32>
    %486 = tpu.matmul %484, %485, %cst_366 {dimension_numbers = #tpu.dot_dimension_numbers<[1], [1], [0], [0], [0, 0, 1, 0], [], []>} : vector<8x8xbf16>, vector<8x8xbf16>, vector<8x8xf32> -> vector<8x8xf32>
    %cst_367 = arith.constant 0.353553385 : f32
    %487 = vector.broadcast %cst_367 : f32 to vector<8x8xf32>
    %488 = arith.mulf %486, %487 : vector<8x8xf32>
    %cst_368 = arith.constant -1.000000e+09 : f32
    %489 = vector.broadcast %cst_368 : f32 to vector<8x8xf32>
    %490 = arith.mulf %5, %489 : vector<8x8xf32>
    %491 = arith.addf %488, %490 : vector<8x8xf32>
    %cst_369 = arith.constant dense<0xFF800000> : vector<8xf32>
    %492 = vector.multi_reduction <maximumf>, %491, %cst_369 [1] : vector<8x8xf32> to vector<8xf32>
    %493 = vector.shape_cast %492 : vector<8xf32> to vector<8x1xf32>
    %494 = vector.broadcast %493 : vector<8x1xf32> to vector<8x8xf32>
    %495 = arith.subf %491, %494 : vector<8x8xf32>
    %496 = math.exp %495 : vector<8x8xf32>
    %cst_370 = arith.constant dense<0.000000e+00> : vector<8xf32>
    %497 = vector.multi_reduction <add>, %496, %cst_370 [1] : vector<8x8xf32> to vector<8xf32>
    %498 = vector.shape_cast %497 : vector<8xf32> to vector<8x1xf32>
    %499 = vector.broadcast %498 : vector<8x1xf32> to vector<8x8xf32>
    %500 = arith.divf %496, %499 : vector<8x8xf32>
    %501 = arith.truncf %500 : vector<8x8xf32> to vector<8x8xbf16>
    %502 = arith.truncf %483 : vector<8x8xf32> to vector<8x8xbf16>
    %cst_371 = arith.constant dense<0.000000e+00> : vector<8x8xf32>
    %503 = tpu.matmul %501, %502, %cst_371 {dimension_numbers = #tpu.dot_dimension_numbers<[1], [0], [0], [1], [0, 0, 1, 1], [], []>} : vector<8x8xbf16>, vector<8x8xbf16>, vector<8x8xf32> -> vector<8x8xf32>
    %c1_372 = arith.constant 1 : index
    %c2_373 = arith.constant 2 : index
    %c0_374 = arith.constant 0 : index
    %c0_375 = arith.constant 0 : index
    %504 = vector.load %arg6[%c1_372, %c2_373, %c0_374, %c0_375] : memref<2x4x8x32xbf16, #tpu.memory_space<vmem>>, vector<1x1x8x32xbf16>
    %505 = vector.shape_cast %504 : vector<1x1x8x32xbf16> to vector<8x32xbf16>
    %506 = arith.truncf %503 : vector<8x8xf32> to vector<8x8xbf16>
    %cst_376 = arith.constant dense<0.000000e+00> : vector<8x32xf32>
    %507 = tpu.matmul %506, %505, %cst_376 {dimension_numbers = #tpu.dot_dimension_numbers<[1], [0], [0], [1], [0, 0, 1, 1], [], []>} : vector<8x8xbf16>, vector<8x32xbf16>, vector<8x32xf32> -> vector<8x32xf32>
    %508 = arith.addf %471, %507 : vector<8x32xf32>
    %c1_377 = arith.constant 1 : index
    %c0_378 = arith.constant 0 : index
    %c3_379 = arith.constant 3 : index
    %c0_380 = arith.constant 0 : index
    %c0_381 = arith.constant 0 : index
    %509 = vector.load %arg5[%c1_377, %c0_378, %c3_379, %c0_380, %c0_381] : memref<2x3x4x32x8xbf16, #tpu.memory_space<vmem>>, vector<1x1x1x32x8xbf16>
    %510 = vector.shape_cast %509 : vector<1x1x1x32x8xbf16> to vector<32x8xbf16>
    %511 = arith.truncf %396 : vector<8x32xf32> to vector<8x32xbf16>
    %cst_382 = arith.constant dense<0.000000e+00> : vector<8x8xf32>
    %512 = tpu.matmul %511, %510, %cst_382 {dimension_numbers = #tpu.dot_dimension_numbers<[1], [0], [0], [1], [0, 0, 1, 1], [], []>} : vector<8x32xbf16>, vector<32x8xbf16>, vector<8x8xf32> -> vector<8x8xf32>
    %c1_383 = arith.constant 1 : index
    %c1_384 = arith.constant 1 : index
    %c3_385 = arith.constant 3 : index
    %c0_386 = arith.constant 0 : index
    %c0_387 = arith.constant 0 : index
    %513 = vector.load %arg5[%c1_383, %c1_384, %c3_385, %c0_386, %c0_387] : memref<2x3x4x32x8xbf16, #tpu.memory_space<vmem>>, vector<1x1x1x32x8xbf16>
    %514 = vector.shape_cast %513 : vector<1x1x1x32x8xbf16> to vector<32x8xbf16>
    %515 = arith.truncf %396 : vector<8x32xf32> to vector<8x32xbf16>
    %cst_388 = arith.constant dense<0.000000e+00> : vector<8x8xf32>
    %516 = tpu.matmul %515, %514, %cst_388 {dimension_numbers = #tpu.dot_dimension_numbers<[1], [0], [0], [1], [0, 0, 1, 1], [], []>} : vector<8x32xbf16>, vector<32x8xbf16>, vector<8x8xf32> -> vector<8x8xf32>
    %c1_389 = arith.constant 1 : index
    %c2_390 = arith.constant 2 : index
    %c3_391 = arith.constant 3 : index
    %c0_392 = arith.constant 0 : index
    %c0_393 = arith.constant 0 : index
    %517 = vector.load %arg5[%c1_389, %c2_390, %c3_391, %c0_392, %c0_393] : memref<2x3x4x32x8xbf16, #tpu.memory_space<vmem>>, vector<1x1x1x32x8xbf16>
    %518 = vector.shape_cast %517 : vector<1x1x1x32x8xbf16> to vector<32x8xbf16>
    %519 = arith.truncf %396 : vector<8x32xf32> to vector<8x32xbf16>
    %cst_394 = arith.constant dense<0.000000e+00> : vector<8x8xf32>
    %520 = tpu.matmul %519, %518, %cst_394 {dimension_numbers = #tpu.dot_dimension_numbers<[1], [0], [0], [1], [0, 0, 1, 1], [], []>} : vector<8x32xbf16>, vector<32x8xbf16>, vector<8x8xf32> -> vector<8x8xf32>
    %521 = arith.truncf %512 : vector<8x8xf32> to vector<8x8xbf16>
    %522 = arith.truncf %516 : vector<8x8xf32> to vector<8x8xbf16>
    %cst_395 = arith.constant dense<0.000000e+00> : vector<8x8xf32>
    %523 = tpu.matmul %521, %522, %cst_395 {dimension_numbers = #tpu.dot_dimension_numbers<[1], [1], [0], [0], [0, 0, 1, 0], [], []>} : vector<8x8xbf16>, vector<8x8xbf16>, vector<8x8xf32> -> vector<8x8xf32>
    %cst_396 = arith.constant 0.353553385 : f32
    %524 = vector.broadcast %cst_396 : f32 to vector<8x8xf32>
    %525 = arith.mulf %523, %524 : vector<8x8xf32>
    %cst_397 = arith.constant -1.000000e+09 : f32
    %526 = vector.broadcast %cst_397 : f32 to vector<8x8xf32>
    %527 = arith.mulf %5, %526 : vector<8x8xf32>
    %528 = arith.addf %525, %527 : vector<8x8xf32>
    %cst_398 = arith.constant dense<0xFF800000> : vector<8xf32>
    %529 = vector.multi_reduction <maximumf>, %528, %cst_398 [1] : vector<8x8xf32> to vector<8xf32>
    %530 = vector.shape_cast %529 : vector<8xf32> to vector<8x1xf32>
    %531 = vector.broadcast %530 : vector<8x1xf32> to vector<8x8xf32>
    %532 = arith.subf %528, %531 : vector<8x8xf32>
    %533 = math.exp %532 : vector<8x8xf32>
    %cst_399 = arith.constant dense<0.000000e+00> : vector<8xf32>
    %534 = vector.multi_reduction <add>, %533, %cst_399 [1] : vector<8x8xf32> to vector<8xf32>
    %535 = vector.shape_cast %534 : vector<8xf32> to vector<8x1xf32>
    %536 = vector.broadcast %535 : vector<8x1xf32> to vector<8x8xf32>
    %537 = arith.divf %533, %536 : vector<8x8xf32>
    %538 = arith.truncf %537 : vector<8x8xf32> to vector<8x8xbf16>
    %539 = arith.truncf %520 : vector<8x8xf32> to vector<8x8xbf16>
    %cst_400 = arith.constant dense<0.000000e+00> : vector<8x8xf32>
    %540 = tpu.matmul %538, %539, %cst_400 {dimension_numbers = #tpu.dot_dimension_numbers<[1], [0], [0], [1], [0, 0, 1, 1], [], []>} : vector<8x8xbf16>, vector<8x8xbf16>, vector<8x8xf32> -> vector<8x8xf32>
    %c1_401 = arith.constant 1 : index
    %c3_402 = arith.constant 3 : index
    %c0_403 = arith.constant 0 : index
    %c0_404 = arith.constant 0 : index
    %541 = vector.load %arg6[%c1_401, %c3_402, %c0_403, %c0_404] : memref<2x4x8x32xbf16, #tpu.memory_space<vmem>>, vector<1x1x8x32xbf16>
    %542 = vector.shape_cast %541 : vector<1x1x8x32xbf16> to vector<8x32xbf16>
    %543 = arith.truncf %540 : vector<8x8xf32> to vector<8x8xbf16>
    %cst_405 = arith.constant dense<0.000000e+00> : vector<8x32xf32>
    %544 = tpu.matmul %543, %542, %cst_405 {dimension_numbers = #tpu.dot_dimension_numbers<[1], [0], [0], [1], [0, 0, 1, 1], [], []>} : vector<8x8xbf16>, vector<8x32xbf16>, vector<8x32xf32> -> vector<8x32xf32>
    %545 = arith.addf %508, %544 : vector<8x32xf32>
    %546 = arith.addf %545, %396 : vector<8x32xf32>
    %c1_406 = arith.constant 1 : index
    %c0_407 = arith.constant 0 : index
    %c0_408 = arith.constant 0 : index
    %547 = vector.load %arg7[%c1_406, %c0_407, %c0_408] : memref<2x1x32xf32, #tpu.memory_space<vmem>>, vector<1x1x32xf32>
    %548 = vector.shape_cast %547 : vector<1x1x32xf32> to vector<1x32xf32>
    %c1_409 = arith.constant 1 : index
    %c0_410 = arith.constant 0 : index
    %c0_411 = arith.constant 0 : index
    %549 = vector.load %arg8[%c1_409, %c0_410, %c0_411] : memref<2x1x32xf32, #tpu.memory_space<vmem>>, vector<1x1x32xf32>
    %550 = vector.shape_cast %549 : vector<1x1x32xf32> to vector<1x32xf32>
    %cst_412 = arith.constant dense<0.000000e+00> : vector<8xf32>
    %551 = vector.multi_reduction <add>, %546, %cst_412 [1] : vector<8x32xf32> to vector<8xf32>
    %552 = vector.shape_cast %551 : vector<8xf32> to vector<8x1xf32>
    %cst_413 = arith.constant 3.200000e+01 : f32
    %553 = vector.broadcast %cst_413 : f32 to vector<8x1xf32>
    %554 = arith.divf %552, %553 : vector<8x1xf32>
    %555 = vector.broadcast %554 : vector<8x1xf32> to vector<8x32xf32>
    %556 = arith.subf %546, %555 : vector<8x32xf32>
    %557 = arith.mulf %556, %556 : vector<8x32xf32>
    %cst_414 = arith.constant dense<0.000000e+00> : vector<8xf32>
    %558 = vector.multi_reduction <add>, %557, %cst_414 [1] : vector<8x32xf32> to vector<8xf32>
    %559 = vector.shape_cast %558 : vector<8xf32> to vector<8x1xf32>
    %cst_415 = arith.constant 3.200000e+01 : f32
    %560 = vector.broadcast %cst_415 : f32 to vector<8x1xf32>
    %561 = arith.divf %559, %560 : vector<8x1xf32>
    %562 = vector.broadcast %554 : vector<8x1xf32> to vector<8x32xf32>
    %563 = arith.subf %546, %562 : vector<8x32xf32>
    %cst_416 = arith.constant 9.99999974E-6 : f32
    %564 = vector.broadcast %cst_416 : f32 to vector<8x1xf32>
    %565 = arith.addf %561, %564 : vector<8x1xf32>
    %566 = math.rsqrt %565 : vector<8x1xf32>
    %567 = vector.broadcast %566 : vector<8x1xf32> to vector<8x32xf32>
    %568 = arith.mulf %563, %567 : vector<8x32xf32>
    %569 = vector.broadcast %548 : vector<1x32xf32> to vector<8x32xf32>
    %570 = arith.mulf %568, %569 : vector<8x32xf32>
    %571 = vector.broadcast %550 : vector<1x32xf32> to vector<8x32xf32>
    %572 = arith.addf %570, %571 : vector<8x32xf32>
    %cst_417 = arith.constant 0.000000e+00 : f32
    %573 = vector.broadcast %cst_417 : f32 to vector<8x32xf32>
    %c1_418 = arith.constant 1 : index
    %c0_419 = arith.constant 0 : index
    %c0_420 = arith.constant 0 : index
    %c0_421 = arith.constant 0 : index
    %c0_422 = arith.constant 0 : index
    %574 = vector.load %arg9[%c1_418, %c0_419, %c0_420, %c0_421, %c0_422] : memref<2x3x4x32x8xbf16, #tpu.memory_space<vmem>>, vector<1x1x1x32x8xbf16>
    %575 = vector.shape_cast %574 : vector<1x1x1x32x8xbf16> to vector<32x8xbf16>
    %576 = arith.truncf %572 : vector<8x32xf32> to vector<8x32xbf16>
    %cst_423 = arith.constant dense<0.000000e+00> : vector<8x8xf32>
    %577 = tpu.matmul %576, %575, %cst_423 {dimension_numbers = #tpu.dot_dimension_numbers<[1], [0], [0], [1], [0, 0, 1, 1], [], []>} : vector<8x32xbf16>, vector<32x8xbf16>, vector<8x8xf32> -> vector<8x8xf32>
    %c1_424 = arith.constant 1 : index
    %c1_425 = arith.constant 1 : index
    %c0_426 = arith.constant 0 : index
    %c0_427 = arith.constant 0 : index
    %c0_428 = arith.constant 0 : index
    %578 = vector.load %arg9[%c1_424, %c1_425, %c0_426, %c0_427, %c0_428] : memref<2x3x4x32x8xbf16, #tpu.memory_space<vmem>>, vector<1x1x1x32x8xbf16>
    %579 = vector.shape_cast %578 : vector<1x1x1x32x8xbf16> to vector<32x8xbf16>
    %cst_429 = arith.constant dense<0.000000e+00> : vector<16x8xf32>
    %580 = tpu.matmul %3, %579, %cst_429 {dimension_numbers = #tpu.dot_dimension_numbers<[1], [0], [0], [1], [0, 0, 1, 1], [], []>} : vector<16x32xbf16>, vector<32x8xbf16>, vector<16x8xf32> -> vector<16x8xf32>
    %c1_430 = arith.constant 1 : index
    %c2_431 = arith.constant 2 : index
    %c0_432 = arith.constant 0 : index
    %c0_433 = arith.constant 0 : index
    %c0_434 = arith.constant 0 : index
    %581 = vector.load %arg9[%c1_430, %c2_431, %c0_432, %c0_433, %c0_434] : memref<2x3x4x32x8xbf16, #tpu.memory_space<vmem>>, vector<1x1x1x32x8xbf16>
    %582 = vector.shape_cast %581 : vector<1x1x1x32x8xbf16> to vector<32x8xbf16>
    %cst_435 = arith.constant dense<0.000000e+00> : vector<16x8xf32>
    %583 = tpu.matmul %3, %582, %cst_435 {dimension_numbers = #tpu.dot_dimension_numbers<[1], [0], [0], [1], [0, 0, 1, 1], [], []>} : vector<16x32xbf16>, vector<32x8xbf16>, vector<16x8xf32> -> vector<16x8xf32>
    %584 = arith.truncf %577 : vector<8x8xf32> to vector<8x8xbf16>
    %585 = arith.truncf %580 : vector<16x8xf32> to vector<16x8xbf16>
    %cst_436 = arith.constant dense<0.000000e+00> : vector<8x16xf32>
    %586 = tpu.matmul %584, %585, %cst_436 {dimension_numbers = #tpu.dot_dimension_numbers<[1], [1], [0], [0], [0, 0, 1, 0], [], []>} : vector<8x8xbf16>, vector<16x8xbf16>, vector<8x16xf32> -> vector<8x16xf32>
    %cst_437 = arith.constant 0.353553385 : f32
    %587 = vector.broadcast %cst_437 : f32 to vector<8x16xf32>
    %588 = arith.mulf %586, %587 : vector<8x16xf32>
    %cst_438 = arith.constant -1.000000e+09 : f32
    %589 = vector.broadcast %cst_438 : f32 to vector<8x16xf32>
    %590 = arith.mulf %7, %589 : vector<8x16xf32>
    %591 = arith.addf %588, %590 : vector<8x16xf32>
    %cst_439 = arith.constant dense<0xFF800000> : vector<8xf32>
    %592 = vector.multi_reduction <maximumf>, %591, %cst_439 [1] : vector<8x16xf32> to vector<8xf32>
    %593 = vector.shape_cast %592 : vector<8xf32> to vector<8x1xf32>
    %594 = vector.broadcast %593 : vector<8x1xf32> to vector<8x16xf32>
    %595 = arith.subf %591, %594 : vector<8x16xf32>
    %596 = math.exp %595 : vector<8x16xf32>
    %cst_440 = arith.constant dense<0.000000e+00> : vector<8xf32>
    %597 = vector.multi_reduction <add>, %596, %cst_440 [1] : vector<8x16xf32> to vector<8xf32>
    %598 = vector.shape_cast %597 : vector<8xf32> to vector<8x1xf32>
    %599 = vector.broadcast %598 : vector<8x1xf32> to vector<8x16xf32>
    %600 = arith.divf %596, %599 : vector<8x16xf32>
    %601 = arith.truncf %600 : vector<8x16xf32> to vector<8x16xbf16>
    %602 = arith.truncf %583 : vector<16x8xf32> to vector<16x8xbf16>
    %cst_441 = arith.constant dense<0.000000e+00> : vector<8x8xf32>
    %603 = tpu.matmul %601, %602, %cst_441 {dimension_numbers = #tpu.dot_dimension_numbers<[1], [0], [0], [1], [0, 0, 1, 1], [], []>} : vector<8x16xbf16>, vector<16x8xbf16>, vector<8x8xf32> -> vector<8x8xf32>
    %c1_442 = arith.constant 1 : index
    %c0_443 = arith.constant 0 : index
    %c0_444 = arith.constant 0 : index
    %c0_445 = arith.constant 0 : index
    %604 = vector.load %arg10[%c1_442, %c0_443, %c0_444, %c0_445] : memref<2x4x8x32xbf16, #tpu.memory_space<vmem>>, vector<1x1x8x32xbf16>
    %605 = vector.shape_cast %604 : vector<1x1x8x32xbf16> to vector<8x32xbf16>
    %606 = arith.truncf %603 : vector<8x8xf32> to vector<8x8xbf16>
    %cst_446 = arith.constant dense<0.000000e+00> : vector<8x32xf32>
    %607 = tpu.matmul %606, %605, %cst_446 {dimension_numbers = #tpu.dot_dimension_numbers<[1], [0], [0], [1], [0, 0, 1, 1], [], []>} : vector<8x8xbf16>, vector<8x32xbf16>, vector<8x32xf32> -> vector<8x32xf32>
    %608 = arith.addf %573, %607 : vector<8x32xf32>
    %c1_447 = arith.constant 1 : index
    %c0_448 = arith.constant 0 : index
    %c1_449 = arith.constant 1 : index
    %c0_450 = arith.constant 0 : index
    %c0_451 = arith.constant 0 : index
    %609 = vector.load %arg9[%c1_447, %c0_448, %c1_449, %c0_450, %c0_451] : memref<2x3x4x32x8xbf16, #tpu.memory_space<vmem>>, vector<1x1x1x32x8xbf16>
    %610 = vector.shape_cast %609 : vector<1x1x1x32x8xbf16> to vector<32x8xbf16>
    %611 = arith.truncf %572 : vector<8x32xf32> to vector<8x32xbf16>
    %cst_452 = arith.constant dense<0.000000e+00> : vector<8x8xf32>
    %612 = tpu.matmul %611, %610, %cst_452 {dimension_numbers = #tpu.dot_dimension_numbers<[1], [0], [0], [1], [0, 0, 1, 1], [], []>} : vector<8x32xbf16>, vector<32x8xbf16>, vector<8x8xf32> -> vector<8x8xf32>
    %c1_453 = arith.constant 1 : index
    %c1_454 = arith.constant 1 : index
    %c1_455 = arith.constant 1 : index
    %c0_456 = arith.constant 0 : index
    %c0_457 = arith.constant 0 : index
    %613 = vector.load %arg9[%c1_453, %c1_454, %c1_455, %c0_456, %c0_457] : memref<2x3x4x32x8xbf16, #tpu.memory_space<vmem>>, vector<1x1x1x32x8xbf16>
    %614 = vector.shape_cast %613 : vector<1x1x1x32x8xbf16> to vector<32x8xbf16>
    %cst_458 = arith.constant dense<0.000000e+00> : vector<16x8xf32>
    %615 = tpu.matmul %3, %614, %cst_458 {dimension_numbers = #tpu.dot_dimension_numbers<[1], [0], [0], [1], [0, 0, 1, 1], [], []>} : vector<16x32xbf16>, vector<32x8xbf16>, vector<16x8xf32> -> vector<16x8xf32>
    %c1_459 = arith.constant 1 : index
    %c2_460 = arith.constant 2 : index
    %c1_461 = arith.constant 1 : index
    %c0_462 = arith.constant 0 : index
    %c0_463 = arith.constant 0 : index
    %616 = vector.load %arg9[%c1_459, %c2_460, %c1_461, %c0_462, %c0_463] : memref<2x3x4x32x8xbf16, #tpu.memory_space<vmem>>, vector<1x1x1x32x8xbf16>
    %617 = vector.shape_cast %616 : vector<1x1x1x32x8xbf16> to vector<32x8xbf16>
    %cst_464 = arith.constant dense<0.000000e+00> : vector<16x8xf32>
    %618 = tpu.matmul %3, %617, %cst_464 {dimension_numbers = #tpu.dot_dimension_numbers<[1], [0], [0], [1], [0, 0, 1, 1], [], []>} : vector<16x32xbf16>, vector<32x8xbf16>, vector<16x8xf32> -> vector<16x8xf32>
    %619 = arith.truncf %612 : vector<8x8xf32> to vector<8x8xbf16>
    %620 = arith.truncf %615 : vector<16x8xf32> to vector<16x8xbf16>
    %cst_465 = arith.constant dense<0.000000e+00> : vector<8x16xf32>
    %621 = tpu.matmul %619, %620, %cst_465 {dimension_numbers = #tpu.dot_dimension_numbers<[1], [1], [0], [0], [0, 0, 1, 0], [], []>} : vector<8x8xbf16>, vector<16x8xbf16>, vector<8x16xf32> -> vector<8x16xf32>
    %cst_466 = arith.constant 0.353553385 : f32
    %622 = vector.broadcast %cst_466 : f32 to vector<8x16xf32>
    %623 = arith.mulf %621, %622 : vector<8x16xf32>
    %cst_467 = arith.constant -1.000000e+09 : f32
    %624 = vector.broadcast %cst_467 : f32 to vector<8x16xf32>
    %625 = arith.mulf %7, %624 : vector<8x16xf32>
    %626 = arith.addf %623, %625 : vector<8x16xf32>
    %cst_468 = arith.constant dense<0xFF800000> : vector<8xf32>
    %627 = vector.multi_reduction <maximumf>, %626, %cst_468 [1] : vector<8x16xf32> to vector<8xf32>
    %628 = vector.shape_cast %627 : vector<8xf32> to vector<8x1xf32>
    %629 = vector.broadcast %628 : vector<8x1xf32> to vector<8x16xf32>
    %630 = arith.subf %626, %629 : vector<8x16xf32>
    %631 = math.exp %630 : vector<8x16xf32>
    %cst_469 = arith.constant dense<0.000000e+00> : vector<8xf32>
    %632 = vector.multi_reduction <add>, %631, %cst_469 [1] : vector<8x16xf32> to vector<8xf32>
    %633 = vector.shape_cast %632 : vector<8xf32> to vector<8x1xf32>
    %634 = vector.broadcast %633 : vector<8x1xf32> to vector<8x16xf32>
    %635 = arith.divf %631, %634 : vector<8x16xf32>
    %636 = arith.truncf %635 : vector<8x16xf32> to vector<8x16xbf16>
    %637 = arith.truncf %618 : vector<16x8xf32> to vector<16x8xbf16>
    %cst_470 = arith.constant dense<0.000000e+00> : vector<8x8xf32>
    %638 = tpu.matmul %636, %637, %cst_470 {dimension_numbers = #tpu.dot_dimension_numbers<[1], [0], [0], [1], [0, 0, 1, 1], [], []>} : vector<8x16xbf16>, vector<16x8xbf16>, vector<8x8xf32> -> vector<8x8xf32>
    %c1_471 = arith.constant 1 : index
    %c1_472 = arith.constant 1 : index
    %c0_473 = arith.constant 0 : index
    %c0_474 = arith.constant 0 : index
    %639 = vector.load %arg10[%c1_471, %c1_472, %c0_473, %c0_474] : memref<2x4x8x32xbf16, #tpu.memory_space<vmem>>, vector<1x1x8x32xbf16>
    %640 = vector.shape_cast %639 : vector<1x1x8x32xbf16> to vector<8x32xbf16>
    %641 = arith.truncf %638 : vector<8x8xf32> to vector<8x8xbf16>
    %cst_475 = arith.constant dense<0.000000e+00> : vector<8x32xf32>
    %642 = tpu.matmul %641, %640, %cst_475 {dimension_numbers = #tpu.dot_dimension_numbers<[1], [0], [0], [1], [0, 0, 1, 1], [], []>} : vector<8x8xbf16>, vector<8x32xbf16>, vector<8x32xf32> -> vector<8x32xf32>
    %643 = arith.addf %608, %642 : vector<8x32xf32>
    %c1_476 = arith.constant 1 : index
    %c0_477 = arith.constant 0 : index
    %c2_478 = arith.constant 2 : index
    %c0_479 = arith.constant 0 : index
    %c0_480 = arith.constant 0 : index
    %644 = vector.load %arg9[%c1_476, %c0_477, %c2_478, %c0_479, %c0_480] : memref<2x3x4x32x8xbf16, #tpu.memory_space<vmem>>, vector<1x1x1x32x8xbf16>
    %645 = vector.shape_cast %644 : vector<1x1x1x32x8xbf16> to vector<32x8xbf16>
    %646 = arith.truncf %572 : vector<8x32xf32> to vector<8x32xbf16>
    %cst_481 = arith.constant dense<0.000000e+00> : vector<8x8xf32>
    %647 = tpu.matmul %646, %645, %cst_481 {dimension_numbers = #tpu.dot_dimension_numbers<[1], [0], [0], [1], [0, 0, 1, 1], [], []>} : vector<8x32xbf16>, vector<32x8xbf16>, vector<8x8xf32> -> vector<8x8xf32>
    %c1_482 = arith.constant 1 : index
    %c1_483 = arith.constant 1 : index
    %c2_484 = arith.constant 2 : index
    %c0_485 = arith.constant 0 : index
    %c0_486 = arith.constant 0 : index
    %648 = vector.load %arg9[%c1_482, %c1_483, %c2_484, %c0_485, %c0_486] : memref<2x3x4x32x8xbf16, #tpu.memory_space<vmem>>, vector<1x1x1x32x8xbf16>
    %649 = vector.shape_cast %648 : vector<1x1x1x32x8xbf16> to vector<32x8xbf16>
    %cst_487 = arith.constant dense<0.000000e+00> : vector<16x8xf32>
    %650 = tpu.matmul %3, %649, %cst_487 {dimension_numbers = #tpu.dot_dimension_numbers<[1], [0], [0], [1], [0, 0, 1, 1], [], []>} : vector<16x32xbf16>, vector<32x8xbf16>, vector<16x8xf32> -> vector<16x8xf32>
    %c1_488 = arith.constant 1 : index
    %c2_489 = arith.constant 2 : index
    %c2_490 = arith.constant 2 : index
    %c0_491 = arith.constant 0 : index
    %c0_492 = arith.constant 0 : index
    %651 = vector.load %arg9[%c1_488, %c2_489, %c2_490, %c0_491, %c0_492] : memref<2x3x4x32x8xbf16, #tpu.memory_space<vmem>>, vector<1x1x1x32x8xbf16>
    %652 = vector.shape_cast %651 : vector<1x1x1x32x8xbf16> to vector<32x8xbf16>
    %cst_493 = arith.constant dense<0.000000e+00> : vector<16x8xf32>
    %653 = tpu.matmul %3, %652, %cst_493 {dimension_numbers = #tpu.dot_dimension_numbers<[1], [0], [0], [1], [0, 0, 1, 1], [], []>} : vector<16x32xbf16>, vector<32x8xbf16>, vector<16x8xf32> -> vector<16x8xf32>
    %654 = arith.truncf %647 : vector<8x8xf32> to vector<8x8xbf16>
    %655 = arith.truncf %650 : vector<16x8xf32> to vector<16x8xbf16>
    %cst_494 = arith.constant dense<0.000000e+00> : vector<8x16xf32>
    %656 = tpu.matmul %654, %655, %cst_494 {dimension_numbers = #tpu.dot_dimension_numbers<[1], [1], [0], [0], [0, 0, 1, 0], [], []>} : vector<8x8xbf16>, vector<16x8xbf16>, vector<8x16xf32> -> vector<8x16xf32>
    %cst_495 = arith.constant 0.353553385 : f32
    %657 = vector.broadcast %cst_495 : f32 to vector<8x16xf32>
    %658 = arith.mulf %656, %657 : vector<8x16xf32>
    %cst_496 = arith.constant -1.000000e+09 : f32
    %659 = vector.broadcast %cst_496 : f32 to vector<8x16xf32>
    %660 = arith.mulf %7, %659 : vector<8x16xf32>
    %661 = arith.addf %658, %660 : vector<8x16xf32>
    %cst_497 = arith.constant dense<0xFF800000> : vector<8xf32>
    %662 = vector.multi_reduction <maximumf>, %661, %cst_497 [1] : vector<8x16xf32> to vector<8xf32>
    %663 = vector.shape_cast %662 : vector<8xf32> to vector<8x1xf32>
    %664 = vector.broadcast %663 : vector<8x1xf32> to vector<8x16xf32>
    %665 = arith.subf %661, %664 : vector<8x16xf32>
    %666 = math.exp %665 : vector<8x16xf32>
    %cst_498 = arith.constant dense<0.000000e+00> : vector<8xf32>
    %667 = vector.multi_reduction <add>, %666, %cst_498 [1] : vector<8x16xf32> to vector<8xf32>
    %668 = vector.shape_cast %667 : vector<8xf32> to vector<8x1xf32>
    %669 = vector.broadcast %668 : vector<8x1xf32> to vector<8x16xf32>
    %670 = arith.divf %666, %669 : vector<8x16xf32>
    %671 = arith.truncf %670 : vector<8x16xf32> to vector<8x16xbf16>
    %672 = arith.truncf %653 : vector<16x8xf32> to vector<16x8xbf16>
    %cst_499 = arith.constant dense<0.000000e+00> : vector<8x8xf32>
    %673 = tpu.matmul %671, %672, %cst_499 {dimension_numbers = #tpu.dot_dimension_numbers<[1], [0], [0], [1], [0, 0, 1, 1], [], []>} : vector<8x16xbf16>, vector<16x8xbf16>, vector<8x8xf32> -> vector<8x8xf32>
    %c1_500 = arith.constant 1 : index
    %c2_501 = arith.constant 2 : index
    %c0_502 = arith.constant 0 : index
    %c0_503 = arith.constant 0 : index
    %674 = vector.load %arg10[%c1_500, %c2_501, %c0_502, %c0_503] : memref<2x4x8x32xbf16, #tpu.memory_space<vmem>>, vector<1x1x8x32xbf16>
    %675 = vector.shape_cast %674 : vector<1x1x8x32xbf16> to vector<8x32xbf16>
    %676 = arith.truncf %673 : vector<8x8xf32> to vector<8x8xbf16>
    %cst_504 = arith.constant dense<0.000000e+00> : vector<8x32xf32>
    %677 = tpu.matmul %676, %675, %cst_504 {dimension_numbers = #tpu.dot_dimension_numbers<[1], [0], [0], [1], [0, 0, 1, 1], [], []>} : vector<8x8xbf16>, vector<8x32xbf16>, vector<8x32xf32> -> vector<8x32xf32>
    %678 = arith.addf %643, %677 : vector<8x32xf32>
    %c1_505 = arith.constant 1 : index
    %c0_506 = arith.constant 0 : index
    %c3_507 = arith.constant 3 : index
    %c0_508 = arith.constant 0 : index
    %c0_509 = arith.constant 0 : index
    %679 = vector.load %arg9[%c1_505, %c0_506, %c3_507, %c0_508, %c0_509] : memref<2x3x4x32x8xbf16, #tpu.memory_space<vmem>>, vector<1x1x1x32x8xbf16>
    %680 = vector.shape_cast %679 : vector<1x1x1x32x8xbf16> to vector<32x8xbf16>
    %681 = arith.truncf %572 : vector<8x32xf32> to vector<8x32xbf16>
    %cst_510 = arith.constant dense<0.000000e+00> : vector<8x8xf32>
    %682 = tpu.matmul %681, %680, %cst_510 {dimension_numbers = #tpu.dot_dimension_numbers<[1], [0], [0], [1], [0, 0, 1, 1], [], []>} : vector<8x32xbf16>, vector<32x8xbf16>, vector<8x8xf32> -> vector<8x8xf32>
    %c1_511 = arith.constant 1 : index
    %c1_512 = arith.constant 1 : index
    %c3_513 = arith.constant 3 : index
    %c0_514 = arith.constant 0 : index
    %c0_515 = arith.constant 0 : index
    %683 = vector.load %arg9[%c1_511, %c1_512, %c3_513, %c0_514, %c0_515] : memref<2x3x4x32x8xbf16, #tpu.memory_space<vmem>>, vector<1x1x1x32x8xbf16>
    %684 = vector.shape_cast %683 : vector<1x1x1x32x8xbf16> to vector<32x8xbf16>
    %cst_516 = arith.constant dense<0.000000e+00> : vector<16x8xf32>
    %685 = tpu.matmul %3, %684, %cst_516 {dimension_numbers = #tpu.dot_dimension_numbers<[1], [0], [0], [1], [0, 0, 1, 1], [], []>} : vector<16x32xbf16>, vector<32x8xbf16>, vector<16x8xf32> -> vector<16x8xf32>
    %c1_517 = arith.constant 1 : index
    %c2_518 = arith.constant 2 : index
    %c3_519 = arith.constant 3 : index
    %c0_520 = arith.constant 0 : index
    %c0_521 = arith.constant 0 : index
    %686 = vector.load %arg9[%c1_517, %c2_518, %c3_519, %c0_520, %c0_521] : memref<2x3x4x32x8xbf16, #tpu.memory_space<vmem>>, vector<1x1x1x32x8xbf16>
    %687 = vector.shape_cast %686 : vector<1x1x1x32x8xbf16> to vector<32x8xbf16>
    %cst_522 = arith.constant dense<0.000000e+00> : vector<16x8xf32>
    %688 = tpu.matmul %3, %687, %cst_522 {dimension_numbers = #tpu.dot_dimension_numbers<[1], [0], [0], [1], [0, 0, 1, 1], [], []>} : vector<16x32xbf16>, vector<32x8xbf16>, vector<16x8xf32> -> vector<16x8xf32>
    %689 = arith.truncf %682 : vector<8x8xf32> to vector<8x8xbf16>
    %690 = arith.truncf %685 : vector<16x8xf32> to vector<16x8xbf16>
    %cst_523 = arith.constant dense<0.000000e+00> : vector<8x16xf32>
    %691 = tpu.matmul %689, %690, %cst_523 {dimension_numbers = #tpu.dot_dimension_numbers<[1], [1], [0], [0], [0, 0, 1, 0], [], []>} : vector<8x8xbf16>, vector<16x8xbf16>, vector<8x16xf32> -> vector<8x16xf32>
    %cst_524 = arith.constant 0.353553385 : f32
    %692 = vector.broadcast %cst_524 : f32 to vector<8x16xf32>
    %693 = arith.mulf %691, %692 : vector<8x16xf32>
    %cst_525 = arith.constant -1.000000e+09 : f32
    %694 = vector.broadcast %cst_525 : f32 to vector<8x16xf32>
    %695 = arith.mulf %7, %694 : vector<8x16xf32>
    %696 = arith.addf %693, %695 : vector<8x16xf32>
    %cst_526 = arith.constant dense<0xFF800000> : vector<8xf32>
    %697 = vector.multi_reduction <maximumf>, %696, %cst_526 [1] : vector<8x16xf32> to vector<8xf32>
    %698 = vector.shape_cast %697 : vector<8xf32> to vector<8x1xf32>
    %699 = vector.broadcast %698 : vector<8x1xf32> to vector<8x16xf32>
    %700 = arith.subf %696, %699 : vector<8x16xf32>
    %701 = math.exp %700 : vector<8x16xf32>
    %cst_527 = arith.constant dense<0.000000e+00> : vector<8xf32>
    %702 = vector.multi_reduction <add>, %701, %cst_527 [1] : vector<8x16xf32> to vector<8xf32>
    %703 = vector.shape_cast %702 : vector<8xf32> to vector<8x1xf32>
    %704 = vector.broadcast %703 : vector<8x1xf32> to vector<8x16xf32>
    %705 = arith.divf %701, %704 : vector<8x16xf32>
    %706 = arith.truncf %705 : vector<8x16xf32> to vector<8x16xbf16>
    %707 = arith.truncf %688 : vector<16x8xf32> to vector<16x8xbf16>
    %cst_528 = arith.constant dense<0.000000e+00> : vector<8x8xf32>
    %708 = tpu.matmul %706, %707, %cst_528 {dimension_numbers = #tpu.dot_dimension_numbers<[1], [0], [0], [1], [0, 0, 1, 1], [], []>} : vector<8x16xbf16>, vector<16x8xbf16>, vector<8x8xf32> -> vector<8x8xf32>
    %c1_529 = arith.constant 1 : index
    %c3_530 = arith.constant 3 : index
    %c0_531 = arith.constant 0 : index
    %c0_532 = arith.constant 0 : index
    %709 = vector.load %arg10[%c1_529, %c3_530, %c0_531, %c0_532] : memref<2x4x8x32xbf16, #tpu.memory_space<vmem>>, vector<1x1x8x32xbf16>
    %710 = vector.shape_cast %709 : vector<1x1x8x32xbf16> to vector<8x32xbf16>
    %711 = arith.truncf %708 : vector<8x8xf32> to vector<8x8xbf16>
    %cst_533 = arith.constant dense<0.000000e+00> : vector<8x32xf32>
    %712 = tpu.matmul %711, %710, %cst_533 {dimension_numbers = #tpu.dot_dimension_numbers<[1], [0], [0], [1], [0, 0, 1, 1], [], []>} : vector<8x8xbf16>, vector<8x32xbf16>, vector<8x32xf32> -> vector<8x32xf32>
    %713 = arith.addf %678, %712 : vector<8x32xf32>
    %714 = arith.addf %713, %572 : vector<8x32xf32>
    %c1_534 = arith.constant 1 : index
    %c0_535 = arith.constant 0 : index
    %c0_536 = arith.constant 0 : index
    %715 = vector.load %arg11[%c1_534, %c0_535, %c0_536] : memref<2x1x32xf32, #tpu.memory_space<vmem>>, vector<1x1x32xf32>
    %716 = vector.shape_cast %715 : vector<1x1x32xf32> to vector<1x32xf32>
    %c1_537 = arith.constant 1 : index
    %c0_538 = arith.constant 0 : index
    %c0_539 = arith.constant 0 : index
    %717 = vector.load %arg12[%c1_537, %c0_538, %c0_539] : memref<2x1x32xf32, #tpu.memory_space<vmem>>, vector<1x1x32xf32>
    %718 = vector.shape_cast %717 : vector<1x1x32xf32> to vector<1x32xf32>
    %cst_540 = arith.constant dense<0.000000e+00> : vector<8xf32>
    %719 = vector.multi_reduction <add>, %714, %cst_540 [1] : vector<8x32xf32> to vector<8xf32>
    %720 = vector.shape_cast %719 : vector<8xf32> to vector<8x1xf32>
    %cst_541 = arith.constant 3.200000e+01 : f32
    %721 = vector.broadcast %cst_541 : f32 to vector<8x1xf32>
    %722 = arith.divf %720, %721 : vector<8x1xf32>
    %723 = vector.broadcast %722 : vector<8x1xf32> to vector<8x32xf32>
    %724 = arith.subf %714, %723 : vector<8x32xf32>
    %725 = arith.mulf %724, %724 : vector<8x32xf32>
    %cst_542 = arith.constant dense<0.000000e+00> : vector<8xf32>
    %726 = vector.multi_reduction <add>, %725, %cst_542 [1] : vector<8x32xf32> to vector<8xf32>
    %727 = vector.shape_cast %726 : vector<8xf32> to vector<8x1xf32>
    %cst_543 = arith.constant 3.200000e+01 : f32
    %728 = vector.broadcast %cst_543 : f32 to vector<8x1xf32>
    %729 = arith.divf %727, %728 : vector<8x1xf32>
    %730 = vector.broadcast %722 : vector<8x1xf32> to vector<8x32xf32>
    %731 = arith.subf %714, %730 : vector<8x32xf32>
    %cst_544 = arith.constant 9.99999974E-6 : f32
    %732 = vector.broadcast %cst_544 : f32 to vector<8x1xf32>
    %733 = arith.addf %729, %732 : vector<8x1xf32>
    %734 = math.rsqrt %733 : vector<8x1xf32>
    %735 = vector.broadcast %734 : vector<8x1xf32> to vector<8x32xf32>
    %736 = arith.mulf %731, %735 : vector<8x32xf32>
    %737 = vector.broadcast %716 : vector<1x32xf32> to vector<8x32xf32>
    %738 = arith.mulf %736, %737 : vector<8x32xf32>
    %739 = vector.broadcast %718 : vector<1x32xf32> to vector<8x32xf32>
    %740 = arith.addf %738, %739 : vector<8x32xf32>
    %c1_545 = arith.constant 1 : index
    %c0_546 = arith.constant 0 : index
    %c0_547 = arith.constant 0 : index
    %741 = vector.load %arg13[%c1_545, %c0_546, %c0_547] : memref<2x32x64xbf16, #tpu.memory_space<vmem>>, vector<1x32x64xbf16>
    %742 = vector.shape_cast %741 : vector<1x32x64xbf16> to vector<32x64xbf16>
    %743 = arith.truncf %740 : vector<8x32xf32> to vector<8x32xbf16>
    %cst_548 = arith.constant dense<0.000000e+00> : vector<8x64xf32>
    %744 = tpu.matmul %743, %742, %cst_548 {dimension_numbers = #tpu.dot_dimension_numbers<[1], [0], [0], [1], [0, 0, 1, 1], [], []>} : vector<8x32xbf16>, vector<32x64xbf16>, vector<8x64xf32> -> vector<8x64xf32>
    %c1_549 = arith.constant 1 : index
    %c0_550 = arith.constant 0 : index
    %c0_551 = arith.constant 0 : index
    %745 = vector.load %arg14[%c1_549, %c0_550, %c0_551] : memref<2x1x64xf32, #tpu.memory_space<vmem>>, vector<1x1x64xf32>
    %746 = vector.shape_cast %745 : vector<1x1x64xf32> to vector<1x64xf32>
    %747 = vector.broadcast %746 : vector<1x64xf32> to vector<8x64xf32>
    %748 = arith.addf %744, %747 : vector<8x64xf32>
    %cst_552 = arith.constant 0.000000e+00 : f32
    %749 = vector.broadcast %cst_552 : f32 to vector<8x64xf32>
    %750 = arith.maximumf %748, %749 : vector<8x64xf32>
    %c1_553 = arith.constant 1 : index
    %c0_554 = arith.constant 0 : index
    %c0_555 = arith.constant 0 : index
    %751 = vector.load %arg15[%c1_553, %c0_554, %c0_555] : memref<2x64x32xbf16, #tpu.memory_space<vmem>>, vector<1x64x32xbf16>
    %752 = vector.shape_cast %751 : vector<1x64x32xbf16> to vector<64x32xbf16>
    %753 = arith.truncf %750 : vector<8x64xf32> to vector<8x64xbf16>
    %cst_556 = arith.constant dense<0.000000e+00> : vector<8x32xf32>
    %754 = tpu.matmul %753, %752, %cst_556 {dimension_numbers = #tpu.dot_dimension_numbers<[1], [0], [0], [1], [0, 0, 1, 1], [], []>} : vector<8x64xbf16>, vector<64x32xbf16>, vector<8x32xf32> -> vector<8x32xf32>
    %c1_557 = arith.constant 1 : index
    %c0_558 = arith.constant 0 : index
    %c0_559 = arith.constant 0 : index
    %755 = vector.load %arg16[%c1_557, %c0_558, %c0_559] : memref<2x1x32xf32, #tpu.memory_space<vmem>>, vector<1x1x32xf32>
    %756 = vector.shape_cast %755 : vector<1x1x32xf32> to vector<1x32xf32>
    %757 = vector.broadcast %756 : vector<1x32xf32> to vector<8x32xf32>
    %758 = arith.addf %754, %757 : vector<8x32xf32>
    %759 = arith.addf %758, %740 : vector<8x32xf32>
    %c1_560 = arith.constant 1 : index
    %c0_561 = arith.constant 0 : index
    %c0_562 = arith.constant 0 : index
    %760 = vector.load %arg17[%c1_560, %c0_561, %c0_562] : memref<2x1x32xf32, #tpu.memory_space<vmem>>, vector<1x1x32xf32>
    %761 = vector.shape_cast %760 : vector<1x1x32xf32> to vector<1x32xf32>
    %c1_563 = arith.constant 1 : index
    %c0_564 = arith.constant 0 : index
    %c0_565 = arith.constant 0 : index
    %762 = vector.load %arg18[%c1_563, %c0_564, %c0_565] : memref<2x1x32xf32, #tpu.memory_space<vmem>>, vector<1x1x32xf32>
    %763 = vector.shape_cast %762 : vector<1x1x32xf32> to vector<1x32xf32>
    %cst_566 = arith.constant dense<0.000000e+00> : vector<8xf32>
    %764 = vector.multi_reduction <add>, %759, %cst_566 [1] : vector<8x32xf32> to vector<8xf32>
    %765 = vector.shape_cast %764 : vector<8xf32> to vector<8x1xf32>
    %cst_567 = arith.constant 3.200000e+01 : f32
    %766 = vector.broadcast %cst_567 : f32 to vector<8x1xf32>
    %767 = arith.divf %765, %766 : vector<8x1xf32>
    %768 = vector.broadcast %767 : vector<8x1xf32> to vector<8x32xf32>
    %769 = arith.subf %759, %768 : vector<8x32xf32>
    %770 = arith.mulf %769, %769 : vector<8x32xf32>
    %cst_568 = arith.constant dense<0.000000e+00> : vector<8xf32>
    %771 = vector.multi_reduction <add>, %770, %cst_568 [1] : vector<8x32xf32> to vector<8xf32>
    %772 = vector.shape_cast %771 : vector<8xf32> to vector<8x1xf32>
    %cst_569 = arith.constant 3.200000e+01 : f32
    %773 = vector.broadcast %cst_569 : f32 to vector<8x1xf32>
    %774 = arith.divf %772, %773 : vector<8x1xf32>
    %775 = vector.broadcast %767 : vector<8x1xf32> to vector<8x32xf32>
    %776 = arith.subf %759, %775 : vector<8x32xf32>
    %cst_570 = arith.constant 9.99999974E-6 : f32
    %777 = vector.broadcast %cst_570 : f32 to vector<8x1xf32>
    %778 = arith.addf %774, %777 : vector<8x1xf32>
    %779 = math.rsqrt %778 : vector<8x1xf32>
    %780 = vector.broadcast %779 : vector<8x1xf32> to vector<8x32xf32>
    %781 = arith.mulf %776, %780 : vector<8x32xf32>
    %782 = vector.broadcast %761 : vector<1x32xf32> to vector<8x32xf32>
    %783 = arith.mulf %781, %782 : vector<8x32xf32>
    %784 = vector.broadcast %763 : vector<1x32xf32> to vector<8x32xf32>
    %785 = arith.addf %783, %784 : vector<8x32xf32>
    %c0_571 = arith.constant 0 : index
    %c0_572 = arith.constant 0 : index
    %c0_573 = arith.constant 0 : index
    %786 = vector.load %arg19[%c0_571, %c0_572, %c0_573] : memref<1x8x32xf32, #tpu.memory_space<vmem>>, vector<1x8x32xf32>
    %787 = vector.shape_cast %786 : vector<1x8x32xf32> to vector<8x32xf32>
    %788 = vector.shape_cast %785 : vector<8x32xf32> to vector<1x8x32xf32>
    tpu.vector_store %arg19[%c0_571, %c0_572, %c0_573], %788 {strides = array<i32>} : memref<1x8x32xf32, #tpu.memory_space<vmem>>, vector<1x8x32xf32>,
    return
  }
  func.func @transform_0(%arg0: i32) -> (i32, i32, i32) {
    %c0_i32 = arith.constant 0 : i32
    %c0_i32_0 = arith.constant 0 : i32
    %c0_i32_1 = arith.constant 0 : i32
    return %arg0, %c0_i32, %c0_i32_0 : i32, i32, i32
  }
  func.func @transform_1(%arg0: i32) -> (i32, i32, i32) {
    %c0_i32 = arith.constant 0 : i32
    %c0_i32_0 = arith.constant 0 : i32
    %c0_i32_1 = arith.constant 0 : i32
    return %arg0, %c0_i32, %c0_i32_0 : i32, i32, i32
  }
  func.func @transform_2(%arg0: i32) -> (i32, i32, i32) {
    %c0_i32 = arith.constant 0 : i32
    %c0_i32_0 = arith.constant 0 : i32
    %c0_i32_1 = arith.constant 0 : i32
    return %arg0, %c0_i32, %c0_i32_0 : i32, i32, i32
  }
  func.func @transform_3(%arg0: i32) -> (i32, i32, i32) {
    %c0_i32 = arith.constant 0 : i32
    %c0_i32_0 = arith.constant 0 : i32
    %c0_i32_1 = arith.constant 0 : i32
    return %arg0, %c0_i32, %c0_i32_0 : i32, i32, i32
  }
  func.func @transform_4(%arg0: i32) -> (i32, i32, i32, i32, i32) {
    %c0_i32 = arith.constant 0 : i32
    %c0_i32_0 = arith.constant 0 : i32
    %c0_i32_1 = arith.constant 0 : i32
    %c0_i32_2 = arith.constant 0 : i32
    %c0_i32_3 = arith.constant 0 : i32
    %c0_i32_4 = arith.constant 0 : i32
    return %c0_i32, %c0_i32_0, %c0_i32_1, %c0_i32_2, %c0_i32_3 : i32, i32, i32, i32, i32
  }
  func.func @transform_5(%arg0: i32) -> (i32, i32, i32, i32) {
    %c0_i32 = arith.constant 0 : i32
    %c0_i32_0 = arith.constant 0 : i32
    %c0_i32_1 = arith.constant 0 : i32
    %c0_i32_2 = arith.constant 0 : i32
    %c0_i32_3 = arith.constant 0 : i32
    return %c0_i32, %c0_i32_0, %c0_i32_1, %c0_i32_2 : i32, i32, i32, i32
  }
  func.func @transform_6(%arg0: i32) -> (i32, i32, i32) {
    %c0_i32 = arith.constant 0 : i32
    %c0_i32_0 = arith.constant 0 : i32
    %c0_i32_1 = arith.constant 0 : i32
    %c0_i32_2 = arith.constant 0 : i32
    return %c0_i32, %c0_i32_0, %c0_i32_1 : i32, i32, i32
  }
  func.func @transform_7(%arg0: i32) -> (i32, i32, i32) {
    %c0_i32 = arith.constant 0 : i32
    %c0_i32_0 = arith.constant 0 : i32
    %c0_i32_1 = arith.constant 0 : i32
    %c0_i32_2 = arith.constant 0 : i32
    return %c0_i32, %c0_i32_0, %c0_i32_1 : i32, i32, i32
  }
  func.func @transform_8(%arg0: i32) -> (i32, i32, i32, i32, i32) {
    %c0_i32 = arith.constant 0 : i32
    %c0_i32_0 = arith.constant 0 : i32
    %c0_i32_1 = arith.constant 0 : i32
    %c0_i32_2 = arith.constant 0 : i32
    %c0_i32_3 = arith.constant 0 : i32
    %c0_i32_4 = arith.constant 0 : i32
    return %c0_i32, %c0_i32_0, %c0_i32_1, %c0_i32_2, %c0_i32_3 : i32, i32, i32, i32, i32
  }
  func.func @transform_9(%arg0: i32) -> (i32, i32, i32, i32) {
    %c0_i32 = arith.constant 0 : i32
    %c0_i32_0 = arith.constant 0 : i32
    %c0_i32_1 = arith.constant 0 : i32
    %c0_i32_2 = arith.constant 0 : i32
    %c0_i32_3 = arith.constant 0 : i32
    return %c0_i32, %c0_i32_0, %c0_i32_1, %c0_i32_2 : i32, i32, i32, i32
  }
  func.func @transform_10(%arg0: i32) -> (i32, i32, i32) {
    %c0_i32 = arith.constant 0 : i32
    %c0_i32_0 = arith.constant 0 : i32
    %c0_i32_1 = arith.constant 0 : i32
    %c0_i32_2 = arith.constant 0 : i32
    return %c0_i32, %c0_i32_0, %c0_i32_1 : i32, i32, i32
  }
  func.func @transform_11(%arg0: i32) -> (i32, i32, i32) {
    %c0_i32 = arith.constant 0 : i32
    %c0_i32_0 = arith.constant 0 : i32
    %c0_i32_1 = arith.constant 0 : i32
    %c0_i32_2 = arith.constant 0 : i32
    return %c0_i32, %c0_i32_0, %c0_i32_1 : i32, i32, i32
  }
  func.func @transform_12(%arg0: i32) -> (i32, i32, i32) {
    %c0_i32 = arith.constant 0 : i32
    %c0_i32_0 = arith.constant 0 : i32
    %c0_i32_1 = arith.constant 0 : i32
    %c0_i32_2 = arith.constant 0 : i32
    return %c0_i32, %c0_i32_0, %c0_i32_1 : i32, i32, i32
  }
  func.func @transform_13(%arg0: i32) -> (i32, i32, i32) {
    %c0_i32 = arith.constant 0 : i32
    %c0_i32_0 = arith.constant 0 : i32
    %c0_i32_1 = arith.constant 0 : i32
    %c0_i32_2 = arith.constant 0 : i32
    return %c0_i32, %c0_i32_0, %c0_i32_1 : i32, i32, i32
  }
  func.func @transform_14(%arg0: i32) -> (i32, i32, i32) {
    %c0_i32 = arith.constant 0 : i32
    %c0_i32_0 = arith.constant 0 : i32
    %c0_i32_1 = arith.constant 0 : i32
    %c0_i32_2 = arith.constant 0 : i32
    return %c0_i32, %c0_i32_0, %c0_i32_1 : i32, i32, i32
  }
  func.func @transform_15(%arg0: i32) -> (i32, i32, i32) {
    %c0_i32 = arith.constant 0 : i32
    %c0_i32_0 = arith.constant 0 : i32
    %c0_i32_1 = arith.constant 0 : i32
    %c0_i32_2 = arith.constant 0 : i32
    return %c0_i32, %c0_i32_0, %c0_i32_1 : i32, i32, i32
  }
  func.func @transform_16(%arg0: i32) -> (i32, i32, i32) {
    %c0_i32 = arith.constant 0 : i32
    %c0_i32_0 = arith.constant 0 : i32
    %c0_i32_1 = arith.constant 0 : i32
    %c0_i32_2 = arith.constant 0 : i32
    return %c0_i32, %c0_i32_0, %c0_i32_1 : i32, i32, i32
  }
  func.func @transform_17(%arg0: i32) -> (i32, i32, i32) {
    %c0_i32 = arith.constant 0 : i32
    %c0_i32_0 = arith.constant 0 : i32
    %c0_i32_1 = arith.constant 0 : i32
    %c0_i32_2 = arith.constant 0 : i32
    return %c0_i32, %c0_i32_0, %c0_i32_1 : i32, i32, i32
  }
  func.func @transform_18(%arg0: i32) -> (i32, i32, i32) {
    %c0_i32 = arith.constant 0 : i32
    %c0_i32_0 = arith.constant 0 : i32
    %c0_i32_1 = arith.constant 0 : i32
    return %arg0, %c0_i32, %c0_i32_0 : i32, i32, i32
  }
}

</mosaic_0001>

<bundles_post_ra>
// kernel: tpu_custom_call.1
= control target key start
LH: loop header
LB: loop body
LE: loop exit
PB: predicated region body
PF: predicated region fallthrough
CT: control target
= control target key end

     0   :  { %s6075_s0 = inlined_call_operand.vmem [shape: f32[2,8,32], index: 0, kind: input, shape index: {}]   ;;  %s6076_s1 = inlined_call_operand.vmem [shape: bf16[2,16,32], index: 1, kind: input, shape index: {}]   ;;  %s6077_s2 = inlined_call_operand.vmem [shape: f32[2,8,8], index: 2, kind: input, shape index: {}]   ;;  %s6078_s3 = inlined_call_operand.vmem [shape: f32[2,8,16], index: 3, kind: input, shape index: {}]   ;;  %s6079_s4 = inlined_call_operand.vmem [shape: bf16[2,3,4,32,8], index: 4, kind: input, shape index: {}]   ;;  %s6080_s5 = inlined_call_operand.vmem [shape: bf16[2,4,8,32], index: 5, kind: input, shape index: {}]   ;;  %s6081_s6 = inlined_call_operand.vmem [shape: f32[2,1,32], index: 6, kind: input, shape index: {}]   ;;  %s6082_s7 = inlined_call_operand.vmem [shape: f32[2,1,32], index: 7, kind: input, shape index: {}]   ;;  %s6083_s8 = inlined_call_operand.vmem [shape: bf16[2,3,4,32,8], index: 8, kind: input, shape index: {}]   ;;  %s6084_s9 = inlined_call_operand.vmem [shape: bf16[2,4,8,32], index: 9, kind: input, shape index: {}]   ;;  %s6085_s10 = inlined_call_operand.vmem [shape: f32[2,1,32], index: 10, kind: input, shape index: {}]   ;;  %s6086_s11 = inlined_call_operand.vmem [shape: f32[2,1,32], index: 11, kind: input, shape index: {}]   ;;  %s6087_s12 = inlined_call_operand.vmem [shape: bf16[2,32,64], index: 12, kind: input, shape index: {}]   ;;  %s6088_s13 = inlined_call_operand.vmem [shape: f32[2,1,64], index: 13, kind: input, shape index: {}]   ;;  %s6089_s14 = inlined_call_operand.vmem [shape: bf16[2,64,32], index: 14, kind: input, shape index: {}]   ;;  %s6090_s15 = inlined_call_operand.vmem [shape: f32[2,1,32], index: 15, kind: input, shape index: {}]   ;;  %s6091_s16 = inlined_call_operand.vmem [shape: f32[2,1,32], index: 16, kind: input, shape index: {}]   ;;  %s6092_s17 = inlined_call_operand.vmem [shape: f32[2,1,32], index: 17, kind: input, shape index: {}]   ;;  %s6093_s18 = inlined_call_operand.hbm [shape: f32[2,8,32], index: 18, kind: output, shape index: {}]  }
   0x1   :  { %6099 = sst [smem:[#allocation10_spill]] %s6075_s0 }
   0x2   :  { %6100 = sst [smem:[#allocation11_spill]] %s6076_s1 }
   0x3   :  { %6101 = sst [smem:[#allocation12_spill]] %s6077_s2 }
   0x4   :  { %6102 = sst [smem:[#allocation13_spill]] %s6078_s3 }
   0x5   :  { %23 = vsyncpa [#allocation3], 0 }
   0x6   :  { %25 = vsyncpa [#allocation3 + $0x1], 0  ;;  %s5220_s27 = smov 0   ;;  %s5222_s28 = smov 0  }
   0x7   :  { %s5224_s29 = smov 0   ;;  %s5226_s30 = smov 0  }
   0x8 LB: > { %6103 = sst [smem:[#allocation5_spill]] %s5110_s27  ;;  %s5241_s0 = sadd.s32 4294967295, %s5122_s30   ;;  %s5122_s30 = sphi %s5226_s30, %s6116_s30   ;;  %s5118_s29 = sphi %s5224_s29, %s6118_s29   ;;  %s5114_s28 = sphi %s5222_s28, %s6120_s28   ;;  %s5110_s27 = sphi %s5220_s27, %s6119_s27  }
   0x9   : > { %6104 = sst [smem:[#allocation6_spill]] %s5118_s29  ;;  %s4047_s19 = sadd.s32 4294967294, %s5122_s30  }
   0xa   : > { %s5245_s1 = sadd.s32 1, %s5122_s30   ;;  %s436_s20 = sadd.s32 1, %s5118_s29 }
   0xb   : > { %6105 = sst [smem:[#allocation7_spill]] %s5245_s1  ;;  %s433_s21 = ssub.s32 %s5122_s30, %s5245_s1 }
   0xc   : > { %p446_p0 = scmp.ne.s32.totalorder %s5118_s29, %s5114_s28  ;;  %p434_p1 = scmp.eq.s32.totalorder %s433_s21, 0 }
   0xd   : > { %p447_p2 = scmp.eq.s32.totalorder %s5241_s0, 1  ;;  %p452_p3 = scmp.ne.s32.totalorder %s5114_s28, %s5110_s27 }
   0xe   : > { %p453_p4 = scmp.eq.s32.totalorder %s4047_s19, 1  ;;  %p4050_p7 = scmp.ge.s32.totalorder %s5122_s30, 1 }
   0xf   : > { %s5256_s22 = scalar_select %p434_p1, %s5118_s29, %s436_s20  }
  0x10   : > { %p5258_p5 = por %p447_p2, %p446_p0  ;;  %p5262_p6 = por %p453_p4, %p452_p3 }
  0x11   : > { %6106 = sst [smem:[#allocation8_spill]] %s5256_s22  ;;  %p542_p8 = scmp.lt.s32.totalorder %s5122_s30, 3 }
  0x12   : > { %s6108_s23 = scalar_select %p5262_p6, 1, 0 }
  0x13   : > { %p543_p9 = pnand %p4050_p7, %p542_p8 }
  0x14   : > { %6109 = sst [smem:[#allocation9_spill]] %s6108_s23  ;;  %p608_p10 = scmp.lt.s32.totalorder (!%p543_p9), %s5241_s0, 1 }
  0x15   : > { %546 = sbr.rel (%p543_p9) target bundleno = 11460 (0x2cc4), region = 92  ;;  %s6110_s27 = sld [smem:[#allocation10_spill]] (!%p543_p9) }
  0x16   : > { %s6111_s20 = sld [smem:[#allocation12_spill]] (!%p543_p9)  ;;  %s605_s23 = sand.u32 (!%p543_p9), 1, %s5114_s28  }
  0x17   : > { %s6113_s3 = sld [smem:[#allocation13_spill]] (!%p543_p9)  ;;  %s4812_s19 = sshll.u32 (!%p543_p9), %s5241_s0, 3 }
  0x18   : > { %s3947_s29 = scalar_lea.hbm (!%p543_p9), %s6093_s18, %s4812_s19 }
  0x1a   : > { %v4818_v0 = vld [vmem:[%s6079_s4 + $0x8] sm:$0xff]  ;;  %v4817_v2 = vld [vmem:[%s6079_s4] sm:$0xff]  ;;  %s609_s1 = scalar_select %p608_p10, %s5241_s0, 1  ;;  %vm648_vm0 = vcmask 261120   ;;  %vm727_vm1 = vcmask 64512   ;;  %v4826_v22 = vld [vmem:[%s6079_s4 + $0x58] sm:$0xff] }
  0x1b   : > { %v4820_v1 = vld [vmem:[%s6079_s4 + $0x48] sm:$0xff]  ;;  %658 = vmatpush.bf16.msra.mxu0 %v4818_v0  ;;  %v4819_v3 = vld [vmem:[%s6079_s4 + $0x40] sm:$0xff]  ;;  %v4825_v23 = vld [vmem:[%s6079_s4 + $0x50] sm:$0xff]  ;;  %vm779_vm2 = vcmask 1043456  }
  0x1c   : > { %688 = vmatpush.bf16.msra.mxu1 %v4820_v1  ;;  %s5282_s24 = sshll.u32 %s609_s1, 3  ;;  %v4822_v13 = vld [vmem:[%s6079_s4 + $0x88] sm:$0xff]  ;;  %v4821_v14 = vld [vmem:[%s6079_s4 + $0x80] sm:$0xff]  ;;  %v4824_v24 = vld [vmem:[%s6079_s4 + $0x18] sm:$0xff] }
  0x1d   : > { %s611_s26 = scalar_lea.vmem %s6110_s27, %s5282_s24  ;;  %718 = vmatpush.bf16.msra.mxu2 %v4822_v13  ;;  %s620_s21 = scalar_lea.vmem %s6111_s20, %s5282_s24  ;;  %v4823_v25 = vld [vmem:[%s6079_s4 + $0x10] sm:$0xff]  ;;  %v4828_v42 = vld [vmem:[%s6079_s4 + $0x98] sm:$0xff]  ;;  %v796_v57 = vld [vmem:[%s6080_s5] sm:$0xf] }
  0x1e   : > { %v5288_v4 = vld [vmem:[%s611_s26] sm:$0xff]  ;;  %v4827_v45 = vld [vmem:[%s6079_s4 + $0x90] sm:$0xff]  ;;  %v982_v58 = vsel %vm779_vm2, %v796_v57, 0  ;;  %s6112_s20 = sld [smem:[#allocation11_spill]]  ;;  %s624_s27 = scalar_lea.vmem %s6113_s3, %s5282_s24 }
  0x1f   : > { %659 = vmatpush.bf16.msra.mxu0 %v4817_v2  ;;  %v5292_v5 = vpack.c.bf16 %v5288_v4, %v5288_v4  ;;  %v629_v15 = vld [vmem:[%s620_s21] sm:$0xff]  ;;  %s3951_s3 = sshll.u32 %s3947_s29, 4  ;;  %s3952_s3 = int_to_ptr.hbm [resolvable:$true] %s3951_s3 }
  0x20   : > { %689 = vmatpush.bf16.msra.mxu1 %v4819_v3  ;;  %v5312_v16 = vmul.f32 -1e+09, %v629_v15  ;;  %s5074_s25 = sshra.s32 %s3952_s3, 4  ;;  %s5075_s25 = int_to_ptr.hbm [resolvable:$true] %s5074_s25 }
  0x21   : > { %719 = vmatpush.bf16.msra.mxu2 %v4821_v14  ;;  %s5076_s19 = scalar_lea.hbm %s5075_s25, 8  ;;  %p5081_p0 = scmp.lt.s32.totalorder %s5075_s25, %s6093_s18 }
  0x22   : > { %4065 = vmatmul.msk.bf16.vlgmr.msra.gmra.mxu0 %vm648_vm0, %v5292_v5  ;;  %p5077_p11 = scmp.ne.s32.totalorder %s5075_s25, %s5076_s19 }
  0x23   : > { %4078 = vmatmul.msk.bf16.vlgmr.msra.gmra.mxu1 %vm648_vm0, %v5292_v5 }
  0x24   : > { %4091 = vmatmul.msk.bf16.vlgmr.msra.gmra.mxu2 %vm648_vm0, %v5292_v5  ;;  %821 = vmatpush.bf16.msrb.mxu1 %v4824_v24  ;;  %s5451_s21 = scalar_lea.vmem %s6112_s20, %s5282_s24  ;;  %s4051_s24 = sshll.u32 %s605_s23, 3 }
  0x25   : > { %851 = vmatpush.bf16.msrb.mxu2 %v4826_v22  ;;  %s607_s22 = scalar_lea.vmem [#allocation2], %s4051_s24  ;;  %s3937_s20 = scalar_lea.sflag [#allocation3], %s605_s23 }
  0x26   : > { %s3949_s0 = sshll.u32 %s607_s22, 4  ;;  %p5078_p12 = pnand %p5077_p11, %p5258_p5  ;;  %s3950_s0 = int_to_ptr.vmem [resolvable:$true] %s3949_s0 }
  0x27   : > { %s5080_s24 = scalar_lea.hbm %s6093_s18, 16 }
  0x28   : > { %822 = vmatpush.bf16.msrb.mxu1 %v4823_v25  ;;  %p5079_p13 = pneg %p5078_p12  ;;  %p5082_p1 = scmp.lt.s32.totalorder %s5080_s24, %s5076_s19 }
  0x29   : > { %852 = vmatpush.bf16.msrb.mxu2 %v4825_v23 }
  0x2a   : > { %p5083_p2 = por %p5082_p1, %p5081_p0 }
  0x2c   : > { %p5084_p3 = pnand %p5083_p2, %p5079_p13 }
  0x33   : > { %4106 = vmatmul.msk.bf16.vlgmr.msrb.gmra.mxu1 %vm648_vm0, %v5292_v5 }
  0x34   : > { %4119 = vmatmul.msk.bf16.vlgmr.msrb.gmra.mxu2 %vm648_vm0, %v5292_v5 }
  0x9f   : > { %v661_v6 = vpop.f32.mrf.mxu0 }
  0xa0   : > { %v691_v7 = vpop.f32.mrf.mxu1  ;;  %v725_v10 = vpack.c.bf16 %v661_v6, %v661_v6 }
  0xa1   : > { %v726_v8 = vpack.c.bf16 %v691_v7, %v691_v7 }
  0xa3   : > { %v732_v9 = vsel %vm727_vm1, %v726_v8, 0 }
  0xa4   : > { %741 = vmatpush.bf16.xpose.msra.mxu3 %v732_v9 }
  0xa7   : > { %v663_v11 = vpop.f32.mrf.mxu0  ;;  %v721_v31 = vpop.f32.mrf.mxu2 }
  0xa8   : > { %v693_v12 = vpop.f32.mrf.mxu1  ;;  %v775_v33 = vpack.c.bf16 %v721_v31, %v721_v31 }
  0xaa   : > { %v781_v34 = vsel %vm779_vm2, %v775_v33, 0 }
  0xab   : > { %4092 = vmatmul.msk.bf16.vlgmr.msra.gmra.mxu3 %vm727_vm1, %v725_v10  ;;  %790 = vmatpush.bf16.msrb.mxu0 %v781_v34  ;;  %v4135_v34 = vld [vmem:[%s6080_s5 + $0x4] sm:$0xf] }
  0xac   : > { %881 = vmatpush.bf16.msrb.mxu3 %v4828_v42 }
  0xaf   : > { %v723_v32 = vpop.f32.mrf.mxu2 }
  0xb0   : > { %v824_v38 = vpop.f32.mrf.mxu1  ;;  %882 = vmatpush.bf16.msrb.mxu3 %v4827_v45 }
  0xb1   : > { %v888_v56 = vpack.c.bf16 %v824_v38, %v824_v38 }
  0xb4   : > { %991 = vmatpush.bf16.msra.mxu3 %v982_v58 }
  0xb7   : > { %v854_v35 = vpop.f32.mrf.mxu2 }
  0xb8   : > { %v889_v36 = vpack.c.bf16 %v854_v35, %v854_v35  ;;  %v826_v40 = vpop.f32.mrf.mxu1  ;;  %v963_v35 = vsel %vm779_vm2, %v4135_v34, 0 }
  0xb9   : > { %972 = vmatpush.bf16.msra.mxu2 %v963_v35 }
  0xba   : > { %v894_v37 = vsel %vm727_vm1, %v889_v36, 0 }
  0xbb   : > { %903 = vmatpush.bf16.xpose.msra.mxu0 %v894_v37  ;;  %4132 = vmatmul.msk.bf16.vlgmr.msrb.gmra.mxu3 %vm648_vm0, %v5292_v5 }
  0xbf   : > { %v856_v39 = vpop.f32.mrf.mxu2 }
 0x12e   : > { %v743_v17 = vpop.f32.mrf.mxu3 }
 0x12f   : > { %v747_v18 = vmul.f32 0.35355338, %v743_v17  ;;  %v4830_v17 = vld [vmem:[%s6079_s4 + $0x28] sm:$0xff] }
 0x131   : > { %v749_v19 = vadd.f32 %v5312_v16, %v747_v18  ;;  %v4832_v18 = vld [vmem:[%s6079_s4 + $0x68] sm:$0xff] }
 0x133   : > { %v750_v20 = vsel %vm727_vm1, %v749_v19, -inf }
 0x134   : > { %751 = vmax.xlane.f32.xlu0 %v750_v20  ;;  %v4831_v20 = vld [vmem:[%s6079_s4 + $0x60] sm:$0xff] }
 0x136   : > { %v745_v21 = vpop.f32.mrf.mxu3 }
 0x13e   : > { %v884_v59 = vpop.f32.mrf.mxu3 }
 0x13f   : > { %v936_v61 = vpack.c.bf16 %v884_v59, %v884_v59 }
 0x141   : > { %v941_v63 = vsel %vm779_vm2, %v936_v61, 0  ;;  %v4838_v61 = vld [vmem:[%s6079_s4 + $0x78] sm:$0xff] }
 0x142   : > { %950 = vmatpush.bf16.msra.mxu1 %v941_v63 }
 0x146   : > { %v886_v0 = vpop.f32.mrf.mxu3  ;;  %1050 = vmatpush.bf16.msrb.mxu1 %v4832_v18 }
 0x147   : > { %v4836_v0 = vld [vmem:[%s6079_s4 + $0x38] sm:$0xff] }
 0x14a   : > { %1051 = vmatpush.bf16.msrb.mxu1 %v4831_v20 }
 0x1a7   : > { %v752_v26 = vpop.xlane.xlu0 %751 }
 0x1a8   : > { %v753_v27 = vsub.f32 %v749_v19, %v752_v26  ;;  %v4829_v19 = vld [vmem:[%s6079_s4 + $0x20] sm:$0xff] }
 0x1aa   : > { %v754_v28 = vmul.f32 1.442695, %v753_v27 }
 0x1ac   : > { %4981 = vpow2.f32 %v754_v28 }
 0x1b2   : > { %v4982_v29 = vpop.eup %4981 }
 0x1b3   : > { %v756_v30 = vsel %vm727_vm1, %v4982_v29, 0.0 }
 0x1b4   : > { %757 = vadd.xlane.f32.xlu0 %v756_v30 }
 0x227   : > { %v758_v41 = vpop.xlane.xlu0 %757 }
 0x228   : > { %4983 = vrcp.f32 %v758_v41  ;;  %v770_v47 = vand.u32 2147483648, %v758_v41  ;;  %v768_v49 = vand.u32 2147483647, %v758_v41  ;;  %vm764_vm4 = vweird.f32 %v758_v41 }
 0x22a   : > { %v771_v51 = vor.u32 1.1754944e-38, %v770_v47  ;;  %vm769_vm6 = vcmp.eq.f32.partialorder %v768_v49, 8.507059e+37  ;;  %v4834_v47 = vld [vmem:[%s6079_s4 + $0xa8] sm:$0xff] }
 0x22b   : > { %1080 = vmatpush.bf16.msrb.mxu2 %v4834_v47 }
 0x22e   : > { %v4984_v43 = vpop.eup %4983 }
 0x22f   : > { %v760_v44 = vmul.f32 %v4984_v43, %v758_v41  ;;  %vm765_vm3 = vweird.f32 %v4984_v43 }
 0x230   : > { %vm766_vm5 = vmor %vm764_vm4, %vm765_vm3 }
 0x231   : > { %v761_v46 = vsub.f32 1.0, %v760_v44 }
 0x233   : > { %v762_v48 = vmul.f32 %v4984_v43, %v761_v46 }
 0x235   : > { %v763_v50 = vadd.f32 %v4984_v43, %v762_v48  ;;  %v4833_v48 = vld [vmem:[%s6079_s4 + $0xa0] sm:$0xff] }
 0x236   : > { %1081 = vmatpush.bf16.msrb.mxu2 %v4833_v48 }
 0x237   : > { %v767_v52 = vsel %vm766_vm5, %v4984_v43, %v763_v50 }
 0x238   : > { %v772_v53 = vsel %vm769_vm6, %v771_v51, %v767_v52 }
 0x239   : > { %v773_v54 = vmul.f32 %v4982_v29, %v772_v53 }
 0x23b   : > { %v774_v55 = vpack.c.bf16 %v773_v54, %v773_v54 }
 0x23d   : > { %4093 = vmatmul.msk.bf16.vlgmr.msrb.gmra.mxu0 %vm727_vm1, %v774_v55 }
 0x23e   : > { %1020 = vmatpush.bf16.msrb.mxu0 %v4830_v17 }
 0x242   : > { %1021 = vmatpush.bf16.msrb.mxu0 %v4829_v19 }
 0x24d   : > { %4133 = vmatmul.msk.bf16.vlgmr.msra.gmra.mxu0 %vm727_vm1, %v888_v56 }
 0x25d   : > { %4150 = vmatmul.msk.bf16.vlgmr.msrb.gmra.mxu0 %vm648_vm0, %v5292_v5 }
 0x2ba   : > { %v792_v60 = vpop.f32.mrf.mxu0 }
 0x2bb   : > { %v797_v62 = vpack.c.bf16 %v792_v60, %v792_v60 }
 0x2bd   : > { %4137 = vmatmul.msk.bf16.vlgmr.msra.gmra.mxu3 %vm727_vm1, %v797_v62  ;;  %v4837_v62 = vld [vmem:[%s6079_s4 + $0x70] sm:$0xff] }
 0x2c2   : > { %v794_v1 = vpop.f32.mrf.mxu0 }
 0x2ca   : > { %v905_v2 = vpop.f32.mrf.mxu0 }
 0x2cb   : > { %v909_v3 = vmul.f32 0.35355338, %v905_v2 }
 0x2cd   : > { %v910_v6 = vadd.f32 %v909_v3, %v5312_v16  ;;  %v4835_v3 = vld [vmem:[%s6079_s4 + $0x30] sm:$0xff] }
 0x2cf   : > { %v911_v7 = vsel %vm727_vm1, %v910_v6, -inf }
 0x2d0   : > { %912 = vmax.xlane.f32.xlu1 %v911_v7 }
 0x2d2   : > { %v907_v8 = vpop.f32.mrf.mxu0 }
 0x2da   : > { %v1023_v36 = vpop.f32.mrf.mxu0 }
 0x2db   : > { %v1087_v44 = vpack.c.bf16 %v1023_v36, %v1023_v36 }
 0x2e2   : > { %v1025_v37 = vpop.f32.mrf.mxu0 }
 0x340   : > { %v5353_v9 = vpop.f32.mrf.mxu3 }
 0x343   : > { %v913_v10 = vpop.xlane.xlu1 %912 }
 0x344   : > { %v914_v11 = vsub.f32 %v910_v6, %v913_v10  ;;  %v4179_v6 = vld [vmem:[%s6080_s5 + $0x8] sm:$0xf] }
 0x345   : > { %v1162_v7 = vsel %vm779_vm2, %v4179_v6, 0 }
 0x346   : > { %v915_v12 = vmul.f32 1.442695, %v914_v11 }
 0x348   : > { %4985 = vpow2.f32 %v915_v12  ;;  %v995_v13 = vpop.f32.mrf.mxu3 }
 0x34e   : > { %v4986_v14 = vpop.eup %4985 }
 0x34f   : > { %v917_v15 = vsel %vm727_vm1, %v4986_v14, 0.0 }
 0x350   : > { %918 = vadd.xlane.f32.xlu1 %v917_v15 }
 0x3c3   : > { %v919_v21 = vpop.xlane.xlu1 %918 }
 0x3c4   : > { %4987 = vrcp.f32 %v919_v21  ;;  %v931_v25 = vand.u32 2147483648, %v919_v21  ;;  %v929_v27 = vand.u32 2147483647, %v919_v21  ;;  %vm925_vm8 = vweird.f32 %v919_v21 }
 0x3c6   : > { %v932_v29 = vor.u32 1.1754944e-38, %v931_v25  ;;  %vm930_vm10 = vcmp.eq.f32.partialorder %v929_v27, 8.507059e+37 }
 0x3ca   : > { %v4988_v22 = vpop.eup %4987 }
 0x3cb   : > { %v921_v23 = vmul.f32 %v4988_v22, %v919_v21  ;;  %vm926_vm7 = vweird.f32 %v4988_v22 }
 0x3cc   : > { %vm927_vm9 = vmor %vm925_vm8, %vm926_vm7 }
 0x3cd   : > { %v922_v24 = vsub.f32 1.0, %v921_v23 }
 0x3cf   : > { %v923_v26 = vmul.f32 %v4988_v22, %v922_v24 }
 0x3d1   : > { %v924_v28 = vadd.f32 %v4988_v22, %v923_v26 }
 0x3d3   : > { %v928_v30 = vsel %vm927_vm9, %v4988_v22, %v924_v28 }
 0x3d4   : > { %v933_v31 = vsel %vm930_vm10, %v932_v29, %v928_v30  ;;  %vm1526_vm10 = vcmask 130048  }
 0x3d5   : > { %v934_v32 = vmul.f32 %v4986_v14, %v933_v31 }
 0x3d7   : > { %v935_v33 = vpack.c.bf16 %v934_v32, %v934_v32 }
 0x3d9   : > { %4134 = vmatmul.msk.bf16.vlgmr.msra.gmra.mxu1 %vm727_vm1, %v935_v33  ;;  %v4840_v33 = vld [vmem:[%s6079_s4 + $0xb8] sm:$0xff] }
 0x3da   : > { %1171 = vmatpush.bf16.msra.mxu1 %v1162_v7 }
 0x3e9   : > { %4163 = vmatmul.msk.bf16.vlgmr.msrb.gmra.mxu1 %vm648_vm0, %v5292_v5 }
 0x456   : > { %v952_v38 = vpop.f32.mrf.mxu1 }
 0x457   : > { %v958_v39 = vpack.c.bf16 %v952_v38, %v952_v38 }
 0x459   : > { %4136 = vmatmul.msk.bf16.vlgmr.msra.gmra.mxu2 %vm727_vm1, %v958_v39 }
 0x45a   : > { %1201 = vmatpush.bf16.msra.mxu2 %v4836_v0 }
 0x45e   : > { %v954_v40 = vpop.f32.mrf.mxu1  ;;  %1202 = vmatpush.bf16.msra.mxu2 %v4835_v3 }
 0x466   : > { %v1053_v41 = vpop.f32.mrf.mxu1 }
 0x467   : > { %v1088_v42 = vpack.c.bf16 %v1053_v41, %v1053_v41 }
 0x469   : > { %v1093_v43 = vsel %vm727_vm1, %v1088_v42, 0  ;;  %4176 = vmatmul.msk.bf16.vlgmr.msrb.gmra.mxu2 %vm648_vm0, %v5292_v5 }
 0x46a   : > { %1102 = vmatpush.bf16.xpose.msrb.mxu3 %v1093_v43  ;;  %v4839_v43 = vld [vmem:[%s6079_s4 + $0xb0] sm:$0xff] }
 0x46e   : > { %v1055_v45 = vpop.f32.mrf.mxu1 }
 0x471   : > { %4177 = vmatmul.msk.bf16.vlgmr.msrb.gmra.mxu3 %vm727_vm1, %v1087_v44 }
 0x472   : > { %1231 = vmatpush.bf16.msra.mxu3 %v4838_v61 }
 0x476   : > { %1232 = vmatpush.bf16.msra.mxu3 %v4837_v62 }
 0x479   : > { %4193 = vmatmul.msk.bf16.vlgmr.msra.gmra.mxu2 %vm648_vm0, %v5292_v5 }
 0x481   : > { %4206 = vmatmul.msk.bf16.vlgmr.msra.gmra.mxu3 %vm648_vm0, %v5292_v5 }
 0x4dc   : > { %v5380_v46 = vpop.f32.mrf.mxu2 }
 0x4dd   : > { %v994_v34 = vadd.f32 %v5353_v9, %v5380_v46 }
 0x4e4   : > { %v976_v49 = vpop.f32.mrf.mxu2 }
 0x4ec   : > { %v1083_v60 = vpop.f32.mrf.mxu2 }
 0x4ed   : > { %v1135_v1 = vpack.c.bf16 %v1083_v60, %v1083_v60 }
 0x4ef   : > { %v1140_v2 = vsel %vm779_vm2, %v1135_v1, 0 }
 0x4f0   : > { %1149 = vmatpush.bf16.msra.mxu0 %v1140_v2 }
 0x4f4   : > { %v1104_v50 = vpop.f32.mrf.mxu3  ;;  %v1085_v63 = vpop.f32.mrf.mxu2  ;;  %1261 = vmatpush.bf16.msrb.mxu0 %v4840_v33 }
 0x4f5   : > { %v1108_v51 = vmul.f32 0.35355338, %v1104_v50 }
 0x4f7   : > { %v1109_v52 = vadd.f32 %v1108_v51, %v5312_v16 }
 0x4f8   : > { %1262 = vmatpush.bf16.msrb.mxu0 %v4839_v43  ;;  %v4966_v43 = vld [vmem:[%s6082_s7] ss:$0 sm:$0xff] }
 0x4f9   : > { %v1110_v53 = vsel %vm727_vm1, %v1109_v52, -inf }
 0x4fa   : > { %1111 = vmax.xlane.f32.xlu2 %v1110_v53 }
 0x4fc   : > { %v1106_v54 = vpop.f32.mrf.mxu3  ;;  %v1204_v26 = vpop.f32.mrf.mxu2 }
 0x4fd   : > { %v1268_v32 = vpack.c.bf16 %v1204_v26, %v1204_v26  ;;  %v4843_v26 = vld [vmem:[%s6083_s8 + $0x40] sm:$0xff] }
 0x504   : > { %v1234_v23 = vpop.f32.mrf.mxu3  ;;  %v1206_v28 = vpop.f32.mrf.mxu2 }
 0x505   : > { %v1269_v24 = vpack.c.bf16 %v1234_v23, %v1234_v23  ;;  %v4842_v28 = vld [vmem:[%s6083_s8 + $0x8] sm:$0xff] }
 0x507   : > { %v1274_v25 = vsel %vm727_vm1, %v1269_v24, 0 }
 0x508   : > { %1283 = vmatpush.bf16.xpose.msrb.mxu1 %v1274_v25 }
 0x50c   : > { %v1236_v27 = vpop.f32.mrf.mxu3 }
 0x50d   : > { %v5457_v27 = vld [vmem:[%s5451_s21] sm:$0xff] }
 0x56d   : > { %v1112_v55 = vpop.xlane.xlu2 %1111 }
 0x56e   : > { %v1113_v56 = vsub.f32 %v1109_v52, %v1112_v55  ;;  %v4222_v52 = vld [vmem:[%s6080_s5 + $0xc] sm:$0xf] }
 0x570   : > { %v1114_v57 = vmul.f32 1.442695, %v1113_v56 }
 0x572   : > { %4989 = vpow2.f32 %v1114_v57 }
 0x578   : > { %v4990_v58 = vpop.eup %4989 }
 0x579   : > { %v1116_v59 = vsel %vm727_vm1, %v4990_v58, 0.0 }
 0x57a   : > { %1117 = vadd.xlane.f32.xlu2 %v1116_v59 }
 0x5ed   : > { %v1118_v8 = vpop.xlane.xlu2 %1117 }
 0x5ee   : > { %4991 = vrcp.f32 %v1118_v8  ;;  %v1130_v13 = vand.u32 2147483648, %v1118_v8  ;;  %v1128_v15 = vand.u32 2147483647, %v1118_v8  ;;  %vm1124_vm12 = vweird.f32 %v1118_v8 }
 0x5f0   : > { %v1131_v18 = vor.u32 1.1754944e-38, %v1130_v13  ;;  %vm1129_vm14 = vcmp.eq.f32.partialorder %v1128_v15, 8.507059e+37  ;;  %v5124_v13 = vmov 32.0  }
 0x5f4   : > { %v4992_v10 = vpop.eup %4991 }
 0x5f5   : > { %v1120_v11 = vmul.f32 %v4992_v10, %v1118_v8  ;;  %vm1125_vm11 = vweird.f32 %v4992_v10 }
 0x5f6   : > { %vm1126_vm13 = vmor %vm1124_vm12, %vm1125_vm11 }
 0x5f7   : > { %v1121_v12 = vsub.f32 1.0, %v1120_v11 }
 0x5f9   : > { %v1122_v14 = vmul.f32 %v4992_v10, %v1121_v12 }
 0x5fb   : > { %v1123_v17 = vadd.f32 %v4992_v10, %v1122_v14  ;;  %v4844_v14 = vld [vmem:[%s6083_s8 + $0x48] sm:$0xff] }
 0x5fd   : > { %v1127_v19 = vsel %vm1126_vm13, %v4992_v10, %v1123_v17 }
 0x5fe   : > { %v1132_v20 = vsel %vm1129_vm14, %v1131_v18, %v1127_v19 }
 0x5ff   : > { %v1133_v21 = vmul.f32 %v4990_v58, %v1132_v20 }
 0x601   : > { %v1134_v22 = vpack.c.bf16 %v1133_v21, %v1133_v21 }
 0x603   : > { %4178 = vmatmul.msk.bf16.vlgmr.msra.gmra.mxu0 %vm727_vm1, %v1134_v22 }
 0x604   : > { %1425 = vmatpush.bf16.msra.mxu0 %v4842_v28 }
 0x613   : > { %4219 = vmatmul.msk.bf16.vlgmr.msrb.gmra.mxu0 %vm648_vm0, %v5292_v5  ;;  %v1343_v5 = vsel %vm779_vm2, %v4222_v52, 0 }
 0x614   : > { %1352 = vmatpush.bf16.msrb.mxu3 %v1343_v5 }
 0x680   : > { %v1151_v29 = vpop.f32.mrf.mxu0 }
 0x681   : > { %v1157_v30 = vpack.c.bf16 %v1151_v29, %v1151_v29  ;;  %v4848_v29 = vld [vmem:[%s6083_s8 + $0x18] sm:$0xff] }
 0x683   : > { %4180 = vmatmul.msk.bf16.vlgmr.msra.gmra.mxu1 %vm727_vm1, %v1157_v30  ;;  %v4841_v30 = vld [vmem:[%s6083_s8] sm:$0xff] }
 0x684   : > { %1463 = vmatpush.bf16.msra.mxu1 %v4844_v14  ;;  %1426 = vmatpush.bf16.msra.mxu0 %v4841_v30 }
 0x688   : > { %v1153_v31 = vpop.f32.mrf.mxu0  ;;  %1464 = vmatpush.bf16.msra.mxu1 %v4843_v26 }
 0x689   : > { %v4847_v31 = vld [vmem:[%s6083_s8 + $0x10] sm:$0xff] }
 0x690   : > { %v1264_v48 = vpop.f32.mrf.mxu0 }
 0x691   : > { %v1316_v50 = vpack.c.bf16 %v1264_v48, %v1264_v48 }
 0x693   : > { %4220 = vmatmul.msk.bf16.vlgmr.msrb.gmra.mxu1 %vm727_vm1, %v1268_v32  ;;  %v1321_v51 = vsel %vm779_vm2, %v1316_v50, 0 }
 0x694   : > { %1330 = vmatpush.bf16.msrb.mxu2 %v1321_v51  ;;  %1594 = vmatpush.bf16.msrb.mxu1 %v4848_v29 }
 0x698   : > { %v1266_v49 = vpop.f32.mrf.mxu0  ;;  %1595 = vmatpush.bf16.msrb.mxu1 %v4847_v31  ;;  %v4854_v31 = vld [vmem:[%s6083_s8 + $0x28] sm:$0xff] }
 0x6a3   : > { %4249 = vmatmul.msk.bf16.vlgmr.msra.gmra.mxu1 %vm648_vm0, %v5457_v27 }
 0x700   : > { %v1173_v35 = vpop.f32.mrf.mxu1 }
 0x701   : > { %v1177_v36 = vadd.f32 %v1173_v35, %v994_v34 }
 0x708   : > { %v1175_v37 = vpop.f32.mrf.mxu1 }
 0x710   : > { %v1285_v38 = vpop.f32.mrf.mxu1 }
 0x711   : > { %v1289_v39 = vmul.f32 0.35355338, %v1285_v38 }
 0x713   : > { %v1290_v40 = vadd.f32 %v1289_v39, %v5312_v16 }
 0x715   : > { %v1291_v41 = vsel %vm727_vm1, %v1290_v40, -inf }
 0x716   : > { %1292 = vmax.xlane.f32.xlu0 %v1291_v41  ;;  %v4965_v41 = vld [vmem:[%s6081_s6] ss:$0 sm:$0xff] }
 0x718   : > { %v1287_v42 = vpop.f32.mrf.mxu1 }
 0x789   : > { %v1293_v9 = vpop.xlane.xlu0 %1292 }
 0x78a   : > { %v1294_v44 = vsub.f32 %v1290_v40, %v1293_v9 }
 0x78c   : > { %v1295_v45 = vmul.f32 1.442695, %v1294_v44 }
 0x78e   : > { %4993 = vpow2.f32 %v1295_v45 }
 0x794   : > { %v4994_v46 = vpop.eup %4993 }
 0x795   : > { %v1297_v47 = vsel %vm727_vm1, %v4994_v46, 0.0 }
 0x796   : > { %1298 = vadd.xlane.f32.xlu1 %v1297_v47  ;;  %v1466_v47 = vpop.f32.mrf.mxu1 }
 0x79e   : > { %v1468_v48 = vpop.f32.mrf.mxu1 }
 0x79f   : > { %v1503_v49 = vpack.c.bf16 %v1468_v48, %v1466_v47 }
 0x7a1   : > { %v1508_v50 = vsel %vm727_vm1, %v1503_v49, 0 }
 0x7a2   : > { %1517 = vmatpush.bf16.xpose.msra.mxu3 %v1508_v50 }
 0x809   : > { %v1299_v53 = vpop.xlane.xlu1 %1298 }
 0x80a   : > { %4995 = vrcp.f32 %v1299_v53  ;;  %v1311_v57 = vand.u32 2147483648, %v1299_v53  ;;  %v1309_v59 = vand.u32 2147483647, %v1299_v53  ;;  %vm1305_vm3 = vweird.f32 %v1299_v53 }
 0x80b   : > { %4997 = vrcp.f32 %v5124_v13 }
 0x80c   : > { %v1312_v61 = vor.u32 1.1754944e-38, %v1311_v57  ;;  %vm1310_vm5 = vcmp.eq.f32.partialorder %v1309_v59, 8.507059e+37  ;;  %v630_v57 = vld [vmem:[%s624_s27] sm:$0xff] }
 0x810   : > { %v4996_v54 = vpop.eup %4995 }
 0x811   : > { %v1301_v55 = vmul.f32 %v4996_v54, %v1299_v53  ;;  %vm1306_vm15 = vweird.f32 %v4996_v54  ;;  %v4998_v15 = vpop.eup %4997 }
 0x812   : > { %vm1307_vm4 = vmor %vm1305_vm3, %vm1306_vm15  ;;  %v1366_v17 = vmul.f32 32.0, %v4998_v15  ;;  %vm1370_vm6 = vweird.f32 %v4998_v15 }
 0x813   : > { %v1302_v56 = vsub.f32 1.0, %v1301_v55  ;;  %v4846_v55 = vld [vmem:[%s6083_s8 + $0x88] sm:$0xff] }
 0x814   : > { %v1367_v18 = vsub.f32 1.0, %v1366_v17  ;;  %1494 = vmatpush.bf16.msra.mxu2 %v4846_v55 }
 0x815   : > { %v1303_v58 = vmul.f32 %v4996_v54, %v1302_v56  ;;  %v4845_v56 = vld [vmem:[%s6083_s8 + $0x80] sm:$0xff] }
 0x816   : > { %v1368_v19 = vmul.f32 %v4998_v15, %v1367_v18 }
 0x817   : > { %v1304_v60 = vadd.f32 %v4996_v54, %v1303_v58  ;;  %v5506_v58 = vmul.f32 -1e+09, %v630_v57 }
 0x818   : > { %v1369_v20 = vadd.f32 %v4998_v15, %v1368_v19  ;;  %1495 = vmatpush.bf16.msra.mxu2 %v4845_v56 }
 0x819   : > { %v1308_v62 = vsel %vm1307_vm4, %v4996_v54, %v1304_v60 }
 0x81a   : > { %v1313_v63 = vsel %vm1310_vm5, %v1312_v61, %v1308_v62  ;;  %v5443_v21 = vsel %vm1370_vm6, %v4998_v15, %v1369_v20 }
 0x81b   : > { %v1314_v0 = vmul.f32 %v4994_v46, %v1313_v63 }
 0x81d   : > { %v1315_v1 = vpack.c.bf16 %v1314_v0, %v1314_v0  ;;  %v4850_v0 = vld [vmem:[%s6083_s8 + $0x58] sm:$0xff] }
 0x81f   : > { %4221 = vmatmul.msk.bf16.vlgmr.msrb.gmra.mxu2 %vm727_vm1, %v1315_v1  ;;  %v4849_v1 = vld [vmem:[%s6083_s8 + $0x50] sm:$0xff] }
 0x820   : > { %1624 = vmatpush.bf16.msrb.mxu2 %v4850_v0 }
 0x824   : > { %1625 = vmatpush.bf16.msrb.mxu2 %v4849_v1 }
 0x82f   : > { %4262 = vmatmul.msk.bf16.vlgmr.msra.gmra.mxu2 %vm648_vm0, %v5457_v27 }
 0x83f   : > { %4290 = vmatmul.msk.bf16.vlgmr.msrb.gmra.mxu2 %vm648_vm0, %v5457_v27 }
 0x8a2   : > { %v1332_v2 = vpop.f32.mrf.mxu2 }
 0x8a3   : > { %v1338_v3 = vpack.c.bf16 %v1332_v2, %v1332_v2 }
 0x8a5   : > { %4223 = vmatmul.msk.bf16.vlgmr.msrb.gmra.mxu3 %vm727_vm1, %v1338_v3 }
 0x8aa   : > { %v1334_v6 = vpop.f32.mrf.mxu2 }
 0x928   : > { %v1354_v7 = vpop.f32.mrf.mxu3 }
 0x929   : > { %v1358_v8 = vadd.f32 %v1354_v7, %v1177_v36 }
 0x92b   : > { %v1359_v10 = vadd.f32 %v1358_v8, %v5288_v4 }
 0x92d   : > { %v1362_v11 = vsel %vm648_vm0, %v1359_v10, 0.0 }
 0x92e   : > { %1363 = vadd.xlane.f32.xlu2 %v1362_v11 }
 0x930   : > { %v1356_v12 = vpop.f32.mrf.mxu3 }
 0x9a1   : > { %v1364_v4 = vpop.xlane.xlu2 %1363 }
 0x9a2   : > { %v1372_v22 = vmul.f32 %v5443_v21, %v1364_v4 }
 0x9a4   : > { %v1373_v23 = vsub.f32 %v1359_v10, %v1372_v22  ;;  %v1497_v10 = vpop.f32.mrf.mxu2 }
 0x9a6   : > { %v1374_v24 = vmul.f32 %v1373_v23, %v1373_v23 }
 0x9a8   : > { %v1375_v25 = vsel %vm648_vm0, %v1374_v24, 0.0 }
 0x9a9   : > { %1376 = vadd.xlane.f32.xlu0 %v1375_v25 }
 0x9ac   : > { %v1499_v11 = vpop.f32.mrf.mxu2 }
 0x9ad   : > { %v1552_v12 = vpack.c.bf16 %v1499_v11, %v1497_v10 }
 0x9af   : > { %1563 = vmatpush.bf16.msrb.mxu0 %v1552_v12 }
 0x9b4   : > { %v1627_v13 = vpop.f32.mrf.mxu2 }
 0x9bc   : > { %v1629_v14 = vpop.f32.mrf.mxu2 }
 0x9bd   : > { %v1664_v15 = vpack.c.bf16 %v1629_v14, %v1627_v13  ;;  %v4306_v14 = vld [vmem:[%s6084_s9 + $0x4] sm:$0xf] }
 0x9bf   : > { %v1669_v17 = vsel %vm727_vm1, %v1664_v15, 0  ;;  %v1735_v15 = vsel %vm779_vm2, %v4306_v14, 0 }
 0x9c0   : > { %1744 = vmatpush.bf16.msra.mxu2 %v1735_v15 }
 0xa1c   : > { %v1377_v32 = vpop.xlane.xlu0 %1376 }
 0xa1d   : > { %v1378_v33 = vmul.f32 %v1377_v32, %v5443_v21 }
 0xa1f   : > { %v1379_v34 = vadd.f32 1e-05, %v1378_v33  ;;  %v4852_v33 = vld [vmem:[%s6083_s8 + $0x98] sm:$0xff] }
 0xa20   : > { %1655 = vmatpush.bf16.msrb.mxu3 %v4852_v33 }
 0xa21   : > { %4999 = vrsqrt.f32 %v1379_v34  ;;  %vm1386_vm8 = vweird.f32 %v1379_v34 }
 0xa27   : > { %v5000_v35 = vpop.eup %4999 }
 0xa28   : > { %v1381_v36 = vmul.f32 %v5000_v35, %v1379_v34  ;;  %vm1387_vm7 = vweird.f32 %v5000_v35  ;;  %v4853_v34 = vld [vmem:[%s6083_s8 + $0x20] sm:$0xff] }
 0xa29   : > { %vm1388_vm9 = vmor %vm1386_vm8, %vm1387_vm7 }
 0xa2a   : > { %v1382_v37 = vmul.f32 %v5000_v35, %v1381_v36 }
 0xa2c   : > { %v1383_v38 = vmul.f32 0.5, %v1382_v37  ;;  %v1569_v37 = vld [vmem:[%s6084_s9] sm:$0xf] }
 0xa2e   : > { %v1384_v39 = vsub.f32 1.5, %v1383_v38  ;;  %v1754_v38 = vsel %vm779_vm2, %v1569_v37, 0 }
 0xa30   : > { %v1385_v40 = vmul.f32 %v5000_v35, %v1384_v39 }
 0xa32   : > { %v1389_v42 = vsel %vm1388_vm9, %v5000_v35, %v1385_v40  ;;  %v4851_v35 = vld [vmem:[%s6083_s8 + $0x90] sm:$0xff] }
 0xa33   : > { %v1390_v9 = vmul.f32 %v1389_v42, %v1373_v23  ;;  %1656 = vmatpush.bf16.msrb.mxu3 %v4851_v35 }
 0xa35   : > { %v1394_v44 = vmul.f32 %v4965_v41, %v1390_v9 }
 0xa37   : > { %v5480_v45 = vadd.f32 %v4966_v43, %v1394_v44 }
 0xa39   : > { %v5484_v46 = vpack.c.bf16 %v5480_v45, %v5480_v45 }
 0xa3b   : > { %4232 = vmatmul.msk.bf16.vlgmr.msra.gmra.mxu0 %vm648_vm0, %v5484_v46  ;;  %4277 = vmatmul.msk.bf16.vlgmr.msrb.gmra.mxu1 %vm648_vm0, %v5484_v46 }
 0xa3c   : > { %1678 = vmatpush.bf16.xpose.msra.mxu0 %v1669_v17  ;;  %v4858_v17 = vld [vmem:[%s6083_s8 + $0xa8] sm:$0xff] }
 0xa3d   : > { %1853 = vmatpush.bf16.msrb.mxu2 %v4858_v17 }
 0xab8   : > { %v1428_v51 = vpop.f32.mrf.mxu0  ;;  %v5491_v52 = vpop.f32.mrf.mxu1 }
 0xab9   : > { %v1502_v5 = vpack.c.bf16 %v1428_v51, %v1428_v51  ;;  %v1663_v36 = vpack.c.bf16 %v5491_v52, %v5491_v52 }
 0xabb   : > { %4263 = vmatmul.msk.bf16.vlgmr.msra.gmra.mxu3 %vm727_vm1, %v1502_v5 }
 0xabc   : > { %1763 = vmatpush.bf16.msra.mxu3 %v1754_v38 }
 0xac0   : > { %v1430_v53 = vpop.f32.mrf.mxu0  ;;  %v1599_v54 = vpop.f32.mrf.mxu1 }
 0xacb   : > { %4303 = vmatmul.msk.bf16.vlgmr.msrb.gmra.mxu3 %vm648_vm0, %v5457_v27 }
 0xb3e   : > { %v1519_v59 = vpop.f32.mrf.mxu3 }
 0xb3f   : > { %v1523_v60 = vmul.f32 0.35355338, %v1519_v59 }
 0xb41   : > { %v1525_v61 = vadd.f32 %v5506_v58, %v1523_v60  ;;  %v4856_v60 = vld [vmem:[%s6083_s8 + $0x68] sm:$0xff] }
 0xb43   : > { %v1527_v62 = vsel %vm1526_vm10, %v1525_v61, -inf }
 0xb44   : > { %1528 = vmax.xlane.f32.xlu1 %v1527_v62 }
 0xb46   : > { %v1521_v63 = vpop.f32.mrf.mxu3 }
 0xb4e   : > { %v1658_v42 = vpop.f32.mrf.mxu3 }
 0xb56   : > { %v1660_v48 = vpop.f32.mrf.mxu3 }
 0xb57   : > { %v1711_v50 = vpack.c.bf16 %v1660_v48, %v1658_v42  ;;  %v4861_v48 = vld [vmem:[%s6083_s8 + $0x70] sm:$0xff] }
 0xb59   : > { %1722 = vmatpush.bf16.msra.mxu1 %v1711_v50 }
 0xb5d   : > { %1822 = vmatpush.bf16.msrb.mxu1 %v4856_v60 }
 0xbb7   : > { %v1529_v2 = vpop.xlane.xlu1 %1528 }
 0xbb8   : > { %v1530_v3 = vsub.f32 %v1525_v61, %v1529_v2  ;;  %v4855_v61 = vld [vmem:[%s6083_s8 + $0x60] sm:$0xff] }
 0xbb9   : > { %1823 = vmatpush.bf16.msrb.mxu1 %v4855_v61 }
 0xbba   : > { %v1531_v6 = vmul.f32 1.442695, %v1530_v3 }
 0xbbc   : > { %5001 = vpow2.f32 %v1531_v6 }
 0xbc2   : > { %v5002_v7 = vpop.eup %5001 }
 0xbc3   : > { %v1533_v8 = vsel %vm1526_vm10, %v5002_v7, 0.0 }
 0xbc4   : > { %1534 = vadd.xlane.f32.xlu2 %v1533_v8 }
 0xc37   : > { %v1535_v18 = vpop.xlane.xlu2 %1534 }
 0xc38   : > { %5003 = vrcp.f32 %v1535_v18  ;;  %v1547_v22 = vand.u32 2147483648, %v1535_v18  ;;  %v1545_v24 = vand.u32 2147483647, %v1535_v18  ;;  %vm1541_vm12 = vweird.f32 %v1535_v18 }
 0xc3a   : > { %v1548_v26 = vor.u32 1.1754944e-38, %v1547_v22  ;;  %vm1546_vm14 = vcmp.eq.f32.partialorder %v1545_v24, 8.507059e+37  ;;  %v4859_v22 = vld [vmem:[%s6083_s8 + $0x30] sm:$0xff] }
 0xc3e   : > { %v5004_v19 = vpop.eup %5003 }
 0xc3f   : > { %v1537_v20 = vmul.f32 %v5004_v19, %v1535_v18  ;;  %vm1542_vm11 = vweird.f32 %v5004_v19  ;;  %v4857_v18 = vld [vmem:[%s6083_s8 + $0xa0] sm:$0xff] }
 0xc40   : > { %vm1543_vm13 = vmor %vm1541_vm12, %vm1542_vm11  ;;  %1854 = vmatpush.bf16.msrb.mxu2 %v4857_v18 }
 0xc41   : > { %v1538_v4 = vsub.f32 1.0, %v1537_v20  ;;  %v4860_v20 = vld [vmem:[%s6083_s8 + $0x38] sm:$0xff] }
 0xc43   : > { %v1539_v23 = vmul.f32 %v5004_v19, %v1538_v4 }
 0xc45   : > { %v1540_v25 = vadd.f32 %v5004_v19, %v1539_v23 }
 0xc47   : > { %v1544_v28 = vsel %vm1543_vm13, %v5004_v19, %v1540_v25 }
 0xc48   : > { %v1549_v29 = vsel %vm1546_vm14, %v1548_v26, %v1544_v28 }
 0xc49   : > { %v1550_v30 = vmul.f32 %v5002_v7, %v1549_v29 }
 0xc4b   : > { %v1551_v32 = vpack.c.bf16 %v1550_v30, %v1550_v30 }
 0xc4d   : > { %4264 = vmatmul.msk.bf16.vlgmr.msrb.gmra.mxu0 %vm1526_vm10, %v1551_v32 }
 0xc4e   : > { %1792 = vmatpush.bf16.msrb.mxu0 %v4854_v31 }
 0xc52   : > { %1793 = vmatpush.bf16.msrb.mxu0 %v4853_v34 }
 0xc5d   : > { %4304 = vmatmul.msk.bf16.vlgmr.msra.gmra.mxu0 %vm727_vm1, %v1663_v36 }
 0xc6d   : > { %4321 = vmatmul.msk.bf16.vlgmr.msrb.gmra.mxu0 %vm648_vm0, %v5484_v46 }
 0xcca   : > { %v1565_v39 = vpop.f32.mrf.mxu0 }
 0xccb   : > { %v1570_v40 = vpack.c.bf16 %v1565_v39, %v1565_v39 }
 0xccd   : > { %4308 = vmatmul.msk.bf16.vlgmr.msra.gmra.mxu3 %vm727_vm1, %v1570_v40 }
 0xcd2   : > { %v1567_v41 = vpop.f32.mrf.mxu0 }
 0xcda   : > { %v1680_v43 = vpop.f32.mrf.mxu0 }
 0xcdb   : > { %v1684_v9 = vmul.f32 0.35355338, %v1680_v43 }
 0xcdd   : > { %v1685_v44 = vadd.f32 %v1684_v9, %v5506_v58 }
 0xcdf   : > { %v1686_v47 = vsel %vm1526_vm10, %v1685_v44, -inf }
 0xce0   : > { %1687 = vmax.xlane.f32.xlu0 %v1686_v47  ;;  %v4862_v47 = vld [vmem:[%s6083_s8 + $0x78] sm:$0xff] }
 0xce2   : > { %v1682_v49 = vpop.f32.mrf.mxu0 }
 0xcea   : > { %v1795_v51 = vpop.f32.mrf.mxu0 }
 0xceb   : > { %v1861_v29 = vpack.c.bf16 %v1795_v51, %v1795_v51 }
 0xcf2   : > { %v1797_v52 = vpop.f32.mrf.mxu0 }
 0xd50   : > { %v5547_v5 = vpop.f32.mrf.mxu3 }
 0xd53   : > { %v1688_v53 = vpop.xlane.xlu0 %1687 }
 0xd54   : > { %v1689_v54 = vsub.f32 %v1685_v44, %v1688_v53 }
 0xd56   : > { %v1690_v55 = vmul.f32 1.442695, %v1689_v54 }
 0xd58   : > { %5005 = vpow2.f32 %v1690_v55  ;;  %v1767_v56 = vpop.f32.mrf.mxu3 }
 0xd5e   : > { %v5006_v57 = vpop.eup %5005 }
 0xd5f   : > { %v1692_v59 = vsel %vm1526_vm10, %v5006_v57, 0.0 }
 0xd60   : > { %1693 = vadd.xlane.f32.xlu1 %v1692_v59 }
 0xdd3   : > { %v1694_v62 = vpop.xlane.xlu1 %1693 }
 0xdd4   : > { %5007 = vrcp.f32 %v1694_v62  ;;  %v1706_v2 = vand.u32 2147483648, %v1694_v62  ;;  %v1704_v6 = vand.u32 2147483647, %v1694_v62  ;;  %vm1700_vm3 = vweird.f32 %v1694_v62 }
 0xdd6   : > { %v1707_v8 = vor.u32 1.1754944e-38, %v1706_v2  ;;  %vm1705_vm5 = vcmp.eq.f32.partialorder %v1704_v6, 8.507059e+37 }
 0xdda   : > { %v5008_v63 = vpop.eup %5007 }
 0xddb   : > { %v1696_v0 = vmul.f32 %v5008_v63, %v1694_v62  ;;  %vm1701_vm15 = vweird.f32 %v5008_v63 }
 0xddc   : > { %vm1702_vm4 = vmor %vm1700_vm3, %vm1701_vm15 }
 0xddd   : > { %v1697_v1 = vsub.f32 1.0, %v1696_v0 }
 0xddf   : > { %v1698_v3 = vmul.f32 %v5008_v63, %v1697_v1 }
 0xde1   : > { %v1699_v7 = vadd.f32 %v5008_v63, %v1698_v3 }
 0xde3   : > { %v1703_v10 = vsel %vm1702_vm4, %v5008_v63, %v1699_v7  ;;  %v4350_v63 = vld [vmem:[%s6084_s9 + $0x8] sm:$0xf] }
 0xde4   : > { %v1708_v11 = vsel %vm1705_vm5, %v1707_v8, %v1703_v10  ;;  %v1933_v0 = vsel %vm779_vm2, %v4350_v63, 0  ;;  %vm2237_vm5 = vcmask 523264  }
 0xde5   : > { %v1709_v12 = vmul.f32 %v5006_v57, %v1708_v11 }
 0xde7   : > { %v1710_v13 = vpack.c.bf16 %v1709_v12, %v1709_v12  ;;  %v4864_v12 = vld [vmem:[%s6083_s8 + $0xb8] sm:$0xff] }
 0xde9   : > { %4305 = vmatmul.msk.bf16.vlgmr.msra.gmra.mxu1 %vm1526_vm10, %v1710_v13  ;;  %v4863_v13 = vld [vmem:[%s6083_s8 + $0xb0] sm:$0xff] }
 0xdea   : > { %1942 = vmatpush.bf16.msra.mxu1 %v1933_v0  ;;  %v4869_v0 = vld [vmem:[%s6089_s14 + $0x10] sm:$0xff] }
 0xdf9   : > { %4334 = vmatmul.msk.bf16.vlgmr.msrb.gmra.mxu1 %vm648_vm0, %v5457_v27 }
 0xe66   : > { %v1724_v19 = vpop.f32.mrf.mxu1 }
 0xe67   : > { %v1730_v4 = vpack.c.bf16 %v1724_v19, %v1724_v19 }
 0xe69   : > { %4307 = vmatmul.msk.bf16.vlgmr.msra.gmra.mxu2 %vm727_vm1, %v1730_v4 }
 0xe6a   : > { %1972 = vmatpush.bf16.msra.mxu2 %v4860_v20 }
 0xe6e   : > { %v1726_v23 = vpop.f32.mrf.mxu1  ;;  %1973 = vmatpush.bf16.msra.mxu2 %v4859_v22 }
 0xe76   : > { %v1825_v24 = vpop.f32.mrf.mxu1 }
 0xe79   : > { %4347 = vmatmul.msk.bf16.vlgmr.msrb.gmra.mxu2 %vm648_vm0, %v5457_v27 }
 0xe7e   : > { %v1827_v25 = vpop.f32.mrf.mxu1 }
 0xe7f   : > { %v1862_v26 = vpack.c.bf16 %v1827_v25, %v1825_v24 }
 0xe81   : > { %v1867_v28 = vsel %vm727_vm1, %v1862_v26, 0 }
 0xe82   : > { %1876 = vmatpush.bf16.xpose.msrb.mxu3 %v1867_v28 }
 0xe89   : > { %4348 = vmatmul.msk.bf16.vlgmr.msrb.gmra.mxu3 %vm727_vm1, %v1861_v29  ;;  %4364 = vmatmul.msk.bf16.vlgmr.msra.gmra.mxu2 %vm648_vm0, %v5484_v46 }
 0xe8a   : > { %2002 = vmatpush.bf16.msra.mxu3 %v4862_v47 }
 0xe8e   : > { %2003 = vmatpush.bf16.msra.mxu3 %v4861_v48 }
 0xe99   : > { %4377 = vmatmul.msk.bf16.vlgmr.msra.gmra.mxu3 %vm648_vm0, %v5457_v27 }
 0xeec   : > { %v5582_v30 = vpop.f32.mrf.mxu2 }
 0xeed   : > { %v1766_v14 = vadd.f32 %v5547_v5, %v5582_v30 }
 0xef4   : > { %v1748_v31 = vpop.f32.mrf.mxu2 }
 0xef5   : > { %v4393_v31 = vld [vmem:[%s6084_s9 + $0xc] sm:$0xf] }
 0xefc   : > { %v1856_v32 = vpop.f32.mrf.mxu2 }
 0xf04   : > { %v1858_v33 = vpop.f32.mrf.mxu2 }
 0xf05   : > { %v1909_v34 = vpack.c.bf16 %v1858_v33, %v1856_v32  ;;  %v2113_v32 = vsel %vm779_vm2, %v4393_v31, 0 }
 0xf06   : > { %2122 = vmatpush.bf16.msrb.mxu3 %v2113_v32 }
 0xf07   : > { %1920 = vmatpush.bf16.msra.mxu0 %v1909_v34 }
 0xf0b   : > { %2033 = vmatpush.bf16.msrb.mxu0 %v4864_v12 }
 0xf0c   : > { %v1878_v35 = vpop.f32.mrf.mxu3  ;;  %v1975_v36 = vpop.f32.mrf.mxu2 }
 0xf0d   : > { %v1882_v37 = vmul.f32 0.35355338, %v1878_v35  ;;  %v2041_v11 = vpack.c.bf16 %v1975_v36, %v1975_v36 }
 0xf0f   : > { %v1883_v38 = vadd.f32 %v1882_v37, %v5506_v58  ;;  %2034 = vmatpush.bf16.msrb.mxu0 %v4863_v13  ;;  %v4968_v13 = vld [vmem:[%s6086_s11] ss:$0 sm:$0xff] }
 0xf11   : > { %v1884_v39 = vsel %vm1526_vm10, %v1883_v38, -inf }
 0xf12   : > { %1885 = vmax.xlane.f32.xlu2 %v1884_v39 }
 0xf14   : > { %v1880_v40 = vpop.f32.mrf.mxu3  ;;  %v1977_v41 = vpop.f32.mrf.mxu2 }
 0xf1c   : > { %v2005_v1 = vpop.f32.mrf.mxu3 }
 0xf24   : > { %v2007_v2 = vpop.f32.mrf.mxu3 }
 0xf25   : > { %v2042_v3 = vpack.c.bf16 %v2007_v2, %v2005_v1 }
 0xf27   : > { %v2047_v6 = vsel %vm727_vm1, %v2042_v3, 0 }
 0xf28   : > { %2056 = vmatpush.bf16.xpose.msrb.mxu1 %v2047_v6 }
 0xf85   : > { %v1886_v42 = vpop.xlane.xlu2 %1885 }
 0xf86   : > { %v1887_v43 = vsub.f32 %v1883_v38, %v1886_v42 }
 0xf88   : > { %v1888_v46 = vmul.f32 1.442695, %v1887_v43 }
 0xf8a   : > { %5009 = vpow2.f32 %v1888_v46 }
 0xf90   : > { %v5010_v9 = vpop.eup %5009 }
 0xf91   : > { %v1890_v44 = vsel %vm1526_vm10, %v5010_v9, 0.0 }
 0xf92   : > { %1891 = vadd.xlane.f32.xlu0 %v1890_v44 }
0x1005   : > { %v1892_v49 = vpop.xlane.xlu0 %1891 }
0x1006   : > { %5011 = vrcp.f32 %v1892_v49  ;;  %v1904_v53 = vand.u32 2147483648, %v1892_v49  ;;  %v1902_v55 = vand.u32 2147483647, %v1892_v49  ;;  %vm1898_vm7 = vweird.f32 %v1892_v49 }
0x1008   : > { %v1905_v57 = vor.u32 1.1754944e-38, %v1904_v53  ;;  %vm1903_vm9 = vcmp.eq.f32.partialorder %v1902_v55, 8.507059e+37 }
0x100c   : > { %v5012_v50 = vpop.eup %5011 }
0x100d   : > { %v1894_v51 = vmul.f32 %v5012_v50, %v1892_v49  ;;  %vm1899_vm6 = vweird.f32 %v5012_v50 }
0x100e   : > { %vm1900_vm8 = vmor %vm1898_vm7, %vm1899_vm6 }
0x100f   : > { %v1895_v52 = vsub.f32 1.0, %v1894_v51 }
0x1011   : > { %v1896_v54 = vmul.f32 %v5012_v50, %v1895_v52 }
0x1013   : > { %v1897_v56 = vadd.f32 %v5012_v50, %v1896_v54 }
0x1015   : > { %v1901_v59 = vsel %vm1900_vm8, %v5012_v50, %v1897_v56 }
0x1016   : > { %v1906_v60 = vsel %vm1903_vm9, %v1905_v57, %v1901_v59 }
0x1017   : > { %v1907_v61 = vmul.f32 %v5010_v9, %v1906_v60  ;;  %v4866_v60 = vld [vmem:[%s6087_s12 + $0x8] sm:$0xff] }
0x1019   : > { %v1908_v62 = vpack.c.bf16 %v1907_v61, %v1907_v61  ;;  %v4870_v61 = vld [vmem:[%s6089_s14 + $0x18] sm:$0xff] }
0x101b   : > { %4349 = vmatmul.msk.bf16.vlgmr.msra.gmra.mxu0 %vm1526_vm10, %v1908_v62 }
0x101c   : > { %2192 = vmatpush.bf16.msra.mxu0 %v4866_v60 }
0x102b   : > { %4390 = vmatmul.msk.bf16.vlgmr.msrb.gmra.mxu0 %vm648_vm0, %v5457_v27 }
0x1098   : > { %v1922_v7 = vpop.f32.mrf.mxu0 }
0x1099   : > { %v1928_v8 = vpack.c.bf16 %v1922_v7, %v1922_v7 }
0x109b   : > { %4351 = vmatmul.msk.bf16.vlgmr.msra.gmra.mxu1 %vm727_vm1, %v1928_v8 }
0x109c   : > { %2245 = vmatpush.bf16.msra.mxu1 %v4870_v61 }
0x10a0   : > { %v1924_v10 = vpop.f32.mrf.mxu0  ;;  %2246 = vmatpush.bf16.msra.mxu1 %v4869_v0 }
0x10a8   : > { %v2036_v29 = vpop.f32.mrf.mxu0 }
0x10ab   : > { %4391 = vmatmul.msk.bf16.vlgmr.msrb.gmra.mxu1 %vm727_vm1, %v2041_v11  ;;  %v4967_v11 = vld [vmem:[%s6085_s10] ss:$0 sm:$0xff] }
0x10b0   : > { %v2038_v30 = vpop.f32.mrf.mxu0 }
0x10b1   : > { %v2089_v27 = vpack.c.bf16 %v2038_v30, %v2036_v29 }
0x10b3   : > { %2100 = vmatpush.bf16.msrb.mxu2 %v2089_v27 }
0x1118   : > { %v1944_v15 = vpop.f32.mrf.mxu1 }
0x1119   : > { %v1948_v17 = vadd.f32 %v1944_v15, %v1766_v14 }
0x1120   : > { %v1946_v18 = vpop.f32.mrf.mxu1 }
0x1128   : > { %v2058_v19 = vpop.f32.mrf.mxu1 }
0x1129   : > { %v2062_v20 = vmul.f32 0.35355338, %v2058_v19  ;;  %v4868_v19 = vld [vmem:[%s6089_s14 + $0x8] sm:$0xff] }
0x112a   : > { %2247 = vmatpush.bf16.msra.mxu1 %v4868_v19 }
0x112b   : > { %v2063_v4 = vadd.f32 %v2062_v20, %v5506_v58  ;;  %v4867_v20 = vld [vmem:[%s6089_s14] sm:$0xff] }
0x112d   : > { %v2064_v22 = vsel %vm1526_vm10, %v2063_v4, -inf }
0x112e   : > { %2065 = vmax.xlane.f32.xlu1 %v2064_v22  ;;  %2248 = vmatpush.bf16.msra.mxu1 %v4867_v20 }
0x1130   : > { %v2060_v23 = vpop.f32.mrf.mxu1 }
0x11a1   : > { %v2066_v24 = vpop.xlane.xlu1 %2065 }
0x11a2   : > { %v2067_v25 = vsub.f32 %v2063_v4, %v2066_v24  ;;  %v4969_v4 = vld [vmem:[%s6088_s13] ss:$0 sm:$0xff] }
0x11a4   : > { %v2068_v26 = vmul.f32 1.442695, %v2067_v25 }
0x11a6   : > { %5013 = vpow2.f32 %v2068_v26 }
0x11ac   : > { %v5014_v28 = vpop.eup %5013 }
0x11ad   : > { %v2070_v5 = vsel %vm1526_vm10, %v5014_v28, 0.0 }
0x11ae   : > { %2071 = vadd.xlane.f32.xlu2 %v2070_v5 }
0x1221   : > { %v2072_v33 = vpop.xlane.xlu2 %2071 }
0x1222   : > { %5015 = vrcp.f32 %v2072_v33  ;;  %v2084_v37 = vand.u32 2147483648, %v2072_v33  ;;  %v2082_v39 = vand.u32 2147483647, %v2072_v33  ;;  %vm2078_vm12 = vweird.f32 %v2072_v33 }
0x1224   : > { %v2085_v41 = vor.u32 1.1754944e-38, %v2084_v37  ;;  %vm2083_vm14 = vcmp.eq.f32.partialorder %v2082_v39, 8.507059e+37  ;;  %v4872_v37 = vld [vmem:[%s6079_s4 + $0xc8] sm:$0xff] }
0x1225   : > { %v4876_v39 = vld [vmem:[%s6079_s4 + $0x148] sm:$0xff]  ;;  %2314 = vmatpush.bf16.msra.mxu2 %v4872_v37 }
0x1228   : > { %v5016_v34 = vpop.eup %5015 }
0x1229   : > { %v2074_v35 = vmul.f32 %v5016_v34, %v2072_v33  ;;  %vm2079_vm11 = vweird.f32 %v5016_v34 }
0x122a   : > { %vm2080_vm13 = vmor %vm2078_vm12, %vm2079_vm11 }
0x122b   : > { %v2075_v36 = vsub.f32 1.0, %v2074_v35 }
0x122d   : > { %v2076_v38 = vmul.f32 %v5016_v34, %v2075_v36 }
0x122f   : > { %v2077_v40 = vadd.f32 %v5016_v34, %v2076_v38  ;;  %v4874_v38 = vld [vmem:[%s6079_s4 + $0x108] sm:$0xff] }
0x1230   : > { %2344 = vmatpush.bf16.msra.mxu3 %v4874_v38 }
0x1231   : > { %v2081_v42 = vsel %vm2080_vm13, %v5016_v34, %v2077_v40  ;;  %v4871_v40 = vld [vmem:[%s6079_s4 + $0xc0] sm:$0xff] }
0x1232   : > { %v2086_v43 = vsel %vm2083_vm14, %v2085_v41, %v2081_v42  ;;  %v4873_v41 = vld [vmem:[%s6079_s4 + $0x100] sm:$0xff]  ;;  %2315 = vmatpush.bf16.msra.mxu2 %v4871_v40 }
0x1233   : > { %v2087_v46 = vmul.f32 %v5014_v28, %v2086_v43  ;;  %v4970_v28 = vld [vmem:[%s6090_s15] ss:$0 sm:$0xff] }
0x1234   : > { %v4875_v42 = vld [vmem:[%s6079_s4 + $0x140] sm:$0xff]  ;;  %2345 = vmatpush.bf16.msra.mxu3 %v4873_v41 }
0x1235   : > { %v2088_v9 = vpack.c.bf16 %v2087_v46, %v2087_v46  ;;  %v4878_v46 = vld [vmem:[%s6079_s4 + $0xd8] sm:$0xff] }
0x1237   : > { %4392 = vmatmul.msk.bf16.vlgmr.msrb.gmra.mxu2 %vm1526_vm10, %v2088_v9  ;;  %v4880_v9 = vld [vmem:[%s6079_s4 + $0x118] sm:$0xff] }
0x12ba   : > { %v2102_v44 = vpop.f32.mrf.mxu2 }
0x12bb   : > { %v2108_v47 = vpack.c.bf16 %v2102_v44, %v2102_v44 }
0x12bd   : > { %4394 = vmatmul.msk.bf16.vlgmr.msrb.gmra.mxu3 %vm727_vm1, %v2108_v47  ;;  %v4877_v47 = vld [vmem:[%s6079_s4 + $0xd0] sm:$0xff] }
0x12be   : > { %2475 = vmatpush.bf16.msrb.mxu3 %v4878_v46 }
0x12c2   : > { %v2104_v48 = vpop.f32.mrf.mxu2  ;;  %2476 = vmatpush.bf16.msrb.mxu3 %v4877_v47  ;;  %v4884_v47 = vld [vmem:[%s6079_s4 + $0xe8] sm:$0xff] }
0x12c3   : > { %v4879_v48 = vld [vmem:[%s6079_s4 + $0x110] sm:$0xff] }
0x1340   : > { %v2124_v49 = vpop.f32.mrf.mxu3 }
0x1341   : > { %v2128_v50 = vadd.f32 %v2124_v49, %v1948_v17 }
0x1343   : > { %v2129_v51 = vadd.f32 %v2128_v50, %v5480_v45  ;;  %v4865_v45 = vld [vmem:[%s6087_s12] sm:$0xff] }
0x1344   : > { %2193 = vmatpush.bf16.msra.mxu0 %v4865_v45 }
0x1345   : > { %v2132_v52 = vsel %vm648_vm0, %v2129_v51, 0.0 }
0x1346   : > { %2133 = vadd.xlane.f32.xlu0 %v2132_v52 }
0x1348   : > { %v2126_v53 = vpop.f32.mrf.mxu3  ;;  %2374 = vmatpush.bf16.msrb.mxu0 %v4876_v39 }
0x134c   : > { %2375 = vmatpush.bf16.msrb.mxu0 %v4875_v42 }
0x13b9   : > { %v2134_v54 = vpop.xlane.xlu0 %2133 }
0x13ba   : > { %v2135_v55 = vmul.f32 %v2134_v54, %v5443_v21 }
0x13bc   : > { %v2136_v56 = vsub.f32 %v2129_v51, %v2135_v55 }
0x13be   : > { %v2137_v57 = vmul.f32 %v2136_v56, %v2136_v56 }
0x13c0   : > { %v2138_v59 = vsel %vm648_vm0, %v2137_v57, 0.0 }
0x13c1   : > { %2139 = vadd.xlane.f32.xlu1 %v2138_v59  ;;  %v4972_v59 = vld [vmem:[%s6092_s17] ss:$0 sm:$0xff] }
0x1434   : > { %v2140_v62 = vpop.xlane.xlu1 %2139 }
0x1435   : > { %v2141_v63 = vmul.f32 %v2140_v62, %v5443_v21 }
0x1437   : > { %v2142_v1 = vadd.f32 1e-05, %v2141_v63 }
0x1439   : > { %5017 = vrsqrt.f32 %v2142_v1  ;;  %vm2149_vm3 = vweird.f32 %v2142_v1 }
0x143f   : > { %v5018_v2 = vpop.eup %5017 }
0x1440   : > { %v2144_v3 = vmul.f32 %v5018_v2, %v2142_v1  ;;  %vm2150_vm15 = vweird.f32 %v5018_v2 }
0x1441   : > { %vm2151_vm4 = vmor %vm2149_vm3, %vm2150_vm15 }
0x1442   : > { %v2145_v6 = vmul.f32 %v5018_v2, %v2144_v3 }
0x1444   : > { %v2146_v7 = vmul.f32 0.5, %v2145_v6 }
0x1446   : > { %v2147_v8 = vsub.f32 1.5, %v2146_v7  ;;  %v4882_v7 = vld [vmem:[%s6079_s4 + $0x158] sm:$0xff] }
0x1448   : > { %v2148_v10 = vmul.f32 %v5018_v2, %v2147_v8 }
0x144a   : > { %v2152_v12 = vsel %vm2151_vm4, %v5018_v2, %v2148_v10 }
0x144b   : > { %v2153_v14 = vmul.f32 %v2152_v12, %v2136_v56  ;;  %v4971_v56 = vld [vmem:[%s6091_s16] ss:$0 sm:$0xff] }
0x144d   : > { %v2157_v15 = vmul.f32 %v4967_v11, %v2153_v14  ;;  %v4881_v11 = vld [vmem:[%s6079_s4 + $0x150] sm:$0xff] }
0x144f   : > { %v2161_v17 = vadd.f32 %v4968_v13, %v2157_v15 }
0x1451   : > { %v2166_v18 = vpack.c.bf16 %v2161_v17, %v2161_v17 }
0x1453   : > { %4403 = vmatmul.msk.bf16.vlgmr.msra.gmra.mxu0 %vm648_vm0, %v2166_v18 }
0x1454   : > { %2505 = vmatpush.bf16.msra.mxu0 %v4880_v9 }
0x1458   : > { %2506 = vmatpush.bf16.msra.mxu0 %v4879_v48 }
0x14d0   : > { %v2195_v22 = vpop.f32.mrf.mxu0 }
0x14d1   : > { %v2196_v23 = vadd.f32 %v4969_v4, %v2195_v22 }
0x14d3   : > { %v2199_v24 = vmax.f32 %v2196_v23, 0.0 }
0x14d5   : > { %v2208_v25 = vpack.c.bf16 %v2199_v24, %v2199_v24 }
0x14d7   : > { %4420 = vmatmul.msk.bf16.vlgmr.msra.gmra.mxu1 %vm2237_vm5, %v2208_v25 }
0x14d8   : > { %v2197_v26 = vpop.f32.mrf.mxu0 }
0x1554   : > { %v2250_v5 = vpop.f32.mrf.mxu1 }
0x1555   : > { %v2251_v29 = vadd.f32 %v4970_v28, %v2250_v5 }
0x1557   : > { %v2254_v30 = vadd.f32 %v2251_v29, %v2161_v17 }
0x1559   : > { %v2257_v27 = vsel %vm648_vm0, %v2254_v30, 0.0 }
0x155a   : > { %2258 = vadd.xlane.f32.xlu2 %v2257_v27 }
0x155c   : > { %v2252_v31 = vpop.f32.mrf.mxu1 }
0x15cd   : > { %v2259_v32 = vpop.xlane.xlu2 %2258 }
0x15ce   : > { %v2260_v33 = vmul.f32 %v2259_v32, %v5443_v21 }
0x15d0   : > { %v2261_v34 = vsub.f32 %v2254_v30, %v2260_v33 }
0x15d2   : > { %v2262_v35 = vmul.f32 %v2261_v34, %v2261_v34 }
0x15d4   : > { %v2263_v36 = vsel %vm648_vm0, %v2262_v35, 0.0 }
0x15d5   : > { %2264 = vadd.xlane.f32.xlu0 %v2263_v36 }
0x1648   : > { %v2265_v43 = vpop.xlane.xlu0 %2264 }
0x1649   : > { %v2266_v44 = vmul.f32 %v2265_v43, %v5443_v21 }
0x164b   : > { %v2267_v49 = vadd.f32 1e-05, %v2266_v44 }
0x164d   : > { %5019 = vrsqrt.f32 %v2267_v49  ;;  %vm2274_vm7 = vweird.f32 %v2267_v49 }
0x1653   : > { %v5020_v50 = vpop.eup %5019 }
0x1654   : > { %v2269_v51 = vmul.f32 %v5020_v50, %v2267_v49  ;;  %vm2275_vm6 = vweird.f32 %v5020_v50  ;;  %v4883_v49 = vld [vmem:[%s6079_s4 + $0xe0] sm:$0xff] }
0x1655   : > { %vm2276_vm8 = vmor %vm2274_vm7, %vm2275_vm6 }
0x1656   : > { %v2270_v52 = vmul.f32 %v5020_v50, %v2269_v51  ;;  %v4462_v51 = vld [vmem:[%s6080_s5 + $0x10] sm:$0xf] }
0x1658   : > { %v2271_v53 = vmul.f32 0.5, %v2270_v52  ;;  %v2636_v52 = vsel %vm779_vm2, %v4462_v51, 0 }
0x165a   : > { %v2272_v54 = vsub.f32 1.5, %v2271_v53 }
0x165c   : > { %v2273_v55 = vmul.f32 %v5020_v50, %v2272_v54 }
0x165e   : > { %v2277_v57 = vsel %vm2276_vm8, %v5020_v50, %v2273_v55 }
0x165f   : > { %v2278_v60 = vmul.f32 %v2277_v57, %v2261_v34 }
0x1661   : > { %v2282_v45 = vmul.f32 %v4971_v56, %v2278_v60 }
0x1663   : > { %v5699_v61 = vadd.f32 %v4972_v59, %v2282_v45 }
0x1665   : > { %v5703_v62 = vpack.c.bf16 %v5699_v61, %v5699_v61 }
0x1667   : > { %4433 = vmatmul.msk.bf16.vlgmr.msra.gmra.mxu2 %vm648_vm0, %v5703_v62  ;;  %4446 = vmatmul.msk.bf16.vlgmr.msra.gmra.mxu3 %vm648_vm0, %v5703_v62 }
0x1668   : > { %4459 = vmatmul.msk.bf16.vlgmr.msrb.gmra.mxu0 %vm648_vm0, %v5703_v62 }
0x1677   : > { %4475 = vmatmul.msk.bf16.vlgmr.msrb.gmra.mxu3 %vm648_vm0, %v5703_v62 }
0x1678   : > { %4488 = vmatmul.msk.bf16.vlgmr.msra.gmra.mxu0 %vm648_vm0, %v5703_v62 }
0x16e5   : > { %v2377_v63 = vpop.f32.mrf.mxu0 }
0x16e6   : > { %v2429_v0 = vpack.c.bf16 %v2377_v63, %v2377_v63 }
0x16e8   : > { %v2434_v1 = vsel %vm779_vm2, %v2429_v0, 0 }
0x16e9   : > { %2443 = vmatpush.bf16.msrb.mxu2 %v2434_v1 }
0x16ea   : > { %v2317_v2 = vpop.f32.mrf.mxu2  ;;  %v2347_v3 = vpop.f32.mrf.mxu3 }
0x16eb   : > { %v2382_v6 = vpack.c.bf16 %v2347_v3, %v2347_v3  ;;  %v2381_v14 = vpack.c.bf16 %v2317_v2, %v2317_v2 }
0x16ed   : > { %v2387_v8 = vsel %vm727_vm1, %v2382_v6, 0  ;;  %v2379_v10 = vpop.f32.mrf.mxu0 }
0x16ee   : > { %2396 = vmatpush.bf16.xpose.msrb.mxu1 %v2387_v8 }
0x16f2   : > { %v2319_v12 = vpop.f32.mrf.mxu2  ;;  %v2349_v13 = vpop.f32.mrf.mxu3 }
0x16f3   : > { %v4885_v12 = vld [vmem:[%s6079_s4 + $0x120] sm:$0xff] }
0x16f5   : > { %v2508_v15 = vpop.f32.mrf.mxu0  ;;  %4460 = vmatmul.msk.bf16.vlgmr.msrb.gmra.mxu1 %vm727_vm1, %v2381_v14 }
0x16f6   : > { %2535 = vmatpush.bf16.msra.mxu1 %v4882_v7  ;;  %v2543_v17 = vpack.c.bf16 %v2508_v15, %v2508_v15 }
0x16f8   : > { %v2548_v18 = vsel %vm727_vm1, %v2543_v17, 0 }
0x16f9   : > { %2557 = vmatpush.bf16.xpose.msra.mxu2 %v2548_v18 }
0x16fa   : > { %2536 = vmatpush.bf16.msra.mxu1 %v4881_v11  ;;  %v2478_v19 = vpop.f32.mrf.mxu3  ;;  %v4886_v11 = vld [vmem:[%s6079_s4 + $0x128] sm:$0xff] }
0x16fb   : > { %v2542_v50 = vpack.c.bf16 %v2478_v19, %v2478_v19 }
0x16fd   : > { %v2510_v20 = vpop.f32.mrf.mxu0 }
0x16fe   : > { %2645 = vmatpush.bf16.msrb.mxu1 %v2636_v52 }
0x1702   : > { %v2480_v4 = vpop.f32.mrf.mxu3 }
0x1705   : > { %4501 = vmatmul.msk.bf16.vlgmr.msra.gmra.mxu1 %vm648_vm0, %v5703_v62 }
0x1772   : > { %v2398_v22 = vpop.f32.mrf.mxu1 }
0x1773   : > { %v2402_v23 = vmul.f32 0.35355338, %v2398_v22 }
0x1775   : > { %v2403_v24 = vadd.f32 %v2402_v23, %v5312_v16 }
0x1777   : > { %v2404_v25 = vsel %vm727_vm1, %v2403_v24, -inf }
0x1778   : > { %2405 = vmax.xlane.f32.xlu1 %v2404_v25 }
0x177a   : > { %v2400_v26 = vpop.f32.mrf.mxu1 }
0x1782   : > { %v2538_v28 = vpop.f32.mrf.mxu1 }
0x1783   : > { %v2590_v5 = vpack.c.bf16 %v2538_v28, %v2538_v28  ;;  %v4504_v28 = vld [vmem:[%s6080_s5 + $0x14] sm:$0xf] }
0x1785   : > { %v2595_v29 = vsel %vm779_vm2, %v2590_v5, 0  ;;  %v2617_v5 = vsel %vm779_vm2, %v4504_v28, 0 }
0x1786   : > { %2604 = vmatpush.bf16.msra.mxu3 %v2595_v29  ;;  %2626 = vmatpush.bf16.msrb.mxu0 %v2617_v5  ;;  %v4888_v29 = vld [vmem:[%s6079_s4 + $0x168] sm:$0xff] }
0x178a   : > { %v2540_v30 = vpop.f32.mrf.mxu1  ;;  %2704 = vmatpush.bf16.msrb.mxu3 %v4886_v11  ;;  %2734 = vmatpush.bf16.msra.mxu0 %v4888_v29 }
0x178b   : > { %v4887_v30 = vld [vmem:[%s6079_s4 + $0x160] sm:$0xff] }
0x178e   : > { %2705 = vmatpush.bf16.msrb.mxu3 %v4885_v12  ;;  %2735 = vmatpush.bf16.msra.mxu0 %v4887_v30 }
0x17eb   : > { %v2406_v27 = vpop.xlane.xlu1 %2405 }
0x17ec   : > { %v2407_v31 = vsub.f32 %v2403_v24, %v2406_v27 }
0x17ee   : > { %v2408_v32 = vmul.f32 1.442695, %v2407_v31  ;;  %v4890_v31 = vld [vmem:[%s6079_s4 + $0xf8] sm:$0xff] }
0x17f0   : > { %5021 = vpow2.f32 %v2408_v32 }
0x17f6   : > { %v5022_v33 = vpop.eup %5021 }
0x17f7   : > { %v2410_v34 = vsel %vm727_vm1, %v5022_v33, 0.0 }
0x17f8   : > { %2411 = vadd.xlane.f32.xlu2 %v2410_v34 }
0x186b   : > { %v2412_v35 = vpop.xlane.xlu2 %2411 }
0x186c   : > { %5023 = vrcp.f32 %v2412_v35  ;;  %v2424_v39 = vand.u32 2147483648, %v2412_v35  ;;  %v2422_v41 = vand.u32 2147483647, %v2412_v35  ;;  %vm2418_vm11 = vweird.f32 %v2412_v35 }
0x186e   : > { %v2425_v43 = vor.u32 1.1754944e-38, %v2424_v39  ;;  %vm2423_vm13 = vcmp.eq.f32.partialorder %v2422_v41, 8.507059e+37  ;;  %v4891_v39 = vld [vmem:[%s6079_s4 + $0x130] sm:$0xff] }
0x1872   : > { %v5024_v36 = vpop.eup %5023 }
0x1873   : > { %v2414_v37 = vmul.f32 %v5024_v36, %v2412_v35  ;;  %vm2419_vm9 = vweird.f32 %v5024_v36 }
0x1874   : > { %vm2420_vm12 = vmor %vm2418_vm11, %vm2419_vm9 }
0x1875   : > { %v2415_v38 = vsub.f32 1.0, %v2414_v37  ;;  %v4892_v37 = vld [vmem:[%s6079_s4 + $0x138] sm:$0xff] }
0x1877   : > { %v2416_v40 = vmul.f32 %v5024_v36, %v2415_v38 }
0x1879   : > { %v2417_v42 = vadd.f32 %v5024_v36, %v2416_v40 }
0x187b   : > { %v2421_v46 = vsel %vm2420_vm12, %v5024_v36, %v2417_v42 }
0x187c   : > { %v2426_v9 = vsel %vm2423_vm13, %v2425_v43, %v2421_v46  ;;  %v4548_v46 = vld [vmem:[%s6080_s5 + $0x18] sm:$0xf] }
0x187d   : > { %v2427_v44 = vmul.f32 %v5022_v33, %v2426_v9  ;;  %v4889_v33 = vld [vmem:[%s6079_s4 + $0xf0] sm:$0xff]  ;;  %v2816_v9 = vsel %vm779_vm2, %v4548_v46, 0 }
0x187f   : > { %v2428_v48 = vpack.c.bf16 %v2427_v44, %v2427_v44 }
0x1881   : > { %4461 = vmatmul.msk.bf16.vlgmr.msrb.gmra.mxu2 %vm727_vm1, %v2428_v48 }
0x1882   : > { %2674 = vmatpush.bf16.msrb.mxu2 %v4884_v47 }
0x1886   : > { %2675 = vmatpush.bf16.msrb.mxu2 %v4883_v49 }
0x1891   : > { %4502 = vmatmul.msk.bf16.vlgmr.msra.gmra.mxu2 %vm727_vm1, %v2542_v50 }
0x18a1   : > { %4519 = vmatmul.msk.bf16.vlgmr.msrb.gmra.mxu2 %vm648_vm0, %v5703_v62 }
0x1904   : > { %v2445_v53 = vpop.f32.mrf.mxu2 }
0x1905   : > { %v2451_v54 = vpack.c.bf16 %v2445_v53, %v2445_v53 }
0x1907   : > { %4506 = vmatmul.msk.bf16.vlgmr.msrb.gmra.mxu1 %vm727_vm1, %v2451_v54 }
0x190c   : > { %v2447_v55 = vpop.f32.mrf.mxu2 }
0x1914   : > { %v2559_v56 = vpop.f32.mrf.mxu2 }
0x1915   : > { %v2563_v57 = vmul.f32 0.35355338, %v2559_v56 }
0x1917   : > { %v2564_v59 = vadd.f32 %v2563_v57, %v5312_v16 }
0x1919   : > { %v2565_v60 = vsel %vm727_vm1, %v2564_v59, -inf }
0x191a   : > { %2566 = vmax.xlane.f32.xlu0 %v2565_v60 }
0x191c   : > { %v2561_v45 = vpop.f32.mrf.mxu2 }
0x1924   : > { %v2677_v63 = vpop.f32.mrf.mxu2 }
0x1925   : > { %v2741_v41 = vpack.c.bf16 %v2677_v63, %v2677_v63 }
0x192c   : > { %v2679_v0 = vpop.f32.mrf.mxu2 }
0x1984   : > { %v5748_v1 = vpop.f32.mrf.mxu1 }
0x198c   : > { %v2649_v2 = vpop.f32.mrf.mxu1 }
0x198d   : > { %v2567_v3 = vpop.xlane.xlu0 %2566 }
0x198e   : > { %v2568_v6 = vsub.f32 %v2564_v59, %v2567_v3 }
0x1990   : > { %v2569_v7 = vmul.f32 1.442695, %v2568_v6 }
0x1992   : > { %5025 = vpow2.f32 %v2569_v7  ;;  %v4894_v7 = vld [vmem:[%s6079_s4 + $0x178] sm:$0xff] }
0x1998   : > { %v5026_v8 = vpop.eup %5025 }
0x1999   : > { %v2571_v10 = vsel %vm727_vm1, %v5026_v8, 0.0 }
0x199a   : > { %2572 = vadd.xlane.f32.xlu1 %v2571_v10 }
0x1a0d   : > { %v2573_v13 = vpop.xlane.xlu1 %2572 }
0x1a0e   : > { %5027 = vrcp.f32 %v2573_v13  ;;  %v2585_v18 = vand.u32 2147483648, %v2573_v13  ;;  %v2583_v20 = vand.u32 2147483647, %v2573_v13  ;;  %vm2579_vm15 = vweird.f32 %v2573_v13 }
0x1a10   : > { %v2586_v22 = vor.u32 1.1754944e-38, %v2585_v18  ;;  %vm2584_vm4 = vcmp.eq.f32.partialorder %v2583_v20, 8.507059e+37 }
0x1a14   : > { %v5028_v14 = vpop.eup %5027 }
0x1a15   : > { %v2575_v15 = vmul.f32 %v5028_v14, %v2573_v13  ;;  %vm2580_vm14 = vweird.f32 %v5028_v14 }
0x1a16   : > { %vm2581_vm3 = vmor %vm2579_vm15, %vm2580_vm14 }
0x1a17   : > { %v2576_v17 = vsub.f32 1.0, %v2575_v15 }
0x1a19   : > { %v2577_v19 = vmul.f32 %v5028_v14, %v2576_v17 }
0x1a1b   : > { %v2578_v4 = vadd.f32 %v5028_v14, %v2577_v19 }
0x1a1d   : > { %v2582_v23 = vsel %vm2581_vm3, %v5028_v14, %v2578_v4 }
0x1a1e   : > { %v2587_v24 = vsel %vm2584_vm4, %v2586_v22, %v2582_v23 }
0x1a1f   : > { %v2588_v25 = vmul.f32 %v5026_v8, %v2587_v24  ;;  %v4893_v8 = vld [vmem:[%s6079_s4 + $0x170] sm:$0xff] }
0x1a21   : > { %v2589_v26 = vpack.c.bf16 %v2588_v25, %v2588_v25 }
0x1a23   : > { %4503 = vmatmul.msk.bf16.vlgmr.msra.gmra.mxu3 %vm727_vm1, %v2589_v26 }
0x1a24   : > { %2825 = vmatpush.bf16.msra.mxu3 %v2816_v9 }
0x1a33   : > { %4532 = vmatmul.msk.bf16.vlgmr.msrb.gmra.mxu3 %vm648_vm0, %v5703_v62 }
0x1aa6   : > { %v2606_v27 = vpop.f32.mrf.mxu3 }
0x1aa7   : > { %v2612_v32 = vpack.c.bf16 %v2606_v27, %v2606_v27 }
0x1aa9   : > { %4505 = vmatmul.msk.bf16.vlgmr.msrb.gmra.mxu0 %vm727_vm1, %v2612_v32 }
0x1aaa   : > { %2855 = vmatpush.bf16.msrb.mxu0 %v4890_v31 }
0x1aae   : > { %v2608_v34 = vpop.f32.mrf.mxu3  ;;  %2856 = vmatpush.bf16.msrb.mxu0 %v4889_v33 }
0x1ab6   : > { %v2707_v35 = vpop.f32.mrf.mxu3 }
0x1ab7   : > { %v2742_v36 = vpack.c.bf16 %v2707_v35, %v2707_v35 }
0x1ab9   : > { %v2747_v38 = vsel %vm727_vm1, %v2742_v36, 0  ;;  %4545 = vmatmul.msk.bf16.vlgmr.msra.gmra.mxu0 %vm648_vm0, %v5703_v62 }
0x1aba   : > { %2756 = vmatpush.bf16.xpose.msra.mxu1 %v2747_v38 }
0x1abe   : > { %v2709_v40 = vpop.f32.mrf.mxu3 }
0x1ac1   : > { %4546 = vmatmul.msk.bf16.vlgmr.msra.gmra.mxu1 %vm727_vm1, %v2741_v41 }
0x1ac2   : > { %2885 = vmatpush.bf16.msrb.mxu1 %v4892_v37 }
0x1ac6   : > { %2886 = vmatpush.bf16.msrb.mxu1 %v4891_v39 }
0x1ac9   : > { %4562 = vmatmul.msk.bf16.vlgmr.msrb.gmra.mxu0 %vm648_vm0, %v5703_v62 }
0x1ad1   : > { %4575 = vmatmul.msk.bf16.vlgmr.msrb.gmra.mxu1 %vm648_vm0, %v5703_v62 }
0x1b26   : > { %v5791_v42 = vpop.f32.mrf.mxu0 }
0x1b27   : > { %v2648_v31 = vadd.f32 %v5748_v1, %v5791_v42  ;;  %v4591_v1 = vld [vmem:[%s6080_s5 + $0x1c] sm:$0xf] }
0x1b28   : > { %v2997_v42 = vsel %vm779_vm2, %v4591_v1, 0 }
0x1b29   : > { %3006 = vmatpush.bf16.msra.mxu1 %v2997_v42 }
0x1b2e   : > { %v2630_v43 = vpop.f32.mrf.mxu0 }
0x1b36   : > { %v2737_v44 = vpop.f32.mrf.mxu0 }
0x1b37   : > { %v2789_v47 = vpack.c.bf16 %v2737_v44, %v2737_v44 }
0x1b39   : > { %v2794_v48 = vsel %vm779_vm2, %v2789_v47, 0 }
0x1b3a   : > { %2803 = vmatpush.bf16.msra.mxu2 %v2794_v48 }
0x1b3e   : > { %v2739_v49 = vpop.f32.mrf.mxu0  ;;  %v2758_v50 = vpop.f32.mrf.mxu1  ;;  %2915 = vmatpush.bf16.msrb.mxu2 %v4894_v7 }
0x1b3f   : > { %v2762_v51 = vmul.f32 0.35355338, %v2758_v50 }
0x1b41   : > { %v2763_v52 = vadd.f32 %v2762_v51, %v5312_v16 }
0x1b42   : > { %2916 = vmatpush.bf16.msrb.mxu2 %v4893_v8 }
0x1b43   : > { %v2764_v53 = vsel %vm727_vm1, %v2763_v52, -inf }
0x1b44   : > { %2765 = vmax.xlane.f32.xlu2 %v2764_v53 }
0x1b46   : > { %v2760_v54 = vpop.f32.mrf.mxu1  ;;  %v2858_v55 = vpop.f32.mrf.mxu0 }
0x1b47   : > { %v2922_v5 = vpack.c.bf16 %v2858_v55, %v2858_v55 }
0x1b4e   : > { %v2860_v56 = vpop.f32.mrf.mxu0  ;;  %v2888_v57 = vpop.f32.mrf.mxu1 }
0x1b4f   : > { %v2923_v59 = vpack.c.bf16 %v2888_v57, %v2888_v57 }
0x1b51   : > { %v2928_v60 = vsel %vm727_vm1, %v2923_v59, 0 }
0x1b52   : > { %2937 = vmatpush.bf16.xpose.msrb.mxu3 %v2928_v60 }
0x1b56   : > { %v2890_v45 = vpop.f32.mrf.mxu1 }
0x1bb7   : > { %v2766_v63 = vpop.xlane.xlu2 %2765 }
0x1bb8   : > { %v2767_v0 = vsub.f32 %v2763_v52, %v2766_v63 }
0x1bba   : > { %v2768_v2 = vmul.f32 1.442695, %v2767_v0 }
0x1bbc   : > { %5029 = vpow2.f32 %v2768_v2 }
0x1bc2   : > { %v5030_v3 = vpop.eup %5029 }
0x1bc3   : > { %v2770_v6 = vsel %vm727_vm1, %v5030_v3, 0.0 }
0x1bc4   : > { %2771 = vadd.xlane.f32.xlu0 %v2770_v6  ;;  %v4898_v6 = vld [vmem:[%s6083_s8 + $0x108] sm:$0xff] }
0x1c37   : > { %v2772_v10 = vpop.xlane.xlu0 %2771 }
0x1c38   : > { %5031 = vrcp.f32 %v2772_v10  ;;  %v2784_v14 = vand.u32 2147483648, %v2772_v10  ;;  %v2782_v17 = vand.u32 2147483647, %v2772_v10  ;;  %vm2778_vm7 = vweird.f32 %v2772_v10 }
0x1c3a   : > { %v2785_v19 = vor.u32 1.1754944e-38, %v2784_v14  ;;  %vm2783_vm9 = vcmp.eq.f32.partialorder %v2782_v17, 8.507059e+37  ;;  %v4896_v14 = vld [vmem:[%s6083_s8 + $0xc8] sm:$0xff]  ;;  %v4895_v17 = vld [vmem:[%s6083_s8 + $0xc0] sm:$0xff] }
0x1c3e   : > { %v5032_v11 = vpop.eup %5031 }
0x1c3f   : > { %v2774_v12 = vmul.f32 %v5032_v11, %v2772_v10  ;;  %vm2779_vm6 = vweird.f32 %v5032_v11 }
0x1c40   : > { %vm2780_vm8 = vmor %vm2778_vm7, %vm2779_vm6 }
0x1c41   : > { %v2775_v13 = vsub.f32 1.0, %v2774_v12 }
0x1c43   : > { %v2776_v15 = vmul.f32 %v5032_v11, %v2775_v13  ;;  %v5836_v13 = vld [vmem:[%s5451_s21] sm:$0xff] }
0x1c45   : > { %v2777_v18 = vadd.f32 %v5032_v11, %v2776_v15  ;;  %v4902_v15 = vld [vmem:[%s6083_s8 + $0xd8] sm:$0xff] }
0x1c47   : > { %v2781_v20 = vsel %vm2780_vm8, %v5032_v11, %v2777_v18  ;;  %v4901_v18 = vld [vmem:[%s6083_s8 + $0xd0] sm:$0xff] }
0x1c48   : > { %v2786_v4 = vsel %vm2783_vm9, %v2785_v19, %v2781_v20 }
0x1c49   : > { %v2787_v22 = vmul.f32 %v5030_v3, %v2786_v4 }
0x1c4b   : > { %v2788_v23 = vpack.c.bf16 %v2787_v22, %v2787_v22 }
0x1c4d   : > { %4547 = vmatmul.msk.bf16.vlgmr.msra.gmra.mxu2 %vm727_vm1, %v2788_v23 }
0x1c4e   : > { %3075 = vmatpush.bf16.msra.mxu2 %v4896_v14 }
0x1c52   : > { %3076 = vmatpush.bf16.msra.mxu2 %v4895_v17 }
0x1c5d   : > { %4588 = vmatmul.msk.bf16.vlgmr.msrb.gmra.mxu2 %vm648_vm0, %v5703_v62 }
0x1cd0   : > { %v2805_v24 = vpop.f32.mrf.mxu2 }
0x1cd1   : > { %v2811_v25 = vpack.c.bf16 %v2805_v24, %v2805_v24 }
0x1cd3   : > { %4549 = vmatmul.msk.bf16.vlgmr.msra.gmra.mxu3 %vm727_vm1, %v2811_v25 }
0x1cd4   : > { %3105 = vmatpush.bf16.msra.mxu3 %v4898_v6 }
0x1cd8   : > { %v2807_v26 = vpop.f32.mrf.mxu2 }
0x1ce0   : > { %v2918_v28 = vpop.f32.mrf.mxu2 }
0x1ce1   : > { %v2970_v29 = vpack.c.bf16 %v2918_v28, %v2918_v28 }
0x1ce3   : > { %v2975_v30 = vsel %vm779_vm2, %v2970_v29, 0  ;;  %4589 = vmatmul.msk.bf16.vlgmr.msrb.gmra.mxu3 %vm727_vm1, %v2922_v5  ;;  %v4973_v5 = vld [vmem:[%s6081_s6 + $0x1] ss:$0 sm:$0xff] }
0x1ce4   : > { %2984 = vmatpush.bf16.msra.mxu0 %v2975_v30  ;;  %v4974_v30 = vld [vmem:[%s6082_s7 + $0x1] ss:$0 sm:$0xff] }
0x1ce8   : > { %v2920_v27 = vpop.f32.mrf.mxu2 }
0x1d56   : > { %v2827_v32 = vpop.f32.mrf.mxu3 }
0x1d57   : > { %v2831_v33 = vadd.f32 %v2827_v32, %v2648_v31 }
0x1d5e   : > { %v2829_v62 = vpop.f32.mrf.mxu3 }
0x1d66   : > { %v2939_v34 = vpop.f32.mrf.mxu3 }
0x1d67   : > { %v2943_v35 = vmul.f32 0.35355338, %v2939_v34 }
0x1d69   : > { %v2944_v36 = vadd.f32 %v2943_v35, %v5312_v16 }
0x1d6b   : > { %v2945_v37 = vsel %vm727_vm1, %v2944_v36, -inf }
0x1d6c   : > { %2946 = vmax.xlane.f32.xlu1 %v2945_v37 }
0x1d6e   : > { %v2941_v38 = vpop.f32.mrf.mxu3 }
0x1ddf   : > { %v2947_v39 = vpop.xlane.xlu1 %2946 }
0x1de0   : > { %v2948_v40 = vsub.f32 %v2944_v36, %v2947_v39 }
0x1de2   : > { %v2949_v41 = vmul.f32 1.442695, %v2948_v40 }
0x1de4   : > { %5033 = vpow2.f32 %v2949_v41 }
0x1dea   : > { %v5034_v43 = vpop.eup %5033 }
0x1deb   : > { %v2951_v46 = vsel %vm727_vm1, %v5034_v43, 0.0 }
0x1dec   : > { %2952 = vadd.xlane.f32.xlu2 %v2951_v46  ;;  %v4899_v46 = vld [vmem:[%s6083_s8 + $0x140] sm:$0xff] }
0x1e5f   : > { %v2953_v16 = vpop.xlane.xlu2 %2952 }
0x1e60   : > { %5035 = vrcp.f32 %v2953_v16  ;;  %v2965_v48 = vand.u32 2147483648, %v2953_v16  ;;  %v2963_v50 = vand.u32 2147483647, %v2953_v16  ;;  %vm2959_vm12 = vweird.f32 %v2953_v16 }
0x1e62   : > { %v2966_v52 = vor.u32 1.1754944e-38, %v2965_v48  ;;  %vm2964_vm14 = vcmp.eq.f32.partialorder %v2963_v50, 8.507059e+37  ;;  %v4903_v48 = vld [vmem:[%s6083_s8 + $0x110] sm:$0xff] }
0x1e66   : > { %v5036_v9 = vpop.eup %5035 }
0x1e67   : > { %v2955_v44 = vmul.f32 %v5036_v9, %v2953_v16  ;;  %vm2960_vm11 = vweird.f32 %v5036_v9 }
0x1e68   : > { %vm2961_vm13 = vmor %vm2959_vm12, %vm2960_vm11 }
0x1e69   : > { %v2956_v47 = vsub.f32 1.0, %v2955_v44 }
0x1e6b   : > { %v2957_v49 = vmul.f32 %v5036_v9, %v2956_v47  ;;  %v4904_v47 = vld [vmem:[%s6083_s8 + $0x118] sm:$0xff] }
0x1e6d   : > { %v2958_v51 = vadd.f32 %v5036_v9, %v2957_v49 }
0x1e6f   : > { %v2962_v53 = vsel %vm2961_vm13, %v5036_v9, %v2958_v51 }
0x1e70   : > { %v2967_v54 = vsel %vm2964_vm14, %v2966_v52, %v2962_v53 }
0x1e71   : > { %v2968_v55 = vmul.f32 %v5034_v43, %v2967_v54  ;;  %v4900_v43 = vld [vmem:[%s6083_s8 + $0x148] sm:$0xff] }
0x1e72   : > { %3136 = vmatpush.bf16.msrb.mxu0 %v4900_v43 }
0x1e73   : > { %v2969_v56 = vpack.c.bf16 %v2968_v55, %v2968_v55 }
0x1e75   : > { %4590 = vmatmul.msk.bf16.vlgmr.msra.gmra.mxu0 %vm727_vm1, %v2969_v56 }
0x1e76   : > { %3137 = vmatpush.bf16.msrb.mxu0 %v4899_v46 }
0x1e7a   : > { %3265 = vmatpush.bf16.msra.mxu0 %v4904_v47 }
0x1e7e   : > { %3266 = vmatpush.bf16.msra.mxu0 %v4903_v48 }
0x1e85   : > { %4633 = vmatmul.msk.bf16.vlgmr.msrb.gmra.mxu0 %vm648_vm0, %v5836_v13 }
0x1e95   : > { %4662 = vmatmul.msk.bf16.vlgmr.msra.gmra.mxu0 %vm648_vm0, %v5836_v13 }
0x1ef2   : > { %v2986_v57 = vpop.f32.mrf.mxu0 }
0x1ef3   : > { %v2992_v59 = vpack.c.bf16 %v2986_v57, %v2986_v57 }
0x1ef5   : > { %4592 = vmatmul.msk.bf16.vlgmr.msra.gmra.mxu1 %vm727_vm1, %v2992_v59 }
0x1efa   : > { %v2988_v60 = vpop.f32.mrf.mxu0 }
0x1f02   : > { %v3139_v54 = vpop.f32.mrf.mxu0 }
0x1f0a   : > { %v3141_v55 = vpop.f32.mrf.mxu0 }
0x1f0b   : > { %v3192_v56 = vpack.c.bf16 %v3141_v55, %v3139_v54 }
0x1f0d   : > { %3203 = vmatpush.bf16.msrb.mxu2 %v3192_v56 }
0x1f12   : > { %v3268_v57 = vpop.f32.mrf.mxu0 }
0x1f1a   : > { %v3270_v59 = vpop.f32.mrf.mxu0 }
0x1f1b   : > { %v3305_v60 = vpack.c.bf16 %v3270_v59, %v3268_v57  ;;  %v4678_v57 = vld [vmem:[%s6084_s9 + $0x14] sm:$0xf] }
0x1f1c   : > { %v3376_v59 = vsel %vm779_vm2, %v4678_v57, 0 }
0x1f1d   : > { %3385 = vmatpush.bf16.msrb.mxu0 %v3376_v59 }
0x1f72   : > { %v3008_v45 = vpop.f32.mrf.mxu1 }
0x1f73   : > { %v3012_v63 = vadd.f32 %v3008_v45, %v2831_v33  ;;  %v3310_v45 = vsel %vm727_vm1, %v3305_v60, 0  ;;  %v4912_v60 = vld [vmem:[%s6083_s8 + $0x168] sm:$0xff] }
0x1f74   : > { %3494 = vmatpush.bf16.msra.mxu0 %v4912_v60 }
0x1f75   : > { %v3013_v0 = vadd.f32 %v3012_v63, %v5699_v61  ;;  %v4897_v61 = vld [vmem:[%s6083_s8 + $0x100] sm:$0xff] }
0x1f76   : > { %3106 = vmatpush.bf16.msra.mxu3 %v4897_v61 }
0x1f77   : > { %v3018_v2 = vsel %vm648_vm0, %v3013_v0, 0.0 }
0x1f78   : > { %3019 = vadd.xlane.f32.xlu0 %v3018_v2 }
0x1f79   : > { %4620 = vmatmul.msk.bf16.vlgmr.msra.gmra.mxu3 %vm648_vm0, %v5836_v13 }
0x1f7a   : > { %v3010_v3 = vpop.f32.mrf.mxu1  ;;  %3235 = vmatpush.bf16.msrb.mxu3 %v4902_v15  ;;  %v4908_v15 = vld [vmem:[%s6083_s8 + $0xe8] sm:$0xff] }
0x1f7e   : > { %3236 = vmatpush.bf16.msrb.mxu3 %v4901_v18  ;;  %v4906_v18 = vld [vmem:[%s6083_s8 + $0x158] sm:$0xff] }
0x1feb   : > { %v3020_v7 = vpop.xlane.xlu0 %3019 }
0x1fec   : > { %v3021_v8 = vmul.f32 %v3020_v7, %v5443_v21 }
0x1fee   : > { %v3022_v10 = vsub.f32 %v3013_v0, %v3021_v8 }
0x1ff0   : > { %v3023_v11 = vmul.f32 %v3022_v10, %v3022_v10 }
0x1ff2   : > { %v3024_v12 = vsel %vm648_vm0, %v3023_v11, 0.0 }
0x1ff3   : > { %3025 = vadd.xlane.f32.xlu1 %v3024_v12 }
0x1ffc   : > { %v3108_v62 = vpop.f32.mrf.mxu3 }
0x2004   : > { %v3110_v34 = vpop.f32.mrf.mxu3 }
0x2005   : > { %v3145_v35 = vpack.c.bf16 %v3110_v34, %v3108_v62 }
0x2007   : > { %v3150_v36 = vsel %vm727_vm1, %v3145_v35, 0 }
0x2008   : > { %3159 = vmatpush.bf16.xpose.msrb.mxu1 %v3150_v36 }
0x2010   : > { %3296 = vmatpush.bf16.msra.mxu1 %v4906_v18 }
0x2066   : > { %v3026_v19 = vpop.xlane.xlu1 %3025 }
0x2067   : > { %v3027_v20 = vmul.f32 %v3026_v19, %v5443_v21  ;;  %v4907_v19 = vld [vmem:[%s6083_s8 + $0xe0] sm:$0xff] }
0x2069   : > { %v3028_v4 = vadd.f32 1e-05, %v3027_v20  ;;  %v4905_v20 = vld [vmem:[%s6083_s8 + $0x150] sm:$0xff] }
0x206a   : > { %3297 = vmatpush.bf16.msra.mxu1 %v4905_v20 }
0x206b   : > { %5037 = vrsqrt.f32 %v3028_v4  ;;  %vm3035_vm3 = vweird.f32 %v3028_v4 }
0x2071   : > { %v5038_v22 = vpop.eup %5037 }
0x2072   : > { %v3030_v23 = vmul.f32 %v5038_v22, %v3028_v4  ;;  %vm3036_vm15 = vweird.f32 %v5038_v22 }
0x2073   : > { %vm3037_vm4 = vmor %vm3035_vm3, %vm3036_vm15 }
0x2074   : > { %v3031_v24 = vmul.f32 %v5038_v22, %v3030_v23 }
0x2076   : > { %v3032_v25 = vmul.f32 0.5, %v3031_v24 }
0x2078   : > { %v3033_v26 = vsub.f32 1.5, %v3032_v25 }
0x207a   : > { %v3034_v28 = vmul.f32 %v5038_v22, %v3033_v26 }
0x207c   : > { %v3038_v29 = vsel %vm3037_vm4, %v5038_v22, %v3034_v28  ;;  %v4636_v22 = vld [vmem:[%s6084_s9 + $0x10] sm:$0xf] }
0x207d   : > { %v3039_v27 = vmul.f32 %v3038_v29, %v3022_v10  ;;  %v3395_v23 = vsel %vm779_vm2, %v4636_v22, 0 }
0x207f   : > { %v3043_v31 = vmul.f32 %v4973_v5, %v3039_v27 }
0x2081   : > { %v5859_v32 = vadd.f32 %v4974_v30, %v3043_v31 }
0x2083   : > { %v5863_v33 = vpack.c.bf16 %v5859_v32, %v5859_v32 }
0x2085   : > { %4607 = vmatmul.msk.bf16.vlgmr.msra.gmra.mxu2 %vm648_vm0, %v5863_v33  ;;  %4649 = vmatmul.msk.bf16.vlgmr.msrb.gmra.mxu3 %vm648_vm0, %v5863_v33 }
0x2086   : > { %3319 = vmatpush.bf16.xpose.msra.mxu2 %v3310_v45  ;;  %v4911_v45 = vld [vmem:[%s6083_s8 + $0x160] sm:$0xff] }
0x2087   : > { %3495 = vmatpush.bf16.msra.mxu0 %v4911_v45 }
0x2108   : > { %v3078_v37 = vpop.f32.mrf.mxu2  ;;  %v5870_v38 = vpop.f32.mrf.mxu3 }
0x2109   : > { %v3144_v39 = vpack.c.bf16 %v3078_v37, %v3078_v37  ;;  %v3304_v4 = vpack.c.bf16 %v5870_v38, %v5870_v38 }
0x210b   : > { %4634 = vmatmul.msk.bf16.vlgmr.msrb.gmra.mxu1 %vm727_vm1, %v3144_v39 }
0x210c   : > { %3404 = vmatpush.bf16.msrb.mxu1 %v3395_v23 }
0x2110   : > { %v3080_v40 = vpop.f32.mrf.mxu2  ;;  %v3240_v41 = vpop.f32.mrf.mxu3 }
0x211b   : > { %4675 = vmatmul.msk.bf16.vlgmr.msra.gmra.mxu1 %vm648_vm0, %v5836_v13 }
0x2188   : > { %v3161_v1 = vpop.f32.mrf.mxu1 }
0x2189   : > { %v3165_v42 = vmul.f32 0.35355338, %v3161_v1  ;;  %v4910_v1 = vld [vmem:[%s6083_s8 + $0x128] sm:$0xff] }
0x218b   : > { %v3166_v16 = vadd.f32 %v3165_v42, %v5506_v58  ;;  %v4909_v42 = vld [vmem:[%s6083_s8 + $0x120] sm:$0xff] }
0x218d   : > { %v3167_v9 = vsel %vm1526_vm10, %v3166_v16, -inf }
0x218e   : > { %3168 = vmax.xlane.f32.xlu2 %v3167_v9 }
0x2190   : > { %v3163_v44 = vpop.f32.mrf.mxu1 }
0x2198   : > { %v3299_v28 = vpop.f32.mrf.mxu1 }
0x21a0   : > { %v3301_v29 = vpop.f32.mrf.mxu1 }
0x21a1   : > { %v3352_v27 = vpack.c.bf16 %v3301_v29, %v3299_v28 }
0x21a3   : > { %3363 = vmatpush.bf16.msra.mxu3 %v3352_v27  ;;  %v4915_v27 = vld [vmem:[%s6083_s8 + $0x130] sm:$0xff] }
0x21a7   : > { %3463 = vmatpush.bf16.msrb.mxu3 %v4910_v1 }
0x21ab   : > { %3464 = vmatpush.bf16.msrb.mxu3 %v4909_v42 }
0x2201   : > { %v3169_v49 = vpop.xlane.xlu2 %3168 }
0x2202   : > { %v3170_v50 = vsub.f32 %v3166_v16, %v3169_v49 }
0x2204   : > { %v3171_v51 = vmul.f32 1.442695, %v3170_v50 }
0x2206   : > { %5039 = vpow2.f32 %v3171_v51 }
0x220c   : > { %v5040_v52 = vpop.eup %5039 }
0x220d   : > { %v3173_v53 = vsel %vm1526_vm10, %v5040_v52, 0.0 }
0x220e   : > { %3174 = vadd.xlane.f32.xlu0 %v3173_v53 }
0x2281   : > { %v3175_v63 = vpop.xlane.xlu0 %3174 }
0x2282   : > { %5041 = vrcp.f32 %v3175_v63  ;;  %v3187_v6 = vand.u32 2147483648, %v3175_v63  ;;  %v3185_v8 = vand.u32 2147483647, %v3175_v63  ;;  %vm3181_vm7 = vweird.f32 %v3175_v63 }
0x2284   : > { %v3188_v11 = vor.u32 1.1754944e-38, %v3187_v6  ;;  %vm3186_vm9 = vcmp.eq.f32.partialorder %v3185_v8, 8.507059e+37 }
0x2288   : > { %v5042_v0 = vpop.eup %5041 }
0x2289   : > { %v3177_v2 = vmul.f32 %v5042_v0, %v3175_v63  ;;  %vm3182_vm6 = vweird.f32 %v5042_v0 }
0x228a   : > { %vm3183_vm8 = vmor %vm3181_vm7, %vm3182_vm6 }
0x228b   : > { %v3178_v3 = vsub.f32 1.0, %v3177_v2 }
0x228d   : > { %v3179_v7 = vmul.f32 %v5042_v0, %v3178_v3  ;;  %v4913_v3 = vld [vmem:[%s6083_s8 + $0xf0] sm:$0xff] }
0x228f   : > { %v3180_v10 = vadd.f32 %v5042_v0, %v3179_v7 }
0x2291   : > { %v3184_v12 = vsel %vm3183_vm8, %v5042_v0, %v3180_v10  ;;  %v4914_v0 = vld [vmem:[%s6083_s8 + $0xf8] sm:$0xff] }
0x2292   : > { %v3189_v61 = vsel %vm3186_vm9, %v3188_v11, %v3184_v12 }
0x2293   : > { %v3190_v14 = vmul.f32 %v5040_v52, %v3189_v61 }
0x2295   : > { %v3191_v17 = vpack.c.bf16 %v3190_v14, %v3190_v14 }
0x2297   : > { %4635 = vmatmul.msk.bf16.vlgmr.msrb.gmra.mxu2 %vm1526_vm10, %v3191_v17 }
0x2298   : > { %3433 = vmatpush.bf16.msrb.mxu2 %v4908_v15 }
0x229c   : > { %3434 = vmatpush.bf16.msrb.mxu2 %v4907_v19 }
0x22a7   : > { %4676 = vmatmul.msk.bf16.vlgmr.msra.gmra.mxu2 %vm727_vm1, %v3304_v4 }
0x22b7   : > { %4693 = vmatmul.msk.bf16.vlgmr.msrb.gmra.mxu2 %vm648_vm0, %v5863_v33 }
0x231a   : > { %v3205_v24 = vpop.f32.mrf.mxu2 }
0x231b   : > { %v3211_v25 = vpack.c.bf16 %v3205_v24, %v3205_v24 }
0x231d   : > { %4680 = vmatmul.msk.bf16.vlgmr.msrb.gmra.mxu1 %vm727_vm1, %v3211_v25 }
0x2322   : > { %v3207_v26 = vpop.f32.mrf.mxu2 }
0x232a   : > { %v3321_v5 = vpop.f32.mrf.mxu2 }
0x232b   : > { %v3325_v30 = vmul.f32 0.35355338, %v3321_v5 }
0x232d   : > { %v3326_v31 = vadd.f32 %v3325_v30, %v5506_v58  ;;  %v4916_v30 = vld [vmem:[%s6083_s8 + $0x138] sm:$0xff] }
0x232f   : > { %v3327_v62 = vsel %vm1526_vm10, %v3326_v31, -inf }
0x2330   : > { %3328 = vmax.xlane.f32.xlu1 %v3327_v62 }
0x2332   : > { %v3323_v34 = vpop.f32.mrf.mxu2 }
0x233a   : > { %v3436_v35 = vpop.f32.mrf.mxu2 }
0x233b   : > { %v3502_v12 = vpack.c.bf16 %v3436_v35, %v3436_v35 }
0x2342   : > { %v3438_v36 = vpop.f32.mrf.mxu2 }
0x239a   : > { %v5920_v37 = vpop.f32.mrf.mxu1 }
0x23a2   : > { %v3408_v38 = vpop.f32.mrf.mxu1 }
0x23a3   : > { %v3329_v39 = vpop.xlane.xlu1 %3328 }
0x23a4   : > { %v3330_v40 = vsub.f32 %v3326_v31, %v3329_v39 }
0x23a6   : > { %v3331_v41 = vmul.f32 1.442695, %v3330_v40 }
0x23a8   : > { %5043 = vpow2.f32 %v3331_v41 }
0x23ae   : > { %v5044_v43 = vpop.eup %5043 }
0x23af   : > { %v3333_v46 = vsel %vm1526_vm10, %v5044_v43, 0.0 }
0x23b0   : > { %3334 = vadd.xlane.f32.xlu2 %v3333_v46 }
0x2423   : > { %v3335_v16 = vpop.xlane.xlu2 %3334 }
0x2424   : > { %5045 = vrcp.f32 %v3335_v16  ;;  %v3347_v48 = vand.u32 2147483648, %v3335_v16  ;;  %v3345_v50 = vand.u32 2147483647, %v3335_v16  ;;  %vm3341_vm12 = vweird.f32 %v3335_v16 }
0x2426   : > { %v3348_v52 = vor.u32 1.1754944e-38, %v3347_v48  ;;  %vm3346_vm14 = vcmp.eq.f32.partialorder %v3345_v50, 8.507059e+37 }
0x242a   : > { %v5046_v9 = vpop.eup %5045 }
0x242b   : > { %v3337_v44 = vmul.f32 %v5046_v9, %v3335_v16  ;;  %vm3342_vm11 = vweird.f32 %v5046_v9  ;;  %v4722_v16 = vld [vmem:[%s6084_s9 + $0x18] sm:$0xf] }
0x242c   : > { %vm3343_vm13 = vmor %vm3341_vm12, %vm3342_vm11 }
0x242d   : > { %v3338_v47 = vsub.f32 1.0, %v3337_v44 }
0x242f   : > { %v3339_v49 = vmul.f32 %v5046_v9, %v3338_v47 }
0x2431   : > { %v3340_v51 = vadd.f32 %v5046_v9, %v3339_v49 }
0x2433   : > { %v3344_v53 = vsel %vm3343_vm13, %v5046_v9, %v3340_v51  ;;  %v3574_v9 = vsel %vm779_vm2, %v4722_v16, 0 }
0x2434   : > { %v3349_v54 = vsel %vm3346_vm14, %v3348_v52, %v3344_v53 }
0x2435   : > { %v3350_v55 = vmul.f32 %v5044_v43, %v3349_v54  ;;  %v4918_v54 = vld [vmem:[%s6083_s8 + $0x178] sm:$0xff] }
0x2437   : > { %v3351_v56 = vpack.c.bf16 %v3350_v55, %v3350_v55  ;;  %v4917_v55 = vld [vmem:[%s6083_s8 + $0x170] sm:$0xff] }
0x2439   : > { %4677 = vmatmul.msk.bf16.vlgmr.msra.gmra.mxu3 %vm1526_vm10, %v3351_v56 }
0x243a   : > { %3583 = vmatpush.bf16.msra.mxu3 %v3574_v9 }
0x2449   : > { %4706 = vmatmul.msk.bf16.vlgmr.msrb.gmra.mxu3 %vm648_vm0, %v5836_v13 }
0x24bc   : > { %v3365_v63 = vpop.f32.mrf.mxu3 }
0x24bd   : > { %v3371_v2 = vpack.c.bf16 %v3365_v63, %v3365_v63 }
0x24bf   : > { %4679 = vmatmul.msk.bf16.vlgmr.msrb.gmra.mxu0 %vm727_vm1, %v3371_v2 }
0x24c0   : > { %3613 = vmatpush.bf16.msrb.mxu0 %v4914_v0 }
0x24c4   : > { %v3367_v6 = vpop.f32.mrf.mxu3  ;;  %3614 = vmatpush.bf16.msrb.mxu0 %v4913_v3 }
0x24cc   : > { %v3466_v7 = vpop.f32.mrf.mxu3 }
0x24cf   : > { %4719 = vmatmul.msk.bf16.vlgmr.msra.gmra.mxu0 %vm648_vm0, %v5836_v13 }
0x24d4   : > { %v3468_v8 = vpop.f32.mrf.mxu3 }
0x24d5   : > { %v3503_v10 = vpack.c.bf16 %v3468_v8, %v3466_v7 }
0x24d7   : > { %v3508_v11 = vsel %vm727_vm1, %v3503_v10, 0 }
0x24d8   : > { %3517 = vmatpush.bf16.xpose.msra.mxu1 %v3508_v11 }
0x24df   : > { %4720 = vmatmul.msk.bf16.vlgmr.msra.gmra.mxu1 %vm727_vm1, %v3502_v12  ;;  %4736 = vmatmul.msk.bf16.vlgmr.msrb.gmra.mxu0 %vm648_vm0, %v5863_v33 }
0x24e0   : > { %3643 = vmatpush.bf16.msrb.mxu1 %v4916_v30 }
0x24e4   : > { %3644 = vmatpush.bf16.msrb.mxu1 %v4915_v27 }
0x24ef   : > { %4749 = vmatmul.msk.bf16.vlgmr.msrb.gmra.mxu1 %vm648_vm0, %v5836_v13 }
0x253c   : > { %v5955_v61 = vpop.f32.mrf.mxu0 }
0x253d   : > { %v3407_v56 = vadd.f32 %v5920_v37, %v5955_v61 }
0x2544   : > { %v3389_v14 = vpop.f32.mrf.mxu0 }
0x254c   : > { %v3497_v15 = vpop.f32.mrf.mxu0 }
0x2554   : > { %v3499_v17 = vpop.f32.mrf.mxu0 }
0x2555   : > { %v3550_v18 = vpack.c.bf16 %v3499_v17, %v3497_v15 }
0x2557   : > { %3561 = vmatpush.bf16.msra.mxu2 %v3550_v18 }
0x255b   : > { %3674 = vmatpush.bf16.msrb.mxu2 %v4918_v54 }
0x255c   : > { %v3519_v19 = vpop.f32.mrf.mxu1  ;;  %v3616_v20 = vpop.f32.mrf.mxu0 }
0x255d   : > { %v3523_v4 = vmul.f32 0.35355338, %v3519_v19  ;;  %v3682_v53 = vpack.c.bf16 %v3616_v20, %v3616_v20 }
0x255f   : > { %v3524_v22 = vadd.f32 %v3523_v4, %v5506_v58  ;;  %3675 = vmatpush.bf16.msrb.mxu2 %v4917_v55 }
0x2561   : > { %v3525_v23 = vsel %vm1526_vm10, %v3524_v22, -inf }
0x2562   : > { %3526 = vmax.xlane.f32.xlu0 %v3525_v23 }
0x2564   : > { %v3521_v24 = vpop.f32.mrf.mxu1  ;;  %v3618_v25 = vpop.f32.mrf.mxu0 }
0x256c   : > { %v3646_v44 = vpop.f32.mrf.mxu1 }
0x2574   : > { %v3648_v47 = vpop.f32.mrf.mxu1 }
0x2575   : > { %v3683_v48 = vpack.c.bf16 %v3648_v47, %v3646_v44 }
0x2577   : > { %v3688_v49 = vsel %vm727_vm1, %v3683_v48, 0 }
0x2578   : > { %3697 = vmatpush.bf16.xpose.msrb.mxu3 %v3688_v49 }
0x25d5   : > { %v3527_v26 = vpop.xlane.xlu0 %3526 }
0x25d6   : > { %v3528_v28 = vsub.f32 %v3524_v22, %v3527_v26 }
0x25d8   : > { %v3529_v33 = vmul.f32 1.442695, %v3528_v28 }
0x25da   : > { %5047 = vpow2.f32 %v3529_v33 }
0x25e0   : > { %v5048_v5 = vpop.eup %5047 }
0x25e1   : > { %v3531_v29 = vsel %vm1526_vm10, %v5048_v5, 0.0 }
0x25e2   : > { %3532 = vadd.xlane.f32.xlu1 %v3531_v29 }
0x2655   : > { %v3533_v31 = vpop.xlane.xlu1 %3532 }
0x2656   : > { %5049 = vrcp.f32 %v3533_v31  ;;  %v3545_v36 = vand.u32 2147483648, %v3533_v31  ;;  %v3543_v39 = vand.u32 2147483647, %v3533_v31  ;;  %vm3539_vm3 = vweird.f32 %v3533_v31 }
0x2658   : > { %v3546_v41 = vor.u32 1.1754944e-38, %v3545_v36  ;;  %vm3544_vm6 = vcmp.eq.f32.partialorder %v3543_v39, 8.507059e+37 }
0x265c   : > { %v5050_v62 = vpop.eup %5049 }
0x265d   : > { %v3535_v34 = vmul.f32 %v5050_v62, %v3533_v31  ;;  %vm3540_vm15 = vweird.f32 %v5050_v62 }
0x265e   : > { %vm3541_vm4 = vmor %vm3539_vm3, %vm3540_vm15 }
0x265f   : > { %v3536_v35 = vsub.f32 1.0, %v3535_v34 }
0x2661   : > { %v3537_v38 = vmul.f32 %v5050_v62, %v3536_v35 }
0x2663   : > { %v3538_v40 = vadd.f32 %v5050_v62, %v3537_v38 }
0x2665   : > { %v3542_v43 = vsel %vm3541_vm4, %v5050_v62, %v3538_v40 }
0x2666   : > { %v3547_v46 = vsel %vm3544_vm6, %v3546_v41, %v3542_v43  ;;  %v4920_v41 = vld [vmem:[%s6087_s12 + $0x18] sm:$0xff] }
0x2667   : > { %v3548_v1 = vmul.f32 %v5048_v5, %v3547_v46  ;;  %v4924_v43 = vld [vmem:[%s6089_s14 + $0x38] sm:$0xff] }
0x2669   : > { %v3549_v42 = vpack.c.bf16 %v3548_v1, %v3548_v1 }
0x266b   : > { %4721 = vmatmul.msk.bf16.vlgmr.msra.gmra.mxu2 %vm1526_vm10, %v3549_v42  ;;  %v4923_v42 = vld [vmem:[%s6089_s14 + $0x30] sm:$0xff] }
0x266c   : > { %3837 = vmatpush.bf16.msra.mxu2 %v4920_v41 }
0x267b   : > { %4762 = vmatmul.msk.bf16.vlgmr.msrb.gmra.mxu2 %vm648_vm0, %v5836_v13 }
0x26ee   : > { %v3563_v50 = vpop.f32.mrf.mxu2 }
0x26ef   : > { %v3569_v51 = vpack.c.bf16 %v3563_v50, %v3563_v50 }
0x26f1   : > { %4723 = vmatmul.msk.bf16.vlgmr.msra.gmra.mxu3 %vm727_vm1, %v3569_v51  ;;  %v4975_v51 = vld [vmem:[%s6085_s10 + $0x1] ss:$0 sm:$0xff] }
0x26f2   : > { %3891 = vmatpush.bf16.msra.mxu3 %v4924_v43 }
0x26f6   : > { %v3565_v52 = vpop.f32.mrf.mxu2  ;;  %3892 = vmatpush.bf16.msra.mxu3 %v4923_v42 }
0x26fe   : > { %v3677_v11 = vpop.f32.mrf.mxu2 }
0x2701   : > { %4763 = vmatmul.msk.bf16.vlgmr.msrb.gmra.mxu3 %vm727_vm1, %v3682_v53  ;;  %v4976_v53 = vld [vmem:[%s6086_s11 + $0x1] ss:$0 sm:$0xff] }
0x2706   : > { %v3679_v12 = vpop.f32.mrf.mxu2 }
0x2707   : > { %v3730_v13 = vpack.c.bf16 %v3679_v12, %v3677_v11 }
0x2709   : > { %3741 = vmatpush.bf16.msra.mxu0 %v3730_v13 }
0x2774   : > { %v3585_v57 = vpop.f32.mrf.mxu3 }
0x2775   : > { %v3589_v59 = vadd.f32 %v3585_v57, %v3407_v56 }
0x277c   : > { %v3587_v60 = vpop.f32.mrf.mxu3 }
0x277d   : > { %v4921_v60 = vld [vmem:[%s6089_s14 + $0x20] sm:$0xff] }
0x2784   : > { %v3699_v45 = vpop.f32.mrf.mxu3 }
0x2785   : > { %v3703_v63 = vmul.f32 0.35355338, %v3699_v45  ;;  %v4977_v45 = vld [vmem:[%s6088_s13 + $0x1] ss:$0 sm:$0xff] }
0x2787   : > { %v3704_v0 = vadd.f32 %v3703_v63, %v5506_v58  ;;  %v4765_v58 = vld [vmem:[%s6084_s9 + $0x1c] sm:$0xf] }
0x2788   : > { %v3754_v61 = vsel %vm779_vm2, %v4765_v58, 0 }
0x2789   : > { %v3705_v2 = vsel %vm1526_vm10, %v3704_v0, -inf  ;;  %3763 = vmatpush.bf16.msra.mxu1 %v3754_v61 }
0x278a   : > { %3706 = vmax.xlane.f32.xlu2 %v3705_v2 }
0x278c   : > { %v3701_v3 = vpop.f32.mrf.mxu3 }
0x27fd   : > { %v3707_v6 = vpop.xlane.xlu2 %3706 }
0x27fe   : > { %v3708_v7 = vsub.f32 %v3704_v0, %v3707_v6 }
0x2800   : > { %v3709_v8 = vmul.f32 1.442695, %v3708_v7  ;;  %v4978_v7 = vld [vmem:[%s6090_s15 + $0x1] ss:$0 sm:$0xff] }
0x2802   : > { %5051 = vpow2.f32 %v3709_v8 }
0x2808   : > { %v5052_v10 = vpop.eup %5051 }
0x2809   : > { %v3711_v37 = vsel %vm1526_vm10, %v5052_v10, 0.0 }
0x280a   : > { %3712 = vadd.xlane.f32.xlu0 %v3711_v37 }
0x287d   : > { %v3713_v14 = vpop.xlane.xlu0 %3712 }
0x287e   : > { %5053 = vrcp.f32 %v3713_v14  ;;  %v3725_v19 = vand.u32 2147483648, %v3713_v14  ;;  %v3723_v4 = vand.u32 2147483647, %v3713_v14  ;;  %vm3719_vm8 = vweird.f32 %v3713_v14 }
0x2880   : > { %v3726_v23 = vor.u32 1.1754944e-38, %v3725_v19  ;;  %vm3724_vm11 = vcmp.eq.f32.partialorder %v3723_v4, 8.507059e+37 }
0x2884   : > { %v5054_v15 = vpop.eup %5053 }
0x2885   : > { %v3715_v17 = vmul.f32 %v5054_v15, %v3713_v14  ;;  %vm3720_vm7 = vweird.f32 %v5054_v15 }
0x2886   : > { %vm3721_vm9 = vmor %vm3719_vm8, %vm3720_vm7 }
0x2887   : > { %v3716_v18 = vsub.f32 1.0, %v3715_v17 }
0x2889   : > { %v3717_v20 = vmul.f32 %v5054_v15, %v3716_v18 }
0x288b   : > { %v3718_v22 = vadd.f32 %v5054_v15, %v3717_v20 }
0x288d   : > { %v3722_v24 = vsel %vm3721_vm9, %v5054_v15, %v3718_v22 }
0x288e   : > { %v3727_v25 = vsel %vm3724_vm11, %v3726_v23, %v3722_v24 }
0x288f   : > { %v3728_v26 = vmul.f32 %v5052_v10, %v3727_v25 }
0x2891   : > { %v3729_v28 = vpack.c.bf16 %v3728_v26, %v3728_v26  ;;  %v4979_v26 = vld [vmem:[%s6091_s16 + $0x1] ss:$0 sm:$0xff] }
0x2893   : > { %4764 = vmatmul.msk.bf16.vlgmr.msra.gmra.mxu0 %vm1526_vm10, %v3729_v28 }
0x2910   : > { %v3743_v33 = vpop.f32.mrf.mxu0 }
0x2911   : > { %v3749_v5 = vpack.c.bf16 %v3743_v33, %v3743_v33  ;;  %v4980_v33 = vld [vmem:[%s6092_s17 + $0x1] ss:$0 sm:$0xff] }
0x2913   : > { %4766 = vmatmul.msk.bf16.vlgmr.msra.gmra.mxu1 %vm727_vm1, %v3749_v5 }
0x2918   : > { %v3745_v29 = vpop.f32.mrf.mxu0 }
0x2990   : > { %v3765_v30 = vpop.f32.mrf.mxu1 }
0x2991   : > { %v3769_v27 = vadd.f32 %v3765_v30, %v3589_v59  ;;  %v4922_v59 = vld [vmem:[%s6089_s14 + $0x28] sm:$0xff] }
0x2992   : > { %3893 = vmatpush.bf16.msra.mxu3 %v4922_v59 }
0x2993   : > { %v3770_v31 = vadd.f32 %v3769_v27, %v5859_v32  ;;  %v4919_v32 = vld [vmem:[%s6087_s12 + $0x10] sm:$0xff] }
0x2994   : > { %3838 = vmatpush.bf16.msra.mxu2 %v4919_v32 }
0x2995   : > { %v3775_v62 = vsel %vm648_vm0, %v3770_v31, 0.0 }
0x2996   : > { %3776 = vadd.xlane.f32.xlu1 %v3775_v62  ;;  %3894 = vmatpush.bf16.msra.mxu3 %v4921_v60 }
0x2998   : > { %v3767_v34 = vpop.f32.mrf.mxu1 }
0x2a09   : > { %v3777_v35 = vpop.xlane.xlu1 %3776 }
0x2a0a   : > { %v3778_v36 = vmul.f32 %v3777_v35, %v5443_v21 }
0x2a0c   : > { %v3779_v38 = vsub.f32 %v3770_v31, %v3778_v36 }
0x2a0e   : > { %v3780_v39 = vmul.f32 %v3779_v38, %v3779_v38 }
0x2a10   : > { %v3781_v40 = vsel %vm648_vm0, %v3780_v39, 0.0 }
0x2a11   : > { %3782 = vadd.xlane.f32.xlu2 %v3781_v40 }
0x2a84   : > { %v3783_v46 = vpop.xlane.xlu2 %3782 }
0x2a85   : > { %v3784_v1 = vmul.f32 %v3783_v46, %v5443_v21 }
0x2a87   : > { %v3785_v16 = vadd.f32 1e-05, %v3784_v1 }
0x2a89   : > { %5055 = vrsqrt.f32 %v3785_v16  ;;  %vm3792_vm2 = vweird.f32 %v3785_v16 }
0x2a8f   : > { %v5056_v9 = vpop.eup %5055 }
0x2a90   : > { %v3787_v44 = vmul.f32 %v5056_v9, %v3785_v16  ;;  %vm3793_vm1 = vweird.f32 %v5056_v9 }
0x2a91   : > { %vm3794_vm10 = vmor %vm3792_vm2, %vm3793_vm1 }
0x2a92   : > { %v3788_v47 = vmul.f32 %v5056_v9, %v3787_v44 }
0x2a94   : > { %v3789_v48 = vmul.f32 0.5, %v3788_v47 }
0x2a96   : > { %v3790_v49 = vsub.f32 1.5, %v3789_v48 }
0x2a98   : > { %v3791_v50 = vmul.f32 %v5056_v9, %v3790_v49 }
0x2a9a   : > { %v3795_v52 = vsel %vm3794_vm10, %v5056_v9, %v3791_v50 }
0x2a9b   : > { %v3796_v54 = vmul.f32 %v3795_v52, %v3779_v38 }
0x2a9d   : > { %v3800_v55 = vmul.f32 %v4975_v51, %v3796_v54 }
0x2a9f   : > { %v3804_v56 = vadd.f32 %v4976_v53, %v3800_v55 }
0x2aa1   : > { %v3810_v57 = vpack.c.bf16 %v3804_v56, %v3804_v56 }
0x2aa3   : > { %4782 = vmatmul.msk.bf16.vlgmr.msra.gmra.mxu2 %vm648_vm0, %v3810_v57 }
0x2b26   : > { %v3840_v63 = vpop.f32.mrf.mxu2 }
0x2b27   : > { %v3841_v0 = vadd.f32 %v4977_v45, %v3840_v63 }
0x2b29   : > { %v3844_v2 = vmax.f32 %v3841_v0, 0.0 }
0x2b2b   : > { %v3854_v3 = vpack.c.bf16 %v3844_v2, %v3844_v2 }
0x2b2d   : > { %4808 = vmatmul.msk.bf16.vlgmr.msra.gmra.mxu3 %vm2237_vm5, %v3854_v3 }
0x2b2e   : > { %v3842_v6 = vpop.f32.mrf.mxu2 }
0x2bb0   : > { %v3896_v8 = vpop.f32.mrf.mxu3 }
0x2bb1   : > { %v3897_v10 = vadd.f32 %v4978_v7, %v3896_v8 }
0x2bb3   : > { %v3900_v37 = vadd.f32 %v3897_v10, %v3804_v56 }
0x2bb5   : > { %v3905_v11 = vsel %vm648_vm0, %v3900_v37, 0.0 }
0x2bb6   : > { %3906 = vadd.xlane.f32.xlu0 %v3905_v11 }
0x2bb8   : > { %v3898_v12 = vpop.f32.mrf.mxu3 }
0x2c29   : > { %v3907_v13 = vpop.xlane.xlu0 %3906 }
0x2c2a   : > { %v3908_v58 = vmul.f32 %v3907_v13, %v5443_v21 }
0x2c2c   : > { %v3909_v61 = vsub.f32 %v3900_v37, %v3908_v58 }
0x2c2e   : > { %v3910_v14 = vmul.f32 %v3909_v61, %v3909_v61 }
0x2c30   : > { %v3911_v15 = vsel %vm648_vm0, %v3910_v14, 0.0 }
0x2c31   : > { %3912 = vadd.xlane.f32.xlu1 %v3911_v15 }
0x2ca4   : > { %v3913_v17 = vpop.xlane.xlu1 %3912 }
0x2ca5   : > { %v3914_v18 = vmul.f32 %v3913_v17, %v5443_v21 }
0x2ca7   : > { %v3915_v19 = vadd.f32 1e-05, %v3914_v18 }
0x2ca9   : > { %5057 = vrsqrt.f32 %v3915_v19  ;;  %vm3922_vm12 = vweird.f32 %v3915_v19 }
0x2caf   : > { %v5058_v20 = vpop.eup %5057 }
0x2cb0   : > { %v3917_v4 = vmul.f32 %v5058_v20, %v3915_v19  ;;  %vm3923_vm5 = vweird.f32 %v5058_v20 }
0x2cb1   : > { %vm3924_vm13 = vmor %vm3922_vm12, %vm3923_vm5 }
0x2cb2   : > { %v3918_v22 = vmul.f32 %v5058_v20, %v3917_v4 }
0x2cb4   : > { %v3919_v23 = vmul.f32 0.5, %v3918_v22 }
0x2cb6   : > { %v3920_v24 = vsub.f32 1.5, %v3919_v23 }
0x2cb8   : > { %v3921_v25 = vmul.f32 %v5058_v20, %v3920_v24 }
0x2cba   : > { %v3925_v21 = vsel %vm3924_vm13, %v5058_v20, %v3921_v25 }
0x2cbb   : > { %v3926_v28 = vmul.f32 %v3925_v21, %v3909_v61 }
0x2cbd   : > { %v3930_v5 = vmul.f32 %v4979_v26, %v3926_v28 }
0x2cbf   : > { %v3934_v29 = vadd.f32 %v4980_v33, %v3930_v5 }
0x2cc1   : > { %3935 = vst.msk [vmem:[%s607_s22] sm:$0xff] %vm648_vm0, %v3934_v29 }
0x2cc2   : > { %5087 = shalt.err (!%p5084_p3)
}
0x2cc3   : > { %4925 = dma.vmem_to_hbm [thread:$0]  (%p5258_p5), %s3950_s0, 128, %s3952_s3, %s3937_s20  }
0x2cc4 PF: > { %s6114_s23 = sld [smem:[#allocation5_spill]]  ;;  %p4931_p4 = scmp.ge.s32.totalorder %s5122_s30, 2 }
0x2cc6   : > { %p4928_p7 = pnand %p4931_p4, %p5262_p6 }
0x2cc8   : > { %p4929_p8 = pneg %p4928_p7 }
0x2cca   : > { %s3963_s22 = sand.u32 1, %s6114_s23  }
0x2ccb   : > { %s3964_s26 = scalar_lea.sflag [#allocation3], %s3963_s22 }
0x2ccc   : > { %5105 = dma.done.wait (%p4929_p8), %s3964_s26, 128  }
0x2ccd   : > { %5107 = vsyncadd (%p4929_p8), %s3964_s26, 4294967168  ;;  %s6116_s30 = sld [smem:[#allocation7_spill]]  ;;  %s6119_s27 = smov %s5114_s28 }
0x2cce   : > { %s6117_s25 = sld [smem:[#allocation6_spill]] }
0x2ccf   : > { %s6118_s29 = sld [smem:[#allocation8_spill]] }
0x2cd3   : > { %p28_p9 = scmp.ge.s32.totalorder %s6116_s30, 4  }
0x2cd4   : > { %s6120_s28 = smov %s6117_s25 }
0x2cd5   :  { %30 = sbr.rel (!%p28_p9) target bundleno = 8 (0x8), region = 206 }
0x2cda   :  { %3970 = vsyncpa [#allocation3], 1 }
0x2cdb   :  { %3972 = vsyncpa [#allocation3 + $0x1], 1 }

</bundles_post_ra>
